<compile_context>
chip_gen: v5e
topology: v5e:2x2
jax: 0.10.0
libtpu: 0.0.40
codegen_flags: <defaults>
</compile_context>

<pallas_src>
import math

import jax
import jax.numpy as jnp
from jax.experimental import pallas as pl
from jax.experimental.pallas import tpu as pltpu


# ---------------------------------------------------------------------------
# In-kernel helpers
# ---------------------------------------------------------------------------
def _layer_norm(x, gamma, beta, eps=1e-5):
    mu = jnp.mean(x, axis=-1, keepdims=True)
    var = jnp.mean((x - mu) ** 2, axis=-1, keepdims=True)
    return (x - mu) * jax.lax.rsqrt(var + eps) * gamma + beta


# ---------------------------------------------------------------------------
# Single fused kernel: patch embed + cls/pos-enc + L encoder layers
# ---------------------------------------------------------------------------
def vit_fused_kernel(patches_ref, patch_w_ref, patch_b_ref, cls_ref, pe_ref,
                     ln1g_ref, ln1b_ref, wq_ref, wk_ref, wv_ref,
                     bq_ref, bk_ref, bv_ref, wo_ref, bo_ref,
                     ln2g_ref, ln2b_ref, w1_ref, b1_ref, w2_ref, b2_ref,
                     out_ref, *maybe_attn_ref):
    attn_ref = maybe_attn_ref[0] if maybe_attn_ref else None

    f32 = jnp.float32
    bf16 = jnp.bfloat16
    L, H, _, Dh = wq_ref.shape          # (num_layers, heads, E, head_dim)
    S = pe_ref.shape[0]
    scale = 1.0 / math.sqrt(Dh)

    # ---- patch embedding + cls token + positional encoding (in registers) ----
    patches = patches_ref[0].astype(bf16)                           # (N, K)
    emb = jnp.dot(patches, patch_w_ref[...],
                  preferred_element_type=f32) + patch_b_ref[...]    # (N, E)
    x = jnp.concatenate([cls_ref[...], emb], axis=0) + pe_ref[...]  # (S, E) f32

    # ---- encoder layers (static unroll; activation x stays in vregs) --------
    for li in range(L):
        # --- multi-head self-attention (pre-norm) ---
        h1 = _layer_norm(x, ln1g_ref[li], ln1b_ref[li]).astype(bf16)
        attn_acc = jnp.zeros_like(x)
        for hd in range(H):
            q = jnp.dot(h1, wq_ref[li, hd],
                        preferred_element_type=f32) + bq_ref[li, hd]   # (S, Dh)
            k = jnp.dot(h1, wk_ref[li, hd],
                        preferred_element_type=f32) + bk_ref[li, hd]
            v = jnp.dot(h1, wv_ref[li, hd],
                        preferred_element_type=f32) + bv_ref[li, hd]
            scores = jax.lax.dot_general(
                q.astype(bf16), k.astype(bf16),
                (((1,), (1,)), ((), ())),
                preferred_element_type=f32) * scale                   # (S, S)
            m = jnp.max(scores, axis=-1, keepdims=True)
            e = jnp.exp(scores - m)
            p = e * pl.reciprocal(jnp.sum(e, axis=-1, keepdims=True),
                                  approx=True)                        # (S, S)
            if attn_ref is not None:
                # lane-dense store: pad last dim to 128 and slice on the host.
                pad = jnp.zeros((S, attn_ref.shape[-1] - S), f32)
                attn_ref[0, li, hd] = jnp.concatenate([p, pad], axis=-1)
            o = jnp.dot(p.astype(bf16), v.astype(bf16),
                        preferred_element_type=f32)                   # (S, Dh)
            # output projection accumulated per head (no feature concat)
            attn_acc = attn_acc + jnp.dot(o.astype(bf16), wo_ref[li, hd],
                                          preferred_element_type=f32)
        x = x + attn_acc + bo_ref[li]

        # --- MLP (pre-norm) ---
        h2 = _layer_norm(x, ln2g_ref[li], ln2b_ref[li])
        m1 = jnp.dot(h2.astype(bf16), w1_ref[li],
                     preferred_element_type=f32) + b1_ref[li]
        # TODO(synk): PyTorch nn.GELU defaults to exact erf; tanh approx used.
        m1 = jax.nn.gelu(m1, approximate=True)
        m2 = jnp.dot(m1.astype(bf16), w2_ref[li],
                     preferred_element_type=f32) + b2_ref[li]
        x = x + m2

    out_ref[0] = x


# ---------------------------------------------------------------------------
# Wrapper
# ---------------------------------------------------------------------------
def _const_spec(arr):
    nd = arr.ndim
    return pl.BlockSpec(arr.shape, lambda b, _nd=nd: (0,) * _nd)


def vision_transformer_forward(x, params, *, patch_size, num_heads,
                               return_attention=False):
    x = x.astype(jnp.float32)
    B, C, Himg, Wimg = x.shape
    P = patch_size
    nh, nw = Himg // P, Wimg // P
    N = nh * nw
    K = C * P * P
    E = params["patch_w"].shape[1]
    S = N + 1
    L = len(params["layers"])
    H = num_heads
    Dh = E // H
    SP = 128                              # lane-dense padded attention width
    bf16 = jnp.bfloat16

    # glue: extract non-overlapping patches == Conv2d(kernel=P, stride=P)
    # followed by flatten(2).transpose(1, 2) in the PyTorch reference.
    patches = x.reshape(B, C, nh, P, nw, P)
    patches = patches.transpose(0, 2, 4, 1, 3, 5).reshape(B, N, K)

    # --- pack / stack weights for the fused kernel (host-side, cheap) ---
    def stack(key):
        return jnp.stack([lp[key] for lp in params["layers"]], axis=0)

    wqkv = stack("wqkv")                                    # (L, E, 3E)
    bqkv = stack("bqkv")                                    # (L, 1, 3E)
    wq = wqkv[:, :, 0 * E:1 * E].reshape(L, E, H, Dh).transpose(0, 2, 1, 3)
    wk = wqkv[:, :, 1 * E:2 * E].reshape(L, E, H, Dh).transpose(0, 2, 1, 3)
    wv = wqkv[:, :, 2 * E:3 * E].reshape(L, E, H, Dh).transpose(0, 2, 1, 3)
    bq = bqkv[:, 0, 0 * E:1 * E].reshape(L, H, 1, Dh)
    bk = bqkv[:, 0, 1 * E:2 * E].reshape(L, H, 1, Dh)
    bv = bqkv[:, 0, 2 * E:3 * E].reshape(L, H, 1, Dh)

    weights = [
        params["patch_w"].astype(bf16),        # (K, E)
        params["patch_b"],                     # (1, E)
        params["cls"],                         # (1, E)
        params["pe"],                          # (S, E)
        stack("ln1_g"), stack("ln1_b"),        # (L, 1, E)
        wq.astype(bf16), wk.astype(bf16), wv.astype(bf16),   # (L, H, E, Dh)
        bq, bk, bv,                            # (L, H, 1, Dh)
        stack("wo").reshape(L, H, Dh, E).astype(bf16),       # (L, H, Dh, E)
        stack("bo"),                           # (L, 1, E)
        stack("ln2_g"), stack("ln2_b"),        # (L, 1, E)
        stack("w1").astype(bf16), stack("b1"),               # (L, E, Hd), (L, 1, Hd)
        stack("w2").astype(bf16), stack("b2"),               # (L, Hd, E), (L, 1, E)
    ]

    in_specs = [pl.BlockSpec((1, N, K), lambda b: (b, 0, 0))]
    in_specs += [_const_spec(w) for w in weights]

    out_shapes = [jax.ShapeDtypeStruct((B, S, E), jnp.float32)]
    out_specs = [pl.BlockSpec((1, S, E), lambda b: (b, 0, 0))]
    if return_attention:
        out_shapes.append(jax.ShapeDtypeStruct((B, L, H, S, SP), jnp.float32))
        out_specs.append(pl.BlockSpec((1, L, H, S, SP),
                                      lambda b: (b, 0, 0, 0, 0)))

    results = pl.pallas_call(
        vit_fused_kernel,
        out_shape=tuple(out_shapes),
        grid=(B,),
        in_specs=in_specs,
        out_specs=tuple(out_specs),
        compiler_params=pltpu.CompilerParams(
            dimension_semantics=("parallel",)),
    )(patches, *weights)

    if return_attention:
        out, attn_pad = results
        attn = jnp.transpose(attn_pad[..., :S], (1, 0, 2, 3, 4))  # (L,B,H,S,S)
        return out, attn
    out = results[0] if isinstance(results, (tuple, list)) else results
    return out


# ---------------------------------------------------------------------------
# Deterministic parameter init & positional encoding
# ---------------------------------------------------------------------------
def sin_position_encoding(max_len, d):
    pos = jnp.arange(max_len, dtype=jnp.float32)[:, None]
    i = jnp.arange(d // 2, dtype=jnp.float32)[None, :]
    div = jnp.exp(-(2.0 * i / d) * jnp.log(10000.0))
    pe = jnp.zeros((max_len, d), jnp.float32)
    pe = pe.at[:, 0::2].set(jnp.sin(pos * div))
    pe = pe.at[:, 1::2].set(jnp.cos(pos * div))
    return pe


def init_params(key, in_channel, image_size, patch_size, embed_size,
                num_layers, mlp_ratio=4):
    K = in_channel * patch_size * patch_size
    E = embed_size
    S = 1 + (image_size // patch_size) ** 2
    Hd = mlp_ratio * E

    def nrm(k, shape, scale=0.02):
        return scale * jax.random.normal(k, shape, jnp.float32)

    keys = jax.random.split(key, 3 + 6 * num_layers)
    params = {
        "patch_w": nrm(keys[0], (K, E)),
        "patch_b": jnp.zeros((1, E), jnp.float32),
        "cls": jax.random.normal(keys[1], (1, E), jnp.float32),
        "pe": sin_position_encoding(S, E),
        "layers": [],
    }
    for li in range(num_layers):
        kq, ko, k1, k2, _, _ = jax.random.split(keys[3 + li], 6)
        params["layers"].append({
            "ln1_g": jnp.ones((1, E), jnp.float32),
            "ln1_b": jnp.zeros((1, E), jnp.float32),
            "wqkv": nrm(kq, (E, 3 * E)),
            "bqkv": jnp.zeros((1, 3 * E), jnp.float32),
            "wo": nrm(ko, (E, E)),
            "bo": jnp.zeros((1, E), jnp.float32),
            "ln2_g": jnp.ones((1, E), jnp.float32),
            "ln2_b": jnp.zeros((1, E), jnp.float32),
            "w1": nrm(k1, (E, Hd)),
            "b1": jnp.zeros((1, Hd), jnp.float32),
            "w2": nrm(k2, (Hd, E)),
            "b2": jnp.zeros((1, E), jnp.float32),
        })
    return params


# ---------------------------------------------------------------------------
if __name__ == "__main__":
    IN_CHANNEL = 4
    IMAGE_SIZE = 16
    PATCH_SIZE = 4
    EMBED_SIZE = 32
    NUM_LAYERS = 2
    NUM_HEADS = 4
    BATCH = 2

    key = jax.random.PRNGKey(0)
    k_x, k_p = jax.random.split(key)
    x = jax.random.normal(k_x, (BATCH, IN_CHANNEL, IMAGE_SIZE, IMAGE_SIZE),
                          jnp.float32)
    params = init_params(k_p, IN_CHANNEL, IMAGE_SIZE, PATCH_SIZE,
                         EMBED_SIZE, NUM_LAYERS)

    out, attn = vision_transformer_forward(
        x, params, patch_size=PATCH_SIZE, num_heads=NUM_HEADS,
        return_attention=True)
    out = jax.block_until_ready(out)
    attn = jax.block_until_ready(attn)

    S = 1 + (IMAGE_SIZE // PATCH_SIZE) ** 2
    assert out.shape == (BATCH, S, EMBED_SIZE), out.shape
    assert attn.shape == (NUM_LAYERS, BATCH, NUM_HEADS, S, S), attn.shape
    assert bool(jnp.all(jnp.isfinite(out)))
    assert bool(jnp.all(jnp.isfinite(attn)))
    print("KERNEL_OK")
</pallas_src>

<mosaic_0001>
module attributes {stable_mosaic.version = 11 : i64} {
  func.func @vit_fused_kernel(%arg0: i32, %arg1: memref<1x16x64xf32, #tpu.memory_space<vmem>>, %arg2: memref<64x32xbf16, #tpu.memory_space<vmem>>, %arg3: memref<1x32xf32, #tpu.memory_space<vmem>>, %arg4: memref<1x32xf32, #tpu.memory_space<vmem>>, %arg5: memref<17x32xf32, #tpu.memory_space<vmem>>, %arg6: memref<2x1x32xf32, #tpu.memory_space<vmem>>, %arg7: memref<2x1x32xf32, #tpu.memory_space<vmem>>, %arg8: memref<2x4x32x8xbf16, #tpu.memory_space<vmem>>, %arg9: memref<2x4x32x8xbf16, #tpu.memory_space<vmem>>, %arg10: memref<2x4x32x8xbf16, #tpu.memory_space<vmem>>, %arg11: memref<2x4x1x8xf32, #tpu.memory_space<vmem>>, %arg12: memref<2x4x1x8xf32, #tpu.memory_space<vmem>>, %arg13: memref<2x4x1x8xf32, #tpu.memory_space<vmem>>, %arg14: memref<2x4x8x32xbf16, #tpu.memory_space<vmem>>, %arg15: memref<2x1x32xf32, #tpu.memory_space<vmem>>, %arg16: memref<2x1x32xf32, #tpu.memory_space<vmem>>, %arg17: memref<2x1x32xf32, #tpu.memory_space<vmem>>, %arg18: memref<2x32x128xbf16, #tpu.memory_space<vmem>>, %arg19: memref<2x1x128xf32, #tpu.memory_space<vmem>>, %arg20: memref<2x128x32xbf16, #tpu.memory_space<vmem>>, %arg21: memref<2x1x32xf32, #tpu.memory_space<vmem>>, %arg22: memref<1x17x32xf32, #tpu.memory_space<vmem>>, %arg23: memref<1x2x4x17x128xf32, #tpu.memory_space<vmem>>) attributes {dimension_semantics = [#tpu.dimension_semantics<parallel>], iteration_bounds = array<i64: 2>, scalar_prefetch = 0 : i64, scratch_operands = 0 : i64, tpu.core_type = #tpu.core_type<tc>, window_params = [{transform_indices = @transform_0, window_bounds = array<i64: 1, 16, 64>}, {pipeline_mode = #tpu.pipeline_mode<synchronous>, transform_indices = @transform_1, window_bounds = array<i64: 64, 32>}, {pipeline_mode = #tpu.pipeline_mode<synchronous>, transform_indices = @transform_2, window_bounds = array<i64: 1, 32>}, {pipeline_mode = #tpu.pipeline_mode<synchronous>, transform_indices = @transform_3, window_bounds = array<i64: 1, 32>}, {pipeline_mode = #tpu.pipeline_mode<synchronous>, transform_indices = @transform_4, window_bounds = array<i64: 17, 32>}, {pipeline_mode = #tpu.pipeline_mode<synchronous>, transform_indices = @transform_5, window_bounds = array<i64: 2, 1, 32>}, {pipeline_mode = #tpu.pipeline_mode<synchronous>, transform_indices = @transform_6, window_bounds = array<i64: 2, 1, 32>}, {pipeline_mode = #tpu.pipeline_mode<synchronous>, transform_indices = @transform_7, window_bounds = array<i64: 2, 4, 32, 8>}, {pipeline_mode = #tpu.pipeline_mode<synchronous>, transform_indices = @transform_8, window_bounds = array<i64: 2, 4, 32, 8>}, {pipeline_mode = #tpu.pipeline_mode<synchronous>, transform_indices = @transform_9, window_bounds = array<i64: 2, 4, 32, 8>}, {pipeline_mode = #tpu.pipeline_mode<synchronous>, transform_indices = @transform_10, window_bounds = array<i64: 2, 4, 1, 8>}, {pipeline_mode = #tpu.pipeline_mode<synchronous>, transform_indices = @transform_11, window_bounds = array<i64: 2, 4, 1, 8>}, {pipeline_mode = #tpu.pipeline_mode<synchronous>, transform_indices = @transform_12, window_bounds = array<i64: 2, 4, 1, 8>}, {pipeline_mode = #tpu.pipeline_mode<synchronous>, transform_indices = @transform_13, window_bounds = array<i64: 2, 4, 8, 32>}, {pipeline_mode = #tpu.pipeline_mode<synchronous>, transform_indices = @transform_14, window_bounds = array<i64: 2, 1, 32>}, {pipeline_mode = #tpu.pipeline_mode<synchronous>, transform_indices = @transform_15, window_bounds = array<i64: 2, 1, 32>}, {pipeline_mode = #tpu.pipeline_mode<synchronous>, transform_indices = @transform_16, window_bounds = array<i64: 2, 1, 32>}, {pipeline_mode = #tpu.pipeline_mode<synchronous>, transform_indices = @transform_17, window_bounds = array<i64: 2, 32, 128>}, {pipeline_mode = #tpu.pipeline_mode<synchronous>, transform_indices = @transform_18, window_bounds = array<i64: 2, 1, 128>}, {pipeline_mode = #tpu.pipeline_mode<synchronous>, transform_indices = @transform_19, window_bounds = array<i64: 2, 128, 32>}, {pipeline_mode = #tpu.pipeline_mode<synchronous>, transform_indices = @transform_20, window_bounds = array<i64: 2, 1, 32>}, {transform_indices = @transform_21, window_bounds = array<i64: 1, 17, 32>}, {transform_indices = @transform_22, window_bounds = array<i64: 1, 2, 4, 17, 128>}]} {
    %c0 = arith.constant 0 : index
    %c0_0 = arith.constant 0 : index
    %c0_1 = arith.constant 0 : index
    %0 = vector.load %arg1[%c0, %c0_0, %c0_1] : memref<1x16x64xf32, #tpu.memory_space<vmem>>, vector<1x16x64xf32>
    %1 = vector.shape_cast %0 : vector<1x16x64xf32> to vector<16x64xf32>
    %2 = arith.truncf %1 : vector<16x64xf32> to vector<16x64xbf16>
    %c0_2 = arith.constant 0 : index
    %c0_3 = arith.constant 0 : index
    %3 = vector.load %arg2[%c0_2, %c0_3] : memref<64x32xbf16, #tpu.memory_space<vmem>>, vector<64x32xbf16>
    %cst = arith.constant dense<0.000000e+00> : vector<16x32xf32>
    %4 = tpu.matmul %2, %3, %cst {dimension_numbers = #tpu.dot_dimension_numbers<[1], [0], [0], [1], [0, 0, 1, 1], [], []>} : vector<16x64xbf16>, vector<64x32xbf16>, vector<16x32xf32> -> vector<16x32xf32>
    %c0_4 = arith.constant 0 : index
    %c0_5 = arith.constant 0 : index
    %5 = vector.load %arg3[%c0_4, %c0_5] : memref<1x32xf32, #tpu.memory_space<vmem>>, vector<1x32xf32>
    %6 = vector.broadcast %5 : vector<1x32xf32> to vector<16x32xf32>
    %7 = arith.addf %4, %6 : vector<16x32xf32>
    %c0_6 = arith.constant 0 : index
    %c0_7 = arith.constant 0 : index
    %8 = vector.load %arg4[%c0_6, %c0_7] : memref<1x32xf32, #tpu.memory_space<vmem>>, vector<1x32xf32>
    %9 = tpu.concatenate %8, %7 in 0 : vector<1x32xf32>, vector<16x32xf32> -> vector<17x32xf32>
    %c0_8 = arith.constant 0 : index
    %c0_9 = arith.constant 0 : index
    %10 = vector.load %arg5[%c0_8, %c0_9] : memref<17x32xf32, #tpu.memory_space<vmem>>, vector<17x32xf32>
    %11 = arith.addf %9, %10 : vector<17x32xf32>
    %c0_10 = arith.constant 0 : index
    %c0_11 = arith.constant 0 : index
    %c0_12 = arith.constant 0 : index
    %12 = vector.load %arg6[%c0_10, %c0_11, %c0_12] : memref<2x1x32xf32, #tpu.memory_space<vmem>>, vector<1x1x32xf32>
    %13 = vector.shape_cast %12 : vector<1x1x32xf32> to vector<1x32xf32>
    %c0_13 = arith.constant 0 : index
    %c0_14 = arith.constant 0 : index
    %c0_15 = arith.constant 0 : index
    %14 = vector.load %arg7[%c0_13, %c0_14, %c0_15] : memref<2x1x32xf32, #tpu.memory_space<vmem>>, vector<1x1x32xf32>
    %15 = vector.shape_cast %14 : vector<1x1x32xf32> to vector<1x32xf32>
    %cst_16 = arith.constant dense<0.000000e+00> : vector<17xf32>
    %16 = vector.multi_reduction <add>, %11, %cst_16 [1] : vector<17x32xf32> to vector<17xf32>
    %17 = vector.shape_cast %16 : vector<17xf32> to vector<17x1xf32>
    %cst_17 = arith.constant 3.200000e+01 : f32
    %18 = vector.broadcast %cst_17 : f32 to vector<17x1xf32>
    %19 = arith.divf %17, %18 : vector<17x1xf32>
    %20 = vector.broadcast %19 : vector<17x1xf32> to vector<17x32xf32>
    %21 = arith.subf %11, %20 : vector<17x32xf32>
    %22 = arith.mulf %21, %21 : vector<17x32xf32>
    %cst_18 = arith.constant dense<0.000000e+00> : vector<17xf32>
    %23 = vector.multi_reduction <add>, %22, %cst_18 [1] : vector<17x32xf32> to vector<17xf32>
    %24 = vector.shape_cast %23 : vector<17xf32> to vector<17x1xf32>
    %cst_19 = arith.constant 3.200000e+01 : f32
    %25 = vector.broadcast %cst_19 : f32 to vector<17x1xf32>
    %26 = arith.divf %24, %25 : vector<17x1xf32>
    %27 = vector.broadcast %19 : vector<17x1xf32> to vector<17x32xf32>
    %28 = arith.subf %11, %27 : vector<17x32xf32>
    %cst_20 = arith.constant 9.99999974E-6 : f32
    %29 = vector.broadcast %cst_20 : f32 to vector<17x1xf32>
    %30 = arith.addf %26, %29 : vector<17x1xf32>
    %31 = math.rsqrt %30 : vector<17x1xf32>
    %32 = vector.broadcast %31 : vector<17x1xf32> to vector<17x32xf32>
    %33 = arith.mulf %28, %32 : vector<17x32xf32>
    %34 = vector.broadcast %13 : vector<1x32xf32> to vector<17x32xf32>
    %35 = arith.mulf %33, %34 : vector<17x32xf32>
    %36 = vector.broadcast %15 : vector<1x32xf32> to vector<17x32xf32>
    %37 = arith.addf %35, %36 : vector<17x32xf32>
    %38 = arith.truncf %37 : vector<17x32xf32> to vector<17x32xbf16>
    %cst_21 = arith.constant 0.000000e+00 : f32
    %39 = vector.broadcast %cst_21 : f32 to vector<17x32xf32>
    %c0_22 = arith.constant 0 : index
    %c0_23 = arith.constant 0 : index
    %c0_24 = arith.constant 0 : index
    %c0_25 = arith.constant 0 : index
    %40 = vector.load %arg8[%c0_22, %c0_23, %c0_24, %c0_25] : memref<2x4x32x8xbf16, #tpu.memory_space<vmem>>, vector<1x1x32x8xbf16>
    %41 = vector.shape_cast %40 : vector<1x1x32x8xbf16> to vector<32x8xbf16>
    %cst_26 = arith.constant dense<0.000000e+00> : vector<17x8xf32>
    %42 = tpu.matmul %38, %41, %cst_26 {dimension_numbers = #tpu.dot_dimension_numbers<[1], [0], [0], [1], [0, 0, 1, 1], [], []>} : vector<17x32xbf16>, vector<32x8xbf16>, vector<17x8xf32> -> vector<17x8xf32>
    %c0_27 = arith.constant 0 : index
    %c0_28 = arith.constant 0 : index
    %c0_29 = arith.constant 0 : index
    %c0_30 = arith.constant 0 : index
    %43 = vector.load %arg11[%c0_27, %c0_28, %c0_29, %c0_30] : memref<2x4x1x8xf32, #tpu.memory_space<vmem>>, vector<1x1x1x8xf32>
    %44 = vector.shape_cast %43 : vector<1x1x1x8xf32> to vector<1x8xf32>
    %45 = vector.broadcast %44 : vector<1x8xf32> to vector<17x8xf32>
    %46 = arith.addf %42, %45 : vector<17x8xf32>
    %c0_31 = arith.constant 0 : index
    %c0_32 = arith.constant 0 : index
    %c0_33 = arith.constant 0 : index
    %c0_34 = arith.constant 0 : index
    %47 = vector.load %arg9[%c0_31, %c0_32, %c0_33, %c0_34] : memref<2x4x32x8xbf16, #tpu.memory_space<vmem>>, vector<1x1x32x8xbf16>
    %48 = vector.shape_cast %47 : vector<1x1x32x8xbf16> to vector<32x8xbf16>
    %cst_35 = arith.constant dense<0.000000e+00> : vector<17x8xf32>
    %49 = tpu.matmul %38, %48, %cst_35 {dimension_numbers = #tpu.dot_dimension_numbers<[1], [0], [0], [1], [0, 0, 1, 1], [], []>} : vector<17x32xbf16>, vector<32x8xbf16>, vector<17x8xf32> -> vector<17x8xf32>
    %c0_36 = arith.constant 0 : index
    %c0_37 = arith.constant 0 : index
    %c0_38 = arith.constant 0 : index
    %c0_39 = arith.constant 0 : index
    %50 = vector.load %arg12[%c0_36, %c0_37, %c0_38, %c0_39] : memref<2x4x1x8xf32, #tpu.memory_space<vmem>>, vector<1x1x1x8xf32>
    %51 = vector.shape_cast %50 : vector<1x1x1x8xf32> to vector<1x8xf32>
    %52 = vector.broadcast %51 : vector<1x8xf32> to vector<17x8xf32>
    %53 = arith.addf %49, %52 : vector<17x8xf32>
    %c0_40 = arith.constant 0 : index
    %c0_41 = arith.constant 0 : index
    %c0_42 = arith.constant 0 : index
    %c0_43 = arith.constant 0 : index
    %54 = vector.load %arg10[%c0_40, %c0_41, %c0_42, %c0_43] : memref<2x4x32x8xbf16, #tpu.memory_space<vmem>>, vector<1x1x32x8xbf16>
    %55 = vector.shape_cast %54 : vector<1x1x32x8xbf16> to vector<32x8xbf16>
    %cst_44 = arith.constant dense<0.000000e+00> : vector<17x8xf32>
    %56 = tpu.matmul %38, %55, %cst_44 {dimension_numbers = #tpu.dot_dimension_numbers<[1], [0], [0], [1], [0, 0, 1, 1], [], []>} : vector<17x32xbf16>, vector<32x8xbf16>, vector<17x8xf32> -> vector<17x8xf32>
    %c0_45 = arith.constant 0 : index
    %c0_46 = arith.constant 0 : index
    %c0_47 = arith.constant 0 : index
    %c0_48 = arith.constant 0 : index
    %57 = vector.load %arg13[%c0_45, %c0_46, %c0_47, %c0_48] : memref<2x4x1x8xf32, #tpu.memory_space<vmem>>, vector<1x1x1x8xf32>
    %58 = vector.shape_cast %57 : vector<1x1x1x8xf32> to vector<1x8xf32>
    %59 = vector.broadcast %58 : vector<1x8xf32> to vector<17x8xf32>
    %60 = arith.addf %56, %59 : vector<17x8xf32>
    %61 = arith.truncf %46 : vector<17x8xf32> to vector<17x8xbf16>
    %62 = arith.truncf %53 : vector<17x8xf32> to vector<17x8xbf16>
    %cst_49 = arith.constant dense<0.000000e+00> : vector<17x17xf32>
    %63 = tpu.matmul %61, %62, %cst_49 {dimension_numbers = #tpu.dot_dimension_numbers<[1], [1], [0], [0], [0, 0, 1, 0], [], []>} : vector<17x8xbf16>, vector<17x8xbf16>, vector<17x17xf32> -> vector<17x17xf32>
    %cst_50 = arith.constant 0.353553385 : f32
    %64 = vector.broadcast %cst_50 : f32 to vector<17x17xf32>
    %65 = arith.mulf %63, %64 : vector<17x17xf32>
    %cst_51 = arith.constant dense<0xFF800000> : vector<17xf32>
    %66 = vector.multi_reduction <maximumf>, %65, %cst_51 [1] : vector<17x17xf32> to vector<17xf32>
    %67 = vector.shape_cast %66 : vector<17xf32> to vector<17x1xf32>
    %68 = vector.broadcast %67 : vector<17x1xf32> to vector<17x17xf32>
    %69 = arith.subf %65, %68 : vector<17x17xf32>
    %70 = math.exp %69 : vector<17x17xf32>
    %cst_52 = arith.constant dense<0.000000e+00> : vector<17xf32>
    %71 = vector.multi_reduction <add>, %70, %cst_52 [1] : vector<17x17xf32> to vector<17xf32>
    %72 = vector.shape_cast %71 : vector<17xf32> to vector<17x1xf32>
    %73 = tpu.reciprocal %72 {approx = true} : vector<17x1xf32> -> vector<17x1xf32>
    %74 = vector.broadcast %73 : vector<17x1xf32> to vector<17x17xf32>
    %75 = arith.mulf %70, %74 : vector<17x17xf32>
    %cst_53 = arith.constant 0.000000e+00 : f32
    %76 = vector.broadcast %cst_53 : f32 to vector<17x111xf32>
    %77 = tpu.concatenate %75, %76 in 1 : vector<17x17xf32>, vector<17x111xf32> -> vector<17x128xf32>
    %c0_54 = arith.constant 0 : index
    %c0_55 = arith.constant 0 : index
    %c0_56 = arith.constant 0 : index
    %c0_57 = arith.constant 0 : index
    %c0_58 = arith.constant 0 : index
    %78 = vector.load %arg23[%c0_54, %c0_55, %c0_56, %c0_57, %c0_58] : memref<1x2x4x17x128xf32, #tpu.memory_space<vmem>>, vector<1x1x1x17x128xf32>
    %79 = vector.shape_cast %78 : vector<1x1x1x17x128xf32> to vector<17x128xf32>
    %80 = vector.shape_cast %77 : vector<17x128xf32> to vector<1x1x1x17x128xf32>
    tpu.vector_store %arg23[%c0_54, %c0_55, %c0_56, %c0_57, %c0_58], %80 {strides = array<i32>} : memref<1x2x4x17x128xf32, #tpu.memory_space<vmem>>, vector<1x1x1x17x128xf32>,
    %81 = arith.truncf %75 : vector<17x17xf32> to vector<17x17xbf16>
    %82 = arith.truncf %60 : vector<17x8xf32> to vector<17x8xbf16>
    %cst_59 = arith.constant dense<0.000000e+00> : vector<17x8xf32>
    %83 = tpu.matmul %81, %82, %cst_59 {dimension_numbers = #tpu.dot_dimension_numbers<[1], [0], [0], [1], [0, 0, 1, 1], [], []>} : vector<17x17xbf16>, vector<17x8xbf16>, vector<17x8xf32> -> vector<17x8xf32>
    %84 = arith.truncf %83 : vector<17x8xf32> to vector<17x8xbf16>
    %c0_60 = arith.constant 0 : index
    %c0_61 = arith.constant 0 : index
    %c0_62 = arith.constant 0 : index
    %c0_63 = arith.constant 0 : index
    %85 = vector.load %arg14[%c0_60, %c0_61, %c0_62, %c0_63] : memref<2x4x8x32xbf16, #tpu.memory_space<vmem>>, vector<1x1x8x32xbf16>
    %86 = vector.shape_cast %85 : vector<1x1x8x32xbf16> to vector<8x32xbf16>
    %cst_64 = arith.constant dense<0.000000e+00> : vector<17x32xf32>
    %87 = tpu.matmul %84, %86, %cst_64 {dimension_numbers = #tpu.dot_dimension_numbers<[1], [0], [0], [1], [0, 0, 1, 1], [], []>} : vector<17x8xbf16>, vector<8x32xbf16>, vector<17x32xf32> -> vector<17x32xf32>
    %88 = arith.addf %39, %87 : vector<17x32xf32>
    %c0_65 = arith.constant 0 : index
    %c1 = arith.constant 1 : index
    %c0_66 = arith.constant 0 : index
    %c0_67 = arith.constant 0 : index
    %89 = vector.load %arg8[%c0_65, %c1, %c0_66, %c0_67] : memref<2x4x32x8xbf16, #tpu.memory_space<vmem>>, vector<1x1x32x8xbf16>
    %90 = vector.shape_cast %89 : vector<1x1x32x8xbf16> to vector<32x8xbf16>
    %cst_68 = arith.constant dense<0.000000e+00> : vector<17x8xf32>
    %91 = tpu.matmul %38, %90, %cst_68 {dimension_numbers = #tpu.dot_dimension_numbers<[1], [0], [0], [1], [0, 0, 1, 1], [], []>} : vector<17x32xbf16>, vector<32x8xbf16>, vector<17x8xf32> -> vector<17x8xf32>
    %c0_69 = arith.constant 0 : index
    %c1_70 = arith.constant 1 : index
    %c0_71 = arith.constant 0 : index
    %c0_72 = arith.constant 0 : index
    %92 = vector.load %arg11[%c0_69, %c1_70, %c0_71, %c0_72] : memref<2x4x1x8xf32, #tpu.memory_space<vmem>>, vector<1x1x1x8xf32>
    %93 = vector.shape_cast %92 : vector<1x1x1x8xf32> to vector<1x8xf32>
    %94 = vector.broadcast %93 : vector<1x8xf32> to vector<17x8xf32>
    %95 = arith.addf %91, %94 : vector<17x8xf32>
    %c0_73 = arith.constant 0 : index
    %c1_74 = arith.constant 1 : index
    %c0_75 = arith.constant 0 : index
    %c0_76 = arith.constant 0 : index
    %96 = vector.load %arg9[%c0_73, %c1_74, %c0_75, %c0_76] : memref<2x4x32x8xbf16, #tpu.memory_space<vmem>>, vector<1x1x32x8xbf16>
    %97 = vector.shape_cast %96 : vector<1x1x32x8xbf16> to vector<32x8xbf16>
    %cst_77 = arith.constant dense<0.000000e+00> : vector<17x8xf32>
    %98 = tpu.matmul %38, %97, %cst_77 {dimension_numbers = #tpu.dot_dimension_numbers<[1], [0], [0], [1], [0, 0, 1, 1], [], []>} : vector<17x32xbf16>, vector<32x8xbf16>, vector<17x8xf32> -> vector<17x8xf32>
    %c0_78 = arith.constant 0 : index
    %c1_79 = arith.constant 1 : index
    %c0_80 = arith.constant 0 : index
    %c0_81 = arith.constant 0 : index
    %99 = vector.load %arg12[%c0_78, %c1_79, %c0_80, %c0_81] : memref<2x4x1x8xf32, #tpu.memory_space<vmem>>, vector<1x1x1x8xf32>
    %100 = vector.shape_cast %99 : vector<1x1x1x8xf32> to vector<1x8xf32>
    %101 = vector.broadcast %100 : vector<1x8xf32> to vector<17x8xf32>
    %102 = arith.addf %98, %101 : vector<17x8xf32>
    %c0_82 = arith.constant 0 : index
    %c1_83 = arith.constant 1 : index
    %c0_84 = arith.constant 0 : index
    %c0_85 = arith.constant 0 : index
    %103 = vector.load %arg10[%c0_82, %c1_83, %c0_84, %c0_85] : memref<2x4x32x8xbf16, #tpu.memory_space<vmem>>, vector<1x1x32x8xbf16>
    %104 = vector.shape_cast %103 : vector<1x1x32x8xbf16> to vector<32x8xbf16>
    %cst_86 = arith.constant dense<0.000000e+00> : vector<17x8xf32>
    %105 = tpu.matmul %38, %104, %cst_86 {dimension_numbers = #tpu.dot_dimension_numbers<[1], [0], [0], [1], [0, 0, 1, 1], [], []>} : vector<17x32xbf16>, vector<32x8xbf16>, vector<17x8xf32> -> vector<17x8xf32>
    %c0_87 = arith.constant 0 : index
    %c1_88 = arith.constant 1 : index
    %c0_89 = arith.constant 0 : index
    %c0_90 = arith.constant 0 : index
    %106 = vector.load %arg13[%c0_87, %c1_88, %c0_89, %c0_90] : memref<2x4x1x8xf32, #tpu.memory_space<vmem>>, vector<1x1x1x8xf32>
    %107 = vector.shape_cast %106 : vector<1x1x1x8xf32> to vector<1x8xf32>
    %108 = vector.broadcast %107 : vector<1x8xf32> to vector<17x8xf32>
    %109 = arith.addf %105, %108 : vector<17x8xf32>
    %110 = arith.truncf %95 : vector<17x8xf32> to vector<17x8xbf16>
    %111 = arith.truncf %102 : vector<17x8xf32> to vector<17x8xbf16>
    %cst_91 = arith.constant dense<0.000000e+00> : vector<17x17xf32>
    %112 = tpu.matmul %110, %111, %cst_91 {dimension_numbers = #tpu.dot_dimension_numbers<[1], [1], [0], [0], [0, 0, 1, 0], [], []>} : vector<17x8xbf16>, vector<17x8xbf16>, vector<17x17xf32> -> vector<17x17xf32>
    %cst_92 = arith.constant 0.353553385 : f32
    %113 = vector.broadcast %cst_92 : f32 to vector<17x17xf32>
    %114 = arith.mulf %112, %113 : vector<17x17xf32>
    %cst_93 = arith.constant dense<0xFF800000> : vector<17xf32>
    %115 = vector.multi_reduction <maximumf>, %114, %cst_93 [1] : vector<17x17xf32> to vector<17xf32>
    %116 = vector.shape_cast %115 : vector<17xf32> to vector<17x1xf32>
    %117 = vector.broadcast %116 : vector<17x1xf32> to vector<17x17xf32>
    %118 = arith.subf %114, %117 : vector<17x17xf32>
    %119 = math.exp %118 : vector<17x17xf32>
    %cst_94 = arith.constant dense<0.000000e+00> : vector<17xf32>
    %120 = vector.multi_reduction <add>, %119, %cst_94 [1] : vector<17x17xf32> to vector<17xf32>
    %121 = vector.shape_cast %120 : vector<17xf32> to vector<17x1xf32>
    %122 = tpu.reciprocal %121 {approx = true} : vector<17x1xf32> -> vector<17x1xf32>
    %123 = vector.broadcast %122 : vector<17x1xf32> to vector<17x17xf32>
    %124 = arith.mulf %119, %123 : vector<17x17xf32>
    %cst_95 = arith.constant 0.000000e+00 : f32
    %125 = vector.broadcast %cst_95 : f32 to vector<17x111xf32>
    %126 = tpu.concatenate %124, %125 in 1 : vector<17x17xf32>, vector<17x111xf32> -> vector<17x128xf32>
    %c0_96 = arith.constant 0 : index
    %c0_97 = arith.constant 0 : index
    %c1_98 = arith.constant 1 : index
    %c0_99 = arith.constant 0 : index
    %c0_100 = arith.constant 0 : index
    %127 = vector.load %arg23[%c0_96, %c0_97, %c1_98, %c0_99, %c0_100] : memref<1x2x4x17x128xf32, #tpu.memory_space<vmem>>, vector<1x1x1x17x128xf32>
    %128 = vector.shape_cast %127 : vector<1x1x1x17x128xf32> to vector<17x128xf32>
    %129 = vector.shape_cast %126 : vector<17x128xf32> to vector<1x1x1x17x128xf32>
    tpu.vector_store %arg23[%c0_96, %c0_97, %c1_98, %c0_99, %c0_100], %129 {strides = array<i32>} : memref<1x2x4x17x128xf32, #tpu.memory_space<vmem>>, vector<1x1x1x17x128xf32>,
    %130 = arith.truncf %124 : vector<17x17xf32> to vector<17x17xbf16>
    %131 = arith.truncf %109 : vector<17x8xf32> to vector<17x8xbf16>
    %cst_101 = arith.constant dense<0.000000e+00> : vector<17x8xf32>
    %132 = tpu.matmul %130, %131, %cst_101 {dimension_numbers = #tpu.dot_dimension_numbers<[1], [0], [0], [1], [0, 0, 1, 1], [], []>} : vector<17x17xbf16>, vector<17x8xbf16>, vector<17x8xf32> -> vector<17x8xf32>
    %133 = arith.truncf %132 : vector<17x8xf32> to vector<17x8xbf16>
    %c0_102 = arith.constant 0 : index
    %c1_103 = arith.constant 1 : index
    %c0_104 = arith.constant 0 : index
    %c0_105 = arith.constant 0 : index
    %134 = vector.load %arg14[%c0_102, %c1_103, %c0_104, %c0_105] : memref<2x4x8x32xbf16, #tpu.memory_space<vmem>>, vector<1x1x8x32xbf16>
    %135 = vector.shape_cast %134 : vector<1x1x8x32xbf16> to vector<8x32xbf16>
    %cst_106 = arith.constant dense<0.000000e+00> : vector<17x32xf32>
    %136 = tpu.matmul %133, %135, %cst_106 {dimension_numbers = #tpu.dot_dimension_numbers<[1], [0], [0], [1], [0, 0, 1, 1], [], []>} : vector<17x8xbf16>, vector<8x32xbf16>, vector<17x32xf32> -> vector<17x32xf32>
    %137 = arith.addf %88, %136 : vector<17x32xf32>
    %c0_107 = arith.constant 0 : index
    %c2 = arith.constant 2 : index
    %c0_108 = arith.constant 0 : index
    %c0_109 = arith.constant 0 : index
    %138 = vector.load %arg8[%c0_107, %c2, %c0_108, %c0_109] : memref<2x4x32x8xbf16, #tpu.memory_space<vmem>>, vector<1x1x32x8xbf16>
    %139 = vector.shape_cast %138 : vector<1x1x32x8xbf16> to vector<32x8xbf16>
    %cst_110 = arith.constant dense<0.000000e+00> : vector<17x8xf32>
    %140 = tpu.matmul %38, %139, %cst_110 {dimension_numbers = #tpu.dot_dimension_numbers<[1], [0], [0], [1], [0, 0, 1, 1], [], []>} : vector<17x32xbf16>, vector<32x8xbf16>, vector<17x8xf32> -> vector<17x8xf32>
    %c0_111 = arith.constant 0 : index
    %c2_112 = arith.constant 2 : index
    %c0_113 = arith.constant 0 : index
    %c0_114 = arith.constant 0 : index
    %141 = vector.load %arg11[%c0_111, %c2_112, %c0_113, %c0_114] : memref<2x4x1x8xf32, #tpu.memory_space<vmem>>, vector<1x1x1x8xf32>
    %142 = vector.shape_cast %141 : vector<1x1x1x8xf32> to vector<1x8xf32>
    %143 = vector.broadcast %142 : vector<1x8xf32> to vector<17x8xf32>
    %144 = arith.addf %140, %143 : vector<17x8xf32>
    %c0_115 = arith.constant 0 : index
    %c2_116 = arith.constant 2 : index
    %c0_117 = arith.constant 0 : index
    %c0_118 = arith.constant 0 : index
    %145 = vector.load %arg9[%c0_115, %c2_116, %c0_117, %c0_118] : memref<2x4x32x8xbf16, #tpu.memory_space<vmem>>, vector<1x1x32x8xbf16>
    %146 = vector.shape_cast %145 : vector<1x1x32x8xbf16> to vector<32x8xbf16>
    %cst_119 = arith.constant dense<0.000000e+00> : vector<17x8xf32>
    %147 = tpu.matmul %38, %146, %cst_119 {dimension_numbers = #tpu.dot_dimension_numbers<[1], [0], [0], [1], [0, 0, 1, 1], [], []>} : vector<17x32xbf16>, vector<32x8xbf16>, vector<17x8xf32> -> vector<17x8xf32>
    %c0_120 = arith.constant 0 : index
    %c2_121 = arith.constant 2 : index
    %c0_122 = arith.constant 0 : index
    %c0_123 = arith.constant 0 : index
    %148 = vector.load %arg12[%c0_120, %c2_121, %c0_122, %c0_123] : memref<2x4x1x8xf32, #tpu.memory_space<vmem>>, vector<1x1x1x8xf32>
    %149 = vector.shape_cast %148 : vector<1x1x1x8xf32> to vector<1x8xf32>
    %150 = vector.broadcast %149 : vector<1x8xf32> to vector<17x8xf32>
    %151 = arith.addf %147, %150 : vector<17x8xf32>
    %c0_124 = arith.constant 0 : index
    %c2_125 = arith.constant 2 : index
    %c0_126 = arith.constant 0 : index
    %c0_127 = arith.constant 0 : index
    %152 = vector.load %arg10[%c0_124, %c2_125, %c0_126, %c0_127] : memref<2x4x32x8xbf16, #tpu.memory_space<vmem>>, vector<1x1x32x8xbf16>
    %153 = vector.shape_cast %152 : vector<1x1x32x8xbf16> to vector<32x8xbf16>
    %cst_128 = arith.constant dense<0.000000e+00> : vector<17x8xf32>
    %154 = tpu.matmul %38, %153, %cst_128 {dimension_numbers = #tpu.dot_dimension_numbers<[1], [0], [0], [1], [0, 0, 1, 1], [], []>} : vector<17x32xbf16>, vector<32x8xbf16>, vector<17x8xf32> -> vector<17x8xf32>
    %c0_129 = arith.constant 0 : index
    %c2_130 = arith.constant 2 : index
    %c0_131 = arith.constant 0 : index
    %c0_132 = arith.constant 0 : index
    %155 = vector.load %arg13[%c0_129, %c2_130, %c0_131, %c0_132] : memref<2x4x1x8xf32, #tpu.memory_space<vmem>>, vector<1x1x1x8xf32>
    %156 = vector.shape_cast %155 : vector<1x1x1x8xf32> to vector<1x8xf32>
    %157 = vector.broadcast %156 : vector<1x8xf32> to vector<17x8xf32>
    %158 = arith.addf %154, %157 : vector<17x8xf32>
    %159 = arith.truncf %144 : vector<17x8xf32> to vector<17x8xbf16>
    %160 = arith.truncf %151 : vector<17x8xf32> to vector<17x8xbf16>
    %cst_133 = arith.constant dense<0.000000e+00> : vector<17x17xf32>
    %161 = tpu.matmul %159, %160, %cst_133 {dimension_numbers = #tpu.dot_dimension_numbers<[1], [1], [0], [0], [0, 0, 1, 0], [], []>} : vector<17x8xbf16>, vector<17x8xbf16>, vector<17x17xf32> -> vector<17x17xf32>
    %cst_134 = arith.constant 0.353553385 : f32
    %162 = vector.broadcast %cst_134 : f32 to vector<17x17xf32>
    %163 = arith.mulf %161, %162 : vector<17x17xf32>
    %cst_135 = arith.constant dense<0xFF800000> : vector<17xf32>
    %164 = vector.multi_reduction <maximumf>, %163, %cst_135 [1] : vector<17x17xf32> to vector<17xf32>
    %165 = vector.shape_cast %164 : vector<17xf32> to vector<17x1xf32>
    %166 = vector.broadcast %165 : vector<17x1xf32> to vector<17x17xf32>
    %167 = arith.subf %163, %166 : vector<17x17xf32>
    %168 = math.exp %167 : vector<17x17xf32>
    %cst_136 = arith.constant dense<0.000000e+00> : vector<17xf32>
    %169 = vector.multi_reduction <add>, %168, %cst_136 [1] : vector<17x17xf32> to vector<17xf32>
    %170 = vector.shape_cast %169 : vector<17xf32> to vector<17x1xf32>
    %171 = tpu.reciprocal %170 {approx = true} : vector<17x1xf32> -> vector<17x1xf32>
    %172 = vector.broadcast %171 : vector<17x1xf32> to vector<17x17xf32>
    %173 = arith.mulf %168, %172 : vector<17x17xf32>
    %cst_137 = arith.constant 0.000000e+00 : f32
    %174 = vector.broadcast %cst_137 : f32 to vector<17x111xf32>
    %175 = tpu.concatenate %173, %174 in 1 : vector<17x17xf32>, vector<17x111xf32> -> vector<17x128xf32>
    %c0_138 = arith.constant 0 : index
    %c0_139 = arith.constant 0 : index
    %c2_140 = arith.constant 2 : index
    %c0_141 = arith.constant 0 : index
    %c0_142 = arith.constant 0 : index
    %176 = vector.load %arg23[%c0_138, %c0_139, %c2_140, %c0_141, %c0_142] : memref<1x2x4x17x128xf32, #tpu.memory_space<vmem>>, vector<1x1x1x17x128xf32>
    %177 = vector.shape_cast %176 : vector<1x1x1x17x128xf32> to vector<17x128xf32>
    %178 = vector.shape_cast %175 : vector<17x128xf32> to vector<1x1x1x17x128xf32>
    tpu.vector_store %arg23[%c0_138, %c0_139, %c2_140, %c0_141, %c0_142], %178 {strides = array<i32>} : memref<1x2x4x17x128xf32, #tpu.memory_space<vmem>>, vector<1x1x1x17x128xf32>,
    %179 = arith.truncf %173 : vector<17x17xf32> to vector<17x17xbf16>
    %180 = arith.truncf %158 : vector<17x8xf32> to vector<17x8xbf16>
    %cst_143 = arith.constant dense<0.000000e+00> : vector<17x8xf32>
    %181 = tpu.matmul %179, %180, %cst_143 {dimension_numbers = #tpu.dot_dimension_numbers<[1], [0], [0], [1], [0, 0, 1, 1], [], []>} : vector<17x17xbf16>, vector<17x8xbf16>, vector<17x8xf32> -> vector<17x8xf32>
    %182 = arith.truncf %181 : vector<17x8xf32> to vector<17x8xbf16>
    %c0_144 = arith.constant 0 : index
    %c2_145 = arith.constant 2 : index
    %c0_146 = arith.constant 0 : index
    %c0_147 = arith.constant 0 : index
    %183 = vector.load %arg14[%c0_144, %c2_145, %c0_146, %c0_147] : memref<2x4x8x32xbf16, #tpu.memory_space<vmem>>, vector<1x1x8x32xbf16>
    %184 = vector.shape_cast %183 : vector<1x1x8x32xbf16> to vector<8x32xbf16>
    %cst_148 = arith.constant dense<0.000000e+00> : vector<17x32xf32>
    %185 = tpu.matmul %182, %184, %cst_148 {dimension_numbers = #tpu.dot_dimension_numbers<[1], [0], [0], [1], [0, 0, 1, 1], [], []>} : vector<17x8xbf16>, vector<8x32xbf16>, vector<17x32xf32> -> vector<17x32xf32>
    %186 = arith.addf %137, %185 : vector<17x32xf32>
    %c0_149 = arith.constant 0 : index
    %c3 = arith.constant 3 : index
    %c0_150 = arith.constant 0 : index
    %c0_151 = arith.constant 0 : index
    %187 = vector.load %arg8[%c0_149, %c3, %c0_150, %c0_151] : memref<2x4x32x8xbf16, #tpu.memory_space<vmem>>, vector<1x1x32x8xbf16>
    %188 = vector.shape_cast %187 : vector<1x1x32x8xbf16> to vector<32x8xbf16>
    %cst_152 = arith.constant dense<0.000000e+00> : vector<17x8xf32>
    %189 = tpu.matmul %38, %188, %cst_152 {dimension_numbers = #tpu.dot_dimension_numbers<[1], [0], [0], [1], [0, 0, 1, 1], [], []>} : vector<17x32xbf16>, vector<32x8xbf16>, vector<17x8xf32> -> vector<17x8xf32>
    %c0_153 = arith.constant 0 : index
    %c3_154 = arith.constant 3 : index
    %c0_155 = arith.constant 0 : index
    %c0_156 = arith.constant 0 : index
    %190 = vector.load %arg11[%c0_153, %c3_154, %c0_155, %c0_156] : memref<2x4x1x8xf32, #tpu.memory_space<vmem>>, vector<1x1x1x8xf32>
    %191 = vector.shape_cast %190 : vector<1x1x1x8xf32> to vector<1x8xf32>
    %192 = vector.broadcast %191 : vector<1x8xf32> to vector<17x8xf32>
    %193 = arith.addf %189, %192 : vector<17x8xf32>
    %c0_157 = arith.constant 0 : index
    %c3_158 = arith.constant 3 : index
    %c0_159 = arith.constant 0 : index
    %c0_160 = arith.constant 0 : index
    %194 = vector.load %arg9[%c0_157, %c3_158, %c0_159, %c0_160] : memref<2x4x32x8xbf16, #tpu.memory_space<vmem>>, vector<1x1x32x8xbf16>
    %195 = vector.shape_cast %194 : vector<1x1x32x8xbf16> to vector<32x8xbf16>
    %cst_161 = arith.constant dense<0.000000e+00> : vector<17x8xf32>
    %196 = tpu.matmul %38, %195, %cst_161 {dimension_numbers = #tpu.dot_dimension_numbers<[1], [0], [0], [1], [0, 0, 1, 1], [], []>} : vector<17x32xbf16>, vector<32x8xbf16>, vector<17x8xf32> -> vector<17x8xf32>
    %c0_162 = arith.constant 0 : index
    %c3_163 = arith.constant 3 : index
    %c0_164 = arith.constant 0 : index
    %c0_165 = arith.constant 0 : index
    %197 = vector.load %arg12[%c0_162, %c3_163, %c0_164, %c0_165] : memref<2x4x1x8xf32, #tpu.memory_space<vmem>>, vector<1x1x1x8xf32>
    %198 = vector.shape_cast %197 : vector<1x1x1x8xf32> to vector<1x8xf32>
    %199 = vector.broadcast %198 : vector<1x8xf32> to vector<17x8xf32>
    %200 = arith.addf %196, %199 : vector<17x8xf32>
    %c0_166 = arith.constant 0 : index
    %c3_167 = arith.constant 3 : index
    %c0_168 = arith.constant 0 : index
    %c0_169 = arith.constant 0 : index
    %201 = vector.load %arg10[%c0_166, %c3_167, %c0_168, %c0_169] : memref<2x4x32x8xbf16, #tpu.memory_space<vmem>>, vector<1x1x32x8xbf16>
    %202 = vector.shape_cast %201 : vector<1x1x32x8xbf16> to vector<32x8xbf16>
    %cst_170 = arith.constant dense<0.000000e+00> : vector<17x8xf32>
    %203 = tpu.matmul %38, %202, %cst_170 {dimension_numbers = #tpu.dot_dimension_numbers<[1], [0], [0], [1], [0, 0, 1, 1], [], []>} : vector<17x32xbf16>, vector<32x8xbf16>, vector<17x8xf32> -> vector<17x8xf32>
    %c0_171 = arith.constant 0 : index
    %c3_172 = arith.constant 3 : index
    %c0_173 = arith.constant 0 : index
    %c0_174 = arith.constant 0 : index
    %204 = vector.load %arg13[%c0_171, %c3_172, %c0_173, %c0_174] : memref<2x4x1x8xf32, #tpu.memory_space<vmem>>, vector<1x1x1x8xf32>
    %205 = vector.shape_cast %204 : vector<1x1x1x8xf32> to vector<1x8xf32>
    %206 = vector.broadcast %205 : vector<1x8xf32> to vector<17x8xf32>
    %207 = arith.addf %203, %206 : vector<17x8xf32>
    %208 = arith.truncf %193 : vector<17x8xf32> to vector<17x8xbf16>
    %209 = arith.truncf %200 : vector<17x8xf32> to vector<17x8xbf16>
    %cst_175 = arith.constant dense<0.000000e+00> : vector<17x17xf32>
    %210 = tpu.matmul %208, %209, %cst_175 {dimension_numbers = #tpu.dot_dimension_numbers<[1], [1], [0], [0], [0, 0, 1, 0], [], []>} : vector<17x8xbf16>, vector<17x8xbf16>, vector<17x17xf32> -> vector<17x17xf32>
    %cst_176 = arith.constant 0.353553385 : f32
    %211 = vector.broadcast %cst_176 : f32 to vector<17x17xf32>
    %212 = arith.mulf %210, %211 : vector<17x17xf32>
    %cst_177 = arith.constant dense<0xFF800000> : vector<17xf32>
    %213 = vector.multi_reduction <maximumf>, %212, %cst_177 [1] : vector<17x17xf32> to vector<17xf32>
    %214 = vector.shape_cast %213 : vector<17xf32> to vector<17x1xf32>
    %215 = vector.broadcast %214 : vector<17x1xf32> to vector<17x17xf32>
    %216 = arith.subf %212, %215 : vector<17x17xf32>
    %217 = math.exp %216 : vector<17x17xf32>
    %cst_178 = arith.constant dense<0.000000e+00> : vector<17xf32>
    %218 = vector.multi_reduction <add>, %217, %cst_178 [1] : vector<17x17xf32> to vector<17xf32>
    %219 = vector.shape_cast %218 : vector<17xf32> to vector<17x1xf32>
    %220 = tpu.reciprocal %219 {approx = true} : vector<17x1xf32> -> vector<17x1xf32>
    %221 = vector.broadcast %220 : vector<17x1xf32> to vector<17x17xf32>
    %222 = arith.mulf %217, %221 : vector<17x17xf32>
    %cst_179 = arith.constant 0.000000e+00 : f32
    %223 = vector.broadcast %cst_179 : f32 to vector<17x111xf32>
    %224 = tpu.concatenate %222, %223 in 1 : vector<17x17xf32>, vector<17x111xf32> -> vector<17x128xf32>
    %c0_180 = arith.constant 0 : index
    %c0_181 = arith.constant 0 : index
    %c3_182 = arith.constant 3 : index
    %c0_183 = arith.constant 0 : index
    %c0_184 = arith.constant 0 : index
    %225 = vector.load %arg23[%c0_180, %c0_181, %c3_182, %c0_183, %c0_184] : memref<1x2x4x17x128xf32, #tpu.memory_space<vmem>>, vector<1x1x1x17x128xf32>
    %226 = vector.shape_cast %225 : vector<1x1x1x17x128xf32> to vector<17x128xf32>
    %227 = vector.shape_cast %224 : vector<17x128xf32> to vector<1x1x1x17x128xf32>
    tpu.vector_store %arg23[%c0_180, %c0_181, %c3_182, %c0_183, %c0_184], %227 {strides = array<i32>} : memref<1x2x4x17x128xf32, #tpu.memory_space<vmem>>, vector<1x1x1x17x128xf32>,
    %228 = arith.truncf %222 : vector<17x17xf32> to vector<17x17xbf16>
    %229 = arith.truncf %207 : vector<17x8xf32> to vector<17x8xbf16>
    %cst_185 = arith.constant dense<0.000000e+00> : vector<17x8xf32>
    %230 = tpu.matmul %228, %229, %cst_185 {dimension_numbers = #tpu.dot_dimension_numbers<[1], [0], [0], [1], [0, 0, 1, 1], [], []>} : vector<17x17xbf16>, vector<17x8xbf16>, vector<17x8xf32> -> vector<17x8xf32>
    %231 = arith.truncf %230 : vector<17x8xf32> to vector<17x8xbf16>
    %c0_186 = arith.constant 0 : index
    %c3_187 = arith.constant 3 : index
    %c0_188 = arith.constant 0 : index
    %c0_189 = arith.constant 0 : index
    %232 = vector.load %arg14[%c0_186, %c3_187, %c0_188, %c0_189] : memref<2x4x8x32xbf16, #tpu.memory_space<vmem>>, vector<1x1x8x32xbf16>
    %233 = vector.shape_cast %232 : vector<1x1x8x32xbf16> to vector<8x32xbf16>
    %cst_190 = arith.constant dense<0.000000e+00> : vector<17x32xf32>
    %234 = tpu.matmul %231, %233, %cst_190 {dimension_numbers = #tpu.dot_dimension_numbers<[1], [0], [0], [1], [0, 0, 1, 1], [], []>} : vector<17x8xbf16>, vector<8x32xbf16>, vector<17x32xf32> -> vector<17x32xf32>
    %235 = arith.addf %186, %234 : vector<17x32xf32>
    %236 = arith.addf %11, %235 : vector<17x32xf32>
    %c0_191 = arith.constant 0 : index
    %c0_192 = arith.constant 0 : index
    %c0_193 = arith.constant 0 : index
    %237 = vector.load %arg15[%c0_191, %c0_192, %c0_193] : memref<2x1x32xf32, #tpu.memory_space<vmem>>, vector<1x1x32xf32>
    %238 = vector.shape_cast %237 : vector<1x1x32xf32> to vector<1x32xf32>
    %239 = vector.broadcast %238 : vector<1x32xf32> to vector<17x32xf32>
    %240 = arith.addf %236, %239 : vector<17x32xf32>
    %c0_194 = arith.constant 0 : index
    %c0_195 = arith.constant 0 : index
    %c0_196 = arith.constant 0 : index
    %241 = vector.load %arg16[%c0_194, %c0_195, %c0_196] : memref<2x1x32xf32, #tpu.memory_space<vmem>>, vector<1x1x32xf32>
    %242 = vector.shape_cast %241 : vector<1x1x32xf32> to vector<1x32xf32>
    %c0_197 = arith.constant 0 : index
    %c0_198 = arith.constant 0 : index
    %c0_199 = arith.constant 0 : index
    %243 = vector.load %arg17[%c0_197, %c0_198, %c0_199] : memref<2x1x32xf32, #tpu.memory_space<vmem>>, vector<1x1x32xf32>
    %244 = vector.shape_cast %243 : vector<1x1x32xf32> to vector<1x32xf32>
    %cst_200 = arith.constant dense<0.000000e+00> : vector<17xf32>
    %245 = vector.multi_reduction <add>, %240, %cst_200 [1] : vector<17x32xf32> to vector<17xf32>
    %246 = vector.shape_cast %245 : vector<17xf32> to vector<17x1xf32>
    %cst_201 = arith.constant 3.200000e+01 : f32
    %247 = vector.broadcast %cst_201 : f32 to vector<17x1xf32>
    %248 = arith.divf %246, %247 : vector<17x1xf32>
    %249 = vector.broadcast %248 : vector<17x1xf32> to vector<17x32xf32>
    %250 = arith.subf %240, %249 : vector<17x32xf32>
    %251 = arith.mulf %250, %250 : vector<17x32xf32>
    %cst_202 = arith.constant dense<0.000000e+00> : vector<17xf32>
    %252 = vector.multi_reduction <add>, %251, %cst_202 [1] : vector<17x32xf32> to vector<17xf32>
    %253 = vector.shape_cast %252 : vector<17xf32> to vector<17x1xf32>
    %cst_203 = arith.constant 3.200000e+01 : f32
    %254 = vector.broadcast %cst_203 : f32 to vector<17x1xf32>
    %255 = arith.divf %253, %254 : vector<17x1xf32>
    %256 = vector.broadcast %248 : vector<17x1xf32> to vector<17x32xf32>
    %257 = arith.subf %240, %256 : vector<17x32xf32>
    %cst_204 = arith.constant 9.99999974E-6 : f32
    %258 = vector.broadcast %cst_204 : f32 to vector<17x1xf32>
    %259 = arith.addf %255, %258 : vector<17x1xf32>
    %260 = math.rsqrt %259 : vector<17x1xf32>
    %261 = vector.broadcast %260 : vector<17x1xf32> to vector<17x32xf32>
    %262 = arith.mulf %257, %261 : vector<17x32xf32>
    %263 = vector.broadcast %242 : vector<1x32xf32> to vector<17x32xf32>
    %264 = arith.mulf %262, %263 : vector<17x32xf32>
    %265 = vector.broadcast %244 : vector<1x32xf32> to vector<17x32xf32>
    %266 = arith.addf %264, %265 : vector<17x32xf32>
    %267 = arith.truncf %266 : vector<17x32xf32> to vector<17x32xbf16>
    %c0_205 = arith.constant 0 : index
    %c0_206 = arith.constant 0 : index
    %c0_207 = arith.constant 0 : index
    %268 = vector.load %arg18[%c0_205, %c0_206, %c0_207] : memref<2x32x128xbf16, #tpu.memory_space<vmem>>, vector<1x32x128xbf16>
    %269 = vector.shape_cast %268 : vector<1x32x128xbf16> to vector<32x128xbf16>
    %cst_208 = arith.constant dense<0.000000e+00> : vector<17x128xf32>
    %270 = tpu.matmul %267, %269, %cst_208 {dimension_numbers = #tpu.dot_dimension_numbers<[1], [0], [0], [1], [0, 0, 1, 1], [], []>} : vector<17x32xbf16>, vector<32x128xbf16>, vector<17x128xf32> -> vector<17x128xf32>
    %c0_209 = arith.constant 0 : index
    %c0_210 = arith.constant 0 : index
    %c0_211 = arith.constant 0 : index
    %271 = vector.load %arg19[%c0_209, %c0_210, %c0_211] : memref<2x1x128xf32, #tpu.memory_space<vmem>>, vector<1x1x128xf32>
    %272 = vector.shape_cast %271 : vector<1x1x128xf32> to vector<1x128xf32>
    %273 = vector.broadcast %272 : vector<1x128xf32> to vector<17x128xf32>
    %274 = arith.addf %270, %273 : vector<17x128xf32>
    %275 = arith.mulf %274, %274 : vector<17x128xf32>
    %276 = arith.mulf %274, %275 : vector<17x128xf32>
    %cst_212 = arith.constant 4.471500e-02 : f32
    %277 = vector.broadcast %cst_212 : f32 to vector<17x128xf32>
    %278 = arith.mulf %277, %276 : vector<17x128xf32>
    %279 = arith.addf %274, %278 : vector<17x128xf32>
    %cst_213 = arith.constant 0.797884583 : f32
    %280 = vector.broadcast %cst_213 : f32 to vector<17x128xf32>
    %281 = arith.mulf %280, %279 : vector<17x128xf32>
    %282 = math.tanh %281 : vector<17x128xf32>
    %cst_214 = arith.constant 1.000000e+00 : f32
    %283 = vector.broadcast %cst_214 : f32 to vector<17x128xf32>
    %284 = arith.addf %283, %282 : vector<17x128xf32>
    %cst_215 = arith.constant 5.000000e-01 : f32
    %285 = vector.broadcast %cst_215 : f32 to vector<17x128xf32>
    %286 = arith.mulf %285, %284 : vector<17x128xf32>
    %287 = arith.mulf %274, %286 : vector<17x128xf32>
    %288 = arith.truncf %287 : vector<17x128xf32> to vector<17x128xbf16>
    %c0_216 = arith.constant 0 : index
    %c0_217 = arith.constant 0 : index
    %c0_218 = arith.constant 0 : index
    %289 = vector.load %arg20[%c0_216, %c0_217, %c0_218] : memref<2x128x32xbf16, #tpu.memory_space<vmem>>, vector<1x128x32xbf16>
    %290 = vector.shape_cast %289 : vector<1x128x32xbf16> to vector<128x32xbf16>
    %cst_219 = arith.constant dense<0.000000e+00> : vector<17x32xf32>
    %291 = tpu.matmul %288, %290, %cst_219 {dimension_numbers = #tpu.dot_dimension_numbers<[1], [0], [0], [1], [0, 0, 1, 1], [], []>} : vector<17x128xbf16>, vector<128x32xbf16>, vector<17x32xf32> -> vector<17x32xf32>
    %c0_220 = arith.constant 0 : index
    %c0_221 = arith.constant 0 : index
    %c0_222 = arith.constant 0 : index
    %292 = vector.load %arg21[%c0_220, %c0_221, %c0_222] : memref<2x1x32xf32, #tpu.memory_space<vmem>>, vector<1x1x32xf32>
    %293 = vector.shape_cast %292 : vector<1x1x32xf32> to vector<1x32xf32>
    %294 = vector.broadcast %293 : vector<1x32xf32> to vector<17x32xf32>
    %295 = arith.addf %291, %294 : vector<17x32xf32>
    %296 = arith.addf %240, %295 : vector<17x32xf32>
    %c1_223 = arith.constant 1 : index
    %c0_224 = arith.constant 0 : index
    %c0_225 = arith.constant 0 : index
    %297 = vector.load %arg6[%c1_223, %c0_224, %c0_225] : memref<2x1x32xf32, #tpu.memory_space<vmem>>, vector<1x1x32xf32>
    %298 = vector.shape_cast %297 : vector<1x1x32xf32> to vector<1x32xf32>
    %c1_226 = arith.constant 1 : index
    %c0_227 = arith.constant 0 : index
    %c0_228 = arith.constant 0 : index
    %299 = vector.load %arg7[%c1_226, %c0_227, %c0_228] : memref<2x1x32xf32, #tpu.memory_space<vmem>>, vector<1x1x32xf32>
    %300 = vector.shape_cast %299 : vector<1x1x32xf32> to vector<1x32xf32>
    %cst_229 = arith.constant dense<0.000000e+00> : vector<17xf32>
    %301 = vector.multi_reduction <add>, %296, %cst_229 [1] : vector<17x32xf32> to vector<17xf32>
    %302 = vector.shape_cast %301 : vector<17xf32> to vector<17x1xf32>
    %cst_230 = arith.constant 3.200000e+01 : f32
    %303 = vector.broadcast %cst_230 : f32 to vector<17x1xf32>
    %304 = arith.divf %302, %303 : vector<17x1xf32>
    %305 = vector.broadcast %304 : vector<17x1xf32> to vector<17x32xf32>
    %306 = arith.subf %296, %305 : vector<17x32xf32>
    %307 = arith.mulf %306, %306 : vector<17x32xf32>
    %cst_231 = arith.constant dense<0.000000e+00> : vector<17xf32>
    %308 = vector.multi_reduction <add>, %307, %cst_231 [1] : vector<17x32xf32> to vector<17xf32>
    %309 = vector.shape_cast %308 : vector<17xf32> to vector<17x1xf32>
    %cst_232 = arith.constant 3.200000e+01 : f32
    %310 = vector.broadcast %cst_232 : f32 to vector<17x1xf32>
    %311 = arith.divf %309, %310 : vector<17x1xf32>
    %312 = vector.broadcast %304 : vector<17x1xf32> to vector<17x32xf32>
    %313 = arith.subf %296, %312 : vector<17x32xf32>
    %cst_233 = arith.constant 9.99999974E-6 : f32
    %314 = vector.broadcast %cst_233 : f32 to vector<17x1xf32>
    %315 = arith.addf %311, %314 : vector<17x1xf32>
    %316 = math.rsqrt %315 : vector<17x1xf32>
    %317 = vector.broadcast %316 : vector<17x1xf32> to vector<17x32xf32>
    %318 = arith.mulf %313, %317 : vector<17x32xf32>
    %319 = vector.broadcast %298 : vector<1x32xf32> to vector<17x32xf32>
    %320 = arith.mulf %318, %319 : vector<17x32xf32>
    %321 = vector.broadcast %300 : vector<1x32xf32> to vector<17x32xf32>
    %322 = arith.addf %320, %321 : vector<17x32xf32>
    %323 = arith.truncf %322 : vector<17x32xf32> to vector<17x32xbf16>
    %cst_234 = arith.constant 0.000000e+00 : f32
    %324 = vector.broadcast %cst_234 : f32 to vector<17x32xf32>
    %c1_235 = arith.constant 1 : index
    %c0_236 = arith.constant 0 : index
    %c0_237 = arith.constant 0 : index
    %c0_238 = arith.constant 0 : index
    %325 = vector.load %arg8[%c1_235, %c0_236, %c0_237, %c0_238] : memref<2x4x32x8xbf16, #tpu.memory_space<vmem>>, vector<1x1x32x8xbf16>
    %326 = vector.shape_cast %325 : vector<1x1x32x8xbf16> to vector<32x8xbf16>
    %cst_239 = arith.constant dense<0.000000e+00> : vector<17x8xf32>
    %327 = tpu.matmul %323, %326, %cst_239 {dimension_numbers = #tpu.dot_dimension_numbers<[1], [0], [0], [1], [0, 0, 1, 1], [], []>} : vector<17x32xbf16>, vector<32x8xbf16>, vector<17x8xf32> -> vector<17x8xf32>
    %c1_240 = arith.constant 1 : index
    %c0_241 = arith.constant 0 : index
    %c0_242 = arith.constant 0 : index
    %c0_243 = arith.constant 0 : index
    %328 = vector.load %arg11[%c1_240, %c0_241, %c0_242, %c0_243] : memref<2x4x1x8xf32, #tpu.memory_space<vmem>>, vector<1x1x1x8xf32>
    %329 = vector.shape_cast %328 : vector<1x1x1x8xf32> to vector<1x8xf32>
    %330 = vector.broadcast %329 : vector<1x8xf32> to vector<17x8xf32>
    %331 = arith.addf %327, %330 : vector<17x8xf32>
    %c1_244 = arith.constant 1 : index
    %c0_245 = arith.constant 0 : index
    %c0_246 = arith.constant 0 : index
    %c0_247 = arith.constant 0 : index
    %332 = vector.load %arg9[%c1_244, %c0_245, %c0_246, %c0_247] : memref<2x4x32x8xbf16, #tpu.memory_space<vmem>>, vector<1x1x32x8xbf16>
    %333 = vector.shape_cast %332 : vector<1x1x32x8xbf16> to vector<32x8xbf16>
    %cst_248 = arith.constant dense<0.000000e+00> : vector<17x8xf32>
    %334 = tpu.matmul %323, %333, %cst_248 {dimension_numbers = #tpu.dot_dimension_numbers<[1], [0], [0], [1], [0, 0, 1, 1], [], []>} : vector<17x32xbf16>, vector<32x8xbf16>, vector<17x8xf32> -> vector<17x8xf32>
    %c1_249 = arith.constant 1 : index
    %c0_250 = arith.constant 0 : index
    %c0_251 = arith.constant 0 : index
    %c0_252 = arith.constant 0 : index
    %335 = vector.load %arg12[%c1_249, %c0_250, %c0_251, %c0_252] : memref<2x4x1x8xf32, #tpu.memory_space<vmem>>, vector<1x1x1x8xf32>
    %336 = vector.shape_cast %335 : vector<1x1x1x8xf32> to vector<1x8xf32>
    %337 = vector.broadcast %336 : vector<1x8xf32> to vector<17x8xf32>
    %338 = arith.addf %334, %337 : vector<17x8xf32>
    %c1_253 = arith.constant 1 : index
    %c0_254 = arith.constant 0 : index
    %c0_255 = arith.constant 0 : index
    %c0_256 = arith.constant 0 : index
    %339 = vector.load %arg10[%c1_253, %c0_254, %c0_255, %c0_256] : memref<2x4x32x8xbf16, #tpu.memory_space<vmem>>, vector<1x1x32x8xbf16>
    %340 = vector.shape_cast %339 : vector<1x1x32x8xbf16> to vector<32x8xbf16>
    %cst_257 = arith.constant dense<0.000000e+00> : vector<17x8xf32>
    %341 = tpu.matmul %323, %340, %cst_257 {dimension_numbers = #tpu.dot_dimension_numbers<[1], [0], [0], [1], [0, 0, 1, 1], [], []>} : vector<17x32xbf16>, vector<32x8xbf16>, vector<17x8xf32> -> vector<17x8xf32>
    %c1_258 = arith.constant 1 : index
    %c0_259 = arith.constant 0 : index
    %c0_260 = arith.constant 0 : index
    %c0_261 = arith.constant 0 : index
    %342 = vector.load %arg13[%c1_258, %c0_259, %c0_260, %c0_261] : memref<2x4x1x8xf32, #tpu.memory_space<vmem>>, vector<1x1x1x8xf32>
    %343 = vector.shape_cast %342 : vector<1x1x1x8xf32> to vector<1x8xf32>
    %344 = vector.broadcast %343 : vector<1x8xf32> to vector<17x8xf32>
    %345 = arith.addf %341, %344 : vector<17x8xf32>
    %346 = arith.truncf %331 : vector<17x8xf32> to vector<17x8xbf16>
    %347 = arith.truncf %338 : vector<17x8xf32> to vector<17x8xbf16>
    %cst_262 = arith.constant dense<0.000000e+00> : vector<17x17xf32>
    %348 = tpu.matmul %346, %347, %cst_262 {dimension_numbers = #tpu.dot_dimension_numbers<[1], [1], [0], [0], [0, 0, 1, 0], [], []>} : vector<17x8xbf16>, vector<17x8xbf16>, vector<17x17xf32> -> vector<17x17xf32>
    %cst_263 = arith.constant 0.353553385 : f32
    %349 = vector.broadcast %cst_263 : f32 to vector<17x17xf32>
    %350 = arith.mulf %348, %349 : vector<17x17xf32>
    %cst_264 = arith.constant dense<0xFF800000> : vector<17xf32>
    %351 = vector.multi_reduction <maximumf>, %350, %cst_264 [1] : vector<17x17xf32> to vector<17xf32>
    %352 = vector.shape_cast %351 : vector<17xf32> to vector<17x1xf32>
    %353 = vector.broadcast %352 : vector<17x1xf32> to vector<17x17xf32>
    %354 = arith.subf %350, %353 : vector<17x17xf32>
    %355 = math.exp %354 : vector<17x17xf32>
    %cst_265 = arith.constant dense<0.000000e+00> : vector<17xf32>
    %356 = vector.multi_reduction <add>, %355, %cst_265 [1] : vector<17x17xf32> to vector<17xf32>
    %357 = vector.shape_cast %356 : vector<17xf32> to vector<17x1xf32>
    %358 = tpu.reciprocal %357 {approx = true} : vector<17x1xf32> -> vector<17x1xf32>
    %359 = vector.broadcast %358 : vector<17x1xf32> to vector<17x17xf32>
    %360 = arith.mulf %355, %359 : vector<17x17xf32>
    %cst_266 = arith.constant 0.000000e+00 : f32
    %361 = vector.broadcast %cst_266 : f32 to vector<17x111xf32>
    %362 = tpu.concatenate %360, %361 in 1 : vector<17x17xf32>, vector<17x111xf32> -> vector<17x128xf32>
    %c0_267 = arith.constant 0 : index
    %c1_268 = arith.constant 1 : index
    %c0_269 = arith.constant 0 : index
    %c0_270 = arith.constant 0 : index
    %c0_271 = arith.constant 0 : index
    %363 = vector.load %arg23[%c0_267, %c1_268, %c0_269, %c0_270, %c0_271] : memref<1x2x4x17x128xf32, #tpu.memory_space<vmem>>, vector<1x1x1x17x128xf32>
    %364 = vector.shape_cast %363 : vector<1x1x1x17x128xf32> to vector<17x128xf32>
    %365 = vector.shape_cast %362 : vector<17x128xf32> to vector<1x1x1x17x128xf32>
    tpu.vector_store %arg23[%c0_267, %c1_268, %c0_269, %c0_270, %c0_271], %365 {strides = array<i32>} : memref<1x2x4x17x128xf32, #tpu.memory_space<vmem>>, vector<1x1x1x17x128xf32>,
    %366 = arith.truncf %360 : vector<17x17xf32> to vector<17x17xbf16>
    %367 = arith.truncf %345 : vector<17x8xf32> to vector<17x8xbf16>
    %cst_272 = arith.constant dense<0.000000e+00> : vector<17x8xf32>
    %368 = tpu.matmul %366, %367, %cst_272 {dimension_numbers = #tpu.dot_dimension_numbers<[1], [0], [0], [1], [0, 0, 1, 1], [], []>} : vector<17x17xbf16>, vector<17x8xbf16>, vector<17x8xf32> -> vector<17x8xf32>
    %369 = arith.truncf %368 : vector<17x8xf32> to vector<17x8xbf16>
    %c1_273 = arith.constant 1 : index
    %c0_274 = arith.constant 0 : index
    %c0_275 = arith.constant 0 : index
    %c0_276 = arith.constant 0 : index
    %370 = vector.load %arg14[%c1_273, %c0_274, %c0_275, %c0_276] : memref<2x4x8x32xbf16, #tpu.memory_space<vmem>>, vector<1x1x8x32xbf16>
    %371 = vector.shape_cast %370 : vector<1x1x8x32xbf16> to vector<8x32xbf16>
    %cst_277 = arith.constant dense<0.000000e+00> : vector<17x32xf32>
    %372 = tpu.matmul %369, %371, %cst_277 {dimension_numbers = #tpu.dot_dimension_numbers<[1], [0], [0], [1], [0, 0, 1, 1], [], []>} : vector<17x8xbf16>, vector<8x32xbf16>, vector<17x32xf32> -> vector<17x32xf32>
    %373 = arith.addf %324, %372 : vector<17x32xf32>
    %c1_278 = arith.constant 1 : index
    %c1_279 = arith.constant 1 : index
    %c0_280 = arith.constant 0 : index
    %c0_281 = arith.constant 0 : index
    %374 = vector.load %arg8[%c1_278, %c1_279, %c0_280, %c0_281] : memref<2x4x32x8xbf16, #tpu.memory_space<vmem>>, vector<1x1x32x8xbf16>
    %375 = vector.shape_cast %374 : vector<1x1x32x8xbf16> to vector<32x8xbf16>
    %cst_282 = arith.constant dense<0.000000e+00> : vector<17x8xf32>
    %376 = tpu.matmul %323, %375, %cst_282 {dimension_numbers = #tpu.dot_dimension_numbers<[1], [0], [0], [1], [0, 0, 1, 1], [], []>} : vector<17x32xbf16>, vector<32x8xbf16>, vector<17x8xf32> -> vector<17x8xf32>
    %c1_283 = arith.constant 1 : index
    %c1_284 = arith.constant 1 : index
    %c0_285 = arith.constant 0 : index
    %c0_286 = arith.constant 0 : index
    %377 = vector.load %arg11[%c1_283, %c1_284, %c0_285, %c0_286] : memref<2x4x1x8xf32, #tpu.memory_space<vmem>>, vector<1x1x1x8xf32>
    %378 = vector.shape_cast %377 : vector<1x1x1x8xf32> to vector<1x8xf32>
    %379 = vector.broadcast %378 : vector<1x8xf32> to vector<17x8xf32>
    %380 = arith.addf %376, %379 : vector<17x8xf32>
    %c1_287 = arith.constant 1 : index
    %c1_288 = arith.constant 1 : index
    %c0_289 = arith.constant 0 : index
    %c0_290 = arith.constant 0 : index
    %381 = vector.load %arg9[%c1_287, %c1_288, %c0_289, %c0_290] : memref<2x4x32x8xbf16, #tpu.memory_space<vmem>>, vector<1x1x32x8xbf16>
    %382 = vector.shape_cast %381 : vector<1x1x32x8xbf16> to vector<32x8xbf16>
    %cst_291 = arith.constant dense<0.000000e+00> : vector<17x8xf32>
    %383 = tpu.matmul %323, %382, %cst_291 {dimension_numbers = #tpu.dot_dimension_numbers<[1], [0], [0], [1], [0, 0, 1, 1], [], []>} : vector<17x32xbf16>, vector<32x8xbf16>, vector<17x8xf32> -> vector<17x8xf32>
    %c1_292 = arith.constant 1 : index
    %c1_293 = arith.constant 1 : index
    %c0_294 = arith.constant 0 : index
    %c0_295 = arith.constant 0 : index
    %384 = vector.load %arg12[%c1_292, %c1_293, %c0_294, %c0_295] : memref<2x4x1x8xf32, #tpu.memory_space<vmem>>, vector<1x1x1x8xf32>
    %385 = vector.shape_cast %384 : vector<1x1x1x8xf32> to vector<1x8xf32>
    %386 = vector.broadcast %385 : vector<1x8xf32> to vector<17x8xf32>
    %387 = arith.addf %383, %386 : vector<17x8xf32>
    %c1_296 = arith.constant 1 : index
    %c1_297 = arith.constant 1 : index
    %c0_298 = arith.constant 0 : index
    %c0_299 = arith.constant 0 : index
    %388 = vector.load %arg10[%c1_296, %c1_297, %c0_298, %c0_299] : memref<2x4x32x8xbf16, #tpu.memory_space<vmem>>, vector<1x1x32x8xbf16>
    %389 = vector.shape_cast %388 : vector<1x1x32x8xbf16> to vector<32x8xbf16>
    %cst_300 = arith.constant dense<0.000000e+00> : vector<17x8xf32>
    %390 = tpu.matmul %323, %389, %cst_300 {dimension_numbers = #tpu.dot_dimension_numbers<[1], [0], [0], [1], [0, 0, 1, 1], [], []>} : vector<17x32xbf16>, vector<32x8xbf16>, vector<17x8xf32> -> vector<17x8xf32>
    %c1_301 = arith.constant 1 : index
    %c1_302 = arith.constant 1 : index
    %c0_303 = arith.constant 0 : index
    %c0_304 = arith.constant 0 : index
    %391 = vector.load %arg13[%c1_301, %c1_302, %c0_303, %c0_304] : memref<2x4x1x8xf32, #tpu.memory_space<vmem>>, vector<1x1x1x8xf32>
    %392 = vector.shape_cast %391 : vector<1x1x1x8xf32> to vector<1x8xf32>
    %393 = vector.broadcast %392 : vector<1x8xf32> to vector<17x8xf32>
    %394 = arith.addf %390, %393 : vector<17x8xf32>
    %395 = arith.truncf %380 : vector<17x8xf32> to vector<17x8xbf16>
    %396 = arith.truncf %387 : vector<17x8xf32> to vector<17x8xbf16>
    %cst_305 = arith.constant dense<0.000000e+00> : vector<17x17xf32>
    %397 = tpu.matmul %395, %396, %cst_305 {dimension_numbers = #tpu.dot_dimension_numbers<[1], [1], [0], [0], [0, 0, 1, 0], [], []>} : vector<17x8xbf16>, vector<17x8xbf16>, vector<17x17xf32> -> vector<17x17xf32>
    %cst_306 = arith.constant 0.353553385 : f32
    %398 = vector.broadcast %cst_306 : f32 to vector<17x17xf32>
    %399 = arith.mulf %397, %398 : vector<17x17xf32>
    %cst_307 = arith.constant dense<0xFF800000> : vector<17xf32>
    %400 = vector.multi_reduction <maximumf>, %399, %cst_307 [1] : vector<17x17xf32> to vector<17xf32>
    %401 = vector.shape_cast %400 : vector<17xf32> to vector<17x1xf32>
    %402 = vector.broadcast %401 : vector<17x1xf32> to vector<17x17xf32>
    %403 = arith.subf %399, %402 : vector<17x17xf32>
    %404 = math.exp %403 : vector<17x17xf32>
    %cst_308 = arith.constant dense<0.000000e+00> : vector<17xf32>
    %405 = vector.multi_reduction <add>, %404, %cst_308 [1] : vector<17x17xf32> to vector<17xf32>
    %406 = vector.shape_cast %405 : vector<17xf32> to vector<17x1xf32>
    %407 = tpu.reciprocal %406 {approx = true} : vector<17x1xf32> -> vector<17x1xf32>
    %408 = vector.broadcast %407 : vector<17x1xf32> to vector<17x17xf32>
    %409 = arith.mulf %404, %408 : vector<17x17xf32>
    %cst_309 = arith.constant 0.000000e+00 : f32
    %410 = vector.broadcast %cst_309 : f32 to vector<17x111xf32>
    %411 = tpu.concatenate %409, %410 in 1 : vector<17x17xf32>, vector<17x111xf32> -> vector<17x128xf32>
    %c0_310 = arith.constant 0 : index
    %c1_311 = arith.constant 1 : index
    %c1_312 = arith.constant 1 : index
    %c0_313 = arith.constant 0 : index
    %c0_314 = arith.constant 0 : index
    %412 = vector.load %arg23[%c0_310, %c1_311, %c1_312, %c0_313, %c0_314] : memref<1x2x4x17x128xf32, #tpu.memory_space<vmem>>, vector<1x1x1x17x128xf32>
    %413 = vector.shape_cast %412 : vector<1x1x1x17x128xf32> to vector<17x128xf32>
    %414 = vector.shape_cast %411 : vector<17x128xf32> to vector<1x1x1x17x128xf32>
    tpu.vector_store %arg23[%c0_310, %c1_311, %c1_312, %c0_313, %c0_314], %414 {strides = array<i32>} : memref<1x2x4x17x128xf32, #tpu.memory_space<vmem>>, vector<1x1x1x17x128xf32>,
    %415 = arith.truncf %409 : vector<17x17xf32> to vector<17x17xbf16>
    %416 = arith.truncf %394 : vector<17x8xf32> to vector<17x8xbf16>
    %cst_315 = arith.constant dense<0.000000e+00> : vector<17x8xf32>
    %417 = tpu.matmul %415, %416, %cst_315 {dimension_numbers = #tpu.dot_dimension_numbers<[1], [0], [0], [1], [0, 0, 1, 1], [], []>} : vector<17x17xbf16>, vector<17x8xbf16>, vector<17x8xf32> -> vector<17x8xf32>
    %418 = arith.truncf %417 : vector<17x8xf32> to vector<17x8xbf16>
    %c1_316 = arith.constant 1 : index
    %c1_317 = arith.constant 1 : index
    %c0_318 = arith.constant 0 : index
    %c0_319 = arith.constant 0 : index
    %419 = vector.load %arg14[%c1_316, %c1_317, %c0_318, %c0_319] : memref<2x4x8x32xbf16, #tpu.memory_space<vmem>>, vector<1x1x8x32xbf16>
    %420 = vector.shape_cast %419 : vector<1x1x8x32xbf16> to vector<8x32xbf16>
    %cst_320 = arith.constant dense<0.000000e+00> : vector<17x32xf32>
    %421 = tpu.matmul %418, %420, %cst_320 {dimension_numbers = #tpu.dot_dimension_numbers<[1], [0], [0], [1], [0, 0, 1, 1], [], []>} : vector<17x8xbf16>, vector<8x32xbf16>, vector<17x32xf32> -> vector<17x32xf32>
    %422 = arith.addf %373, %421 : vector<17x32xf32>
    %c1_321 = arith.constant 1 : index
    %c2_322 = arith.constant 2 : index
    %c0_323 = arith.constant 0 : index
    %c0_324 = arith.constant 0 : index
    %423 = vector.load %arg8[%c1_321, %c2_322, %c0_323, %c0_324] : memref<2x4x32x8xbf16, #tpu.memory_space<vmem>>, vector<1x1x32x8xbf16>
    %424 = vector.shape_cast %423 : vector<1x1x32x8xbf16> to vector<32x8xbf16>
    %cst_325 = arith.constant dense<0.000000e+00> : vector<17x8xf32>
    %425 = tpu.matmul %323, %424, %cst_325 {dimension_numbers = #tpu.dot_dimension_numbers<[1], [0], [0], [1], [0, 0, 1, 1], [], []>} : vector<17x32xbf16>, vector<32x8xbf16>, vector<17x8xf32> -> vector<17x8xf32>
    %c1_326 = arith.constant 1 : index
    %c2_327 = arith.constant 2 : index
    %c0_328 = arith.constant 0 : index
    %c0_329 = arith.constant 0 : index
    %426 = vector.load %arg11[%c1_326, %c2_327, %c0_328, %c0_329] : memref<2x4x1x8xf32, #tpu.memory_space<vmem>>, vector<1x1x1x8xf32>
    %427 = vector.shape_cast %426 : vector<1x1x1x8xf32> to vector<1x8xf32>
    %428 = vector.broadcast %427 : vector<1x8xf32> to vector<17x8xf32>
    %429 = arith.addf %425, %428 : vector<17x8xf32>
    %c1_330 = arith.constant 1 : index
    %c2_331 = arith.constant 2 : index
    %c0_332 = arith.constant 0 : index
    %c0_333 = arith.constant 0 : index
    %430 = vector.load %arg9[%c1_330, %c2_331, %c0_332, %c0_333] : memref<2x4x32x8xbf16, #tpu.memory_space<vmem>>, vector<1x1x32x8xbf16>
    %431 = vector.shape_cast %430 : vector<1x1x32x8xbf16> to vector<32x8xbf16>
    %cst_334 = arith.constant dense<0.000000e+00> : vector<17x8xf32>
    %432 = tpu.matmul %323, %431, %cst_334 {dimension_numbers = #tpu.dot_dimension_numbers<[1], [0], [0], [1], [0, 0, 1, 1], [], []>} : vector<17x32xbf16>, vector<32x8xbf16>, vector<17x8xf32> -> vector<17x8xf32>
    %c1_335 = arith.constant 1 : index
    %c2_336 = arith.constant 2 : index
    %c0_337 = arith.constant 0 : index
    %c0_338 = arith.constant 0 : index
    %433 = vector.load %arg12[%c1_335, %c2_336, %c0_337, %c0_338] : memref<2x4x1x8xf32, #tpu.memory_space<vmem>>, vector<1x1x1x8xf32>
    %434 = vector.shape_cast %433 : vector<1x1x1x8xf32> to vector<1x8xf32>
    %435 = vector.broadcast %434 : vector<1x8xf32> to vector<17x8xf32>
    %436 = arith.addf %432, %435 : vector<17x8xf32>
    %c1_339 = arith.constant 1 : index
    %c2_340 = arith.constant 2 : index
    %c0_341 = arith.constant 0 : index
    %c0_342 = arith.constant 0 : index
    %437 = vector.load %arg10[%c1_339, %c2_340, %c0_341, %c0_342] : memref<2x4x32x8xbf16, #tpu.memory_space<vmem>>, vector<1x1x32x8xbf16>
    %438 = vector.shape_cast %437 : vector<1x1x32x8xbf16> to vector<32x8xbf16>
    %cst_343 = arith.constant dense<0.000000e+00> : vector<17x8xf32>
    %439 = tpu.matmul %323, %438, %cst_343 {dimension_numbers = #tpu.dot_dimension_numbers<[1], [0], [0], [1], [0, 0, 1, 1], [], []>} : vector<17x32xbf16>, vector<32x8xbf16>, vector<17x8xf32> -> vector<17x8xf32>
    %c1_344 = arith.constant 1 : index
    %c2_345 = arith.constant 2 : index
    %c0_346 = arith.constant 0 : index
    %c0_347 = arith.constant 0 : index
    %440 = vector.load %arg13[%c1_344, %c2_345, %c0_346, %c0_347] : memref<2x4x1x8xf32, #tpu.memory_space<vmem>>, vector<1x1x1x8xf32>
    %441 = vector.shape_cast %440 : vector<1x1x1x8xf32> to vector<1x8xf32>
    %442 = vector.broadcast %441 : vector<1x8xf32> to vector<17x8xf32>
    %443 = arith.addf %439, %442 : vector<17x8xf32>
    %444 = arith.truncf %429 : vector<17x8xf32> to vector<17x8xbf16>
    %445 = arith.truncf %436 : vector<17x8xf32> to vector<17x8xbf16>
    %cst_348 = arith.constant dense<0.000000e+00> : vector<17x17xf32>
    %446 = tpu.matmul %444, %445, %cst_348 {dimension_numbers = #tpu.dot_dimension_numbers<[1], [1], [0], [0], [0, 0, 1, 0], [], []>} : vector<17x8xbf16>, vector<17x8xbf16>, vector<17x17xf32> -> vector<17x17xf32>
    %cst_349 = arith.constant 0.353553385 : f32
    %447 = vector.broadcast %cst_349 : f32 to vector<17x17xf32>
    %448 = arith.mulf %446, %447 : vector<17x17xf32>
    %cst_350 = arith.constant dense<0xFF800000> : vector<17xf32>
    %449 = vector.multi_reduction <maximumf>, %448, %cst_350 [1] : vector<17x17xf32> to vector<17xf32>
    %450 = vector.shape_cast %449 : vector<17xf32> to vector<17x1xf32>
    %451 = vector.broadcast %450 : vector<17x1xf32> to vector<17x17xf32>
    %452 = arith.subf %448, %451 : vector<17x17xf32>
    %453 = math.exp %452 : vector<17x17xf32>
    %cst_351 = arith.constant dense<0.000000e+00> : vector<17xf32>
    %454 = vector.multi_reduction <add>, %453, %cst_351 [1] : vector<17x17xf32> to vector<17xf32>
    %455 = vector.shape_cast %454 : vector<17xf32> to vector<17x1xf32>
    %456 = tpu.reciprocal %455 {approx = true} : vector<17x1xf32> -> vector<17x1xf32>
    %457 = vector.broadcast %456 : vector<17x1xf32> to vector<17x17xf32>
    %458 = arith.mulf %453, %457 : vector<17x17xf32>
    %cst_352 = arith.constant 0.000000e+00 : f32
    %459 = vector.broadcast %cst_352 : f32 to vector<17x111xf32>
    %460 = tpu.concatenate %458, %459 in 1 : vector<17x17xf32>, vector<17x111xf32> -> vector<17x128xf32>
    %c0_353 = arith.constant 0 : index
    %c1_354 = arith.constant 1 : index
    %c2_355 = arith.constant 2 : index
    %c0_356 = arith.constant 0 : index
    %c0_357 = arith.constant 0 : index
    %461 = vector.load %arg23[%c0_353, %c1_354, %c2_355, %c0_356, %c0_357] : memref<1x2x4x17x128xf32, #tpu.memory_space<vmem>>, vector<1x1x1x17x128xf32>
    %462 = vector.shape_cast %461 : vector<1x1x1x17x128xf32> to vector<17x128xf32>
    %463 = vector.shape_cast %460 : vector<17x128xf32> to vector<1x1x1x17x128xf32>
    tpu.vector_store %arg23[%c0_353, %c1_354, %c2_355, %c0_356, %c0_357], %463 {strides = array<i32>} : memref<1x2x4x17x128xf32, #tpu.memory_space<vmem>>, vector<1x1x1x17x128xf32>,
    %464 = arith.truncf %458 : vector<17x17xf32> to vector<17x17xbf16>
    %465 = arith.truncf %443 : vector<17x8xf32> to vector<17x8xbf16>
    %cst_358 = arith.constant dense<0.000000e+00> : vector<17x8xf32>
    %466 = tpu.matmul %464, %465, %cst_358 {dimension_numbers = #tpu.dot_dimension_numbers<[1], [0], [0], [1], [0, 0, 1, 1], [], []>} : vector<17x17xbf16>, vector<17x8xbf16>, vector<17x8xf32> -> vector<17x8xf32>
    %467 = arith.truncf %466 : vector<17x8xf32> to vector<17x8xbf16>
    %c1_359 = arith.constant 1 : index
    %c2_360 = arith.constant 2 : index
    %c0_361 = arith.constant 0 : index
    %c0_362 = arith.constant 0 : index
    %468 = vector.load %arg14[%c1_359, %c2_360, %c0_361, %c0_362] : memref<2x4x8x32xbf16, #tpu.memory_space<vmem>>, vector<1x1x8x32xbf16>
    %469 = vector.shape_cast %468 : vector<1x1x8x32xbf16> to vector<8x32xbf16>
    %cst_363 = arith.constant dense<0.000000e+00> : vector<17x32xf32>
    %470 = tpu.matmul %467, %469, %cst_363 {dimension_numbers = #tpu.dot_dimension_numbers<[1], [0], [0], [1], [0, 0, 1, 1], [], []>} : vector<17x8xbf16>, vector<8x32xbf16>, vector<17x32xf32> -> vector<17x32xf32>
    %471 = arith.addf %422, %470 : vector<17x32xf32>
    %c1_364 = arith.constant 1 : index
    %c3_365 = arith.constant 3 : index
    %c0_366 = arith.constant 0 : index
    %c0_367 = arith.constant 0 : index
    %472 = vector.load %arg8[%c1_364, %c3_365, %c0_366, %c0_367] : memref<2x4x32x8xbf16, #tpu.memory_space<vmem>>, vector<1x1x32x8xbf16>
    %473 = vector.shape_cast %472 : vector<1x1x32x8xbf16> to vector<32x8xbf16>
    %cst_368 = arith.constant dense<0.000000e+00> : vector<17x8xf32>
    %474 = tpu.matmul %323, %473, %cst_368 {dimension_numbers = #tpu.dot_dimension_numbers<[1], [0], [0], [1], [0, 0, 1, 1], [], []>} : vector<17x32xbf16>, vector<32x8xbf16>, vector<17x8xf32> -> vector<17x8xf32>
    %c1_369 = arith.constant 1 : index
    %c3_370 = arith.constant 3 : index
    %c0_371 = arith.constant 0 : index
    %c0_372 = arith.constant 0 : index
    %475 = vector.load %arg11[%c1_369, %c3_370, %c0_371, %c0_372] : memref<2x4x1x8xf32, #tpu.memory_space<vmem>>, vector<1x1x1x8xf32>
    %476 = vector.shape_cast %475 : vector<1x1x1x8xf32> to vector<1x8xf32>
    %477 = vector.broadcast %476 : vector<1x8xf32> to vector<17x8xf32>
    %478 = arith.addf %474, %477 : vector<17x8xf32>
    %c1_373 = arith.constant 1 : index
    %c3_374 = arith.constant 3 : index
    %c0_375 = arith.constant 0 : index
    %c0_376 = arith.constant 0 : index
    %479 = vector.load %arg9[%c1_373, %c3_374, %c0_375, %c0_376] : memref<2x4x32x8xbf16, #tpu.memory_space<vmem>>, vector<1x1x32x8xbf16>
    %480 = vector.shape_cast %479 : vector<1x1x32x8xbf16> to vector<32x8xbf16>
    %cst_377 = arith.constant dense<0.000000e+00> : vector<17x8xf32>
    %481 = tpu.matmul %323, %480, %cst_377 {dimension_numbers = #tpu.dot_dimension_numbers<[1], [0], [0], [1], [0, 0, 1, 1], [], []>} : vector<17x32xbf16>, vector<32x8xbf16>, vector<17x8xf32> -> vector<17x8xf32>
    %c1_378 = arith.constant 1 : index
    %c3_379 = arith.constant 3 : index
    %c0_380 = arith.constant 0 : index
    %c0_381 = arith.constant 0 : index
    %482 = vector.load %arg12[%c1_378, %c3_379, %c0_380, %c0_381] : memref<2x4x1x8xf32, #tpu.memory_space<vmem>>, vector<1x1x1x8xf32>
    %483 = vector.shape_cast %482 : vector<1x1x1x8xf32> to vector<1x8xf32>
    %484 = vector.broadcast %483 : vector<1x8xf32> to vector<17x8xf32>
    %485 = arith.addf %481, %484 : vector<17x8xf32>
    %c1_382 = arith.constant 1 : index
    %c3_383 = arith.constant 3 : index
    %c0_384 = arith.constant 0 : index
    %c0_385 = arith.constant 0 : index
    %486 = vector.load %arg10[%c1_382, %c3_383, %c0_384, %c0_385] : memref<2x4x32x8xbf16, #tpu.memory_space<vmem>>, vector<1x1x32x8xbf16>
    %487 = vector.shape_cast %486 : vector<1x1x32x8xbf16> to vector<32x8xbf16>
    %cst_386 = arith.constant dense<0.000000e+00> : vector<17x8xf32>
    %488 = tpu.matmul %323, %487, %cst_386 {dimension_numbers = #tpu.dot_dimension_numbers<[1], [0], [0], [1], [0, 0, 1, 1], [], []>} : vector<17x32xbf16>, vector<32x8xbf16>, vector<17x8xf32> -> vector<17x8xf32>
    %c1_387 = arith.constant 1 : index
    %c3_388 = arith.constant 3 : index
    %c0_389 = arith.constant 0 : index
    %c0_390 = arith.constant 0 : index
    %489 = vector.load %arg13[%c1_387, %c3_388, %c0_389, %c0_390] : memref<2x4x1x8xf32, #tpu.memory_space<vmem>>, vector<1x1x1x8xf32>
    %490 = vector.shape_cast %489 : vector<1x1x1x8xf32> to vector<1x8xf32>
    %491 = vector.broadcast %490 : vector<1x8xf32> to vector<17x8xf32>
    %492 = arith.addf %488, %491 : vector<17x8xf32>
    %493 = arith.truncf %478 : vector<17x8xf32> to vector<17x8xbf16>
    %494 = arith.truncf %485 : vector<17x8xf32> to vector<17x8xbf16>
    %cst_391 = arith.constant dense<0.000000e+00> : vector<17x17xf32>
    %495 = tpu.matmul %493, %494, %cst_391 {dimension_numbers = #tpu.dot_dimension_numbers<[1], [1], [0], [0], [0, 0, 1, 0], [], []>} : vector<17x8xbf16>, vector<17x8xbf16>, vector<17x17xf32> -> vector<17x17xf32>
    %cst_392 = arith.constant 0.353553385 : f32
    %496 = vector.broadcast %cst_392 : f32 to vector<17x17xf32>
    %497 = arith.mulf %495, %496 : vector<17x17xf32>
    %cst_393 = arith.constant dense<0xFF800000> : vector<17xf32>
    %498 = vector.multi_reduction <maximumf>, %497, %cst_393 [1] : vector<17x17xf32> to vector<17xf32>
    %499 = vector.shape_cast %498 : vector<17xf32> to vector<17x1xf32>
    %500 = vector.broadcast %499 : vector<17x1xf32> to vector<17x17xf32>
    %501 = arith.subf %497, %500 : vector<17x17xf32>
    %502 = math.exp %501 : vector<17x17xf32>
    %cst_394 = arith.constant dense<0.000000e+00> : vector<17xf32>
    %503 = vector.multi_reduction <add>, %502, %cst_394 [1] : vector<17x17xf32> to vector<17xf32>
    %504 = vector.shape_cast %503 : vector<17xf32> to vector<17x1xf32>
    %505 = tpu.reciprocal %504 {approx = true} : vector<17x1xf32> -> vector<17x1xf32>
    %506 = vector.broadcast %505 : vector<17x1xf32> to vector<17x17xf32>
    %507 = arith.mulf %502, %506 : vector<17x17xf32>
    %cst_395 = arith.constant 0.000000e+00 : f32
    %508 = vector.broadcast %cst_395 : f32 to vector<17x111xf32>
    %509 = tpu.concatenate %507, %508 in 1 : vector<17x17xf32>, vector<17x111xf32> -> vector<17x128xf32>
    %c0_396 = arith.constant 0 : index
    %c1_397 = arith.constant 1 : index
    %c3_398 = arith.constant 3 : index
    %c0_399 = arith.constant 0 : index
    %c0_400 = arith.constant 0 : index
    %510 = vector.load %arg23[%c0_396, %c1_397, %c3_398, %c0_399, %c0_400] : memref<1x2x4x17x128xf32, #tpu.memory_space<vmem>>, vector<1x1x1x17x128xf32>
    %511 = vector.shape_cast %510 : vector<1x1x1x17x128xf32> to vector<17x128xf32>
    %512 = vector.shape_cast %509 : vector<17x128xf32> to vector<1x1x1x17x128xf32>
    tpu.vector_store %arg23[%c0_396, %c1_397, %c3_398, %c0_399, %c0_400], %512 {strides = array<i32>} : memref<1x2x4x17x128xf32, #tpu.memory_space<vmem>>, vector<1x1x1x17x128xf32>,
    %513 = arith.truncf %507 : vector<17x17xf32> to vector<17x17xbf16>
    %514 = arith.truncf %492 : vector<17x8xf32> to vector<17x8xbf16>
    %cst_401 = arith.constant dense<0.000000e+00> : vector<17x8xf32>
    %515 = tpu.matmul %513, %514, %cst_401 {dimension_numbers = #tpu.dot_dimension_numbers<[1], [0], [0], [1], [0, 0, 1, 1], [], []>} : vector<17x17xbf16>, vector<17x8xbf16>, vector<17x8xf32> -> vector<17x8xf32>
    %516 = arith.truncf %515 : vector<17x8xf32> to vector<17x8xbf16>
    %c1_402 = arith.constant 1 : index
    %c3_403 = arith.constant 3 : index
    %c0_404 = arith.constant 0 : index
    %c0_405 = arith.constant 0 : index
    %517 = vector.load %arg14[%c1_402, %c3_403, %c0_404, %c0_405] : memref<2x4x8x32xbf16, #tpu.memory_space<vmem>>, vector<1x1x8x32xbf16>
    %518 = vector.shape_cast %517 : vector<1x1x8x32xbf16> to vector<8x32xbf16>
    %cst_406 = arith.constant dense<0.000000e+00> : vector<17x32xf32>
    %519 = tpu.matmul %516, %518, %cst_406 {dimension_numbers = #tpu.dot_dimension_numbers<[1], [0], [0], [1], [0, 0, 1, 1], [], []>} : vector<17x8xbf16>, vector<8x32xbf16>, vector<17x32xf32> -> vector<17x32xf32>
    %520 = arith.addf %471, %519 : vector<17x32xf32>
    %521 = arith.addf %296, %520 : vector<17x32xf32>
    %c1_407 = arith.constant 1 : index
    %c0_408 = arith.constant 0 : index
    %c0_409 = arith.constant 0 : index
    %522 = vector.load %arg15[%c1_407, %c0_408, %c0_409] : memref<2x1x32xf32, #tpu.memory_space<vmem>>, vector<1x1x32xf32>
    %523 = vector.shape_cast %522 : vector<1x1x32xf32> to vector<1x32xf32>
    %524 = vector.broadcast %523 : vector<1x32xf32> to vector<17x32xf32>
    %525 = arith.addf %521, %524 : vector<17x32xf32>
    %c1_410 = arith.constant 1 : index
    %c0_411 = arith.constant 0 : index
    %c0_412 = arith.constant 0 : index
    %526 = vector.load %arg16[%c1_410, %c0_411, %c0_412] : memref<2x1x32xf32, #tpu.memory_space<vmem>>, vector<1x1x32xf32>
    %527 = vector.shape_cast %526 : vector<1x1x32xf32> to vector<1x32xf32>
    %c1_413 = arith.constant 1 : index
    %c0_414 = arith.constant 0 : index
    %c0_415 = arith.constant 0 : index
    %528 = vector.load %arg17[%c1_413, %c0_414, %c0_415] : memref<2x1x32xf32, #tpu.memory_space<vmem>>, vector<1x1x32xf32>
    %529 = vector.shape_cast %528 : vector<1x1x32xf32> to vector<1x32xf32>
    %cst_416 = arith.constant dense<0.000000e+00> : vector<17xf32>
    %530 = vector.multi_reduction <add>, %525, %cst_416 [1] : vector<17x32xf32> to vector<17xf32>
    %531 = vector.shape_cast %530 : vector<17xf32> to vector<17x1xf32>
    %cst_417 = arith.constant 3.200000e+01 : f32
    %532 = vector.broadcast %cst_417 : f32 to vector<17x1xf32>
    %533 = arith.divf %531, %532 : vector<17x1xf32>
    %534 = vector.broadcast %533 : vector<17x1xf32> to vector<17x32xf32>
    %535 = arith.subf %525, %534 : vector<17x32xf32>
    %536 = arith.mulf %535, %535 : vector<17x32xf32>
    %cst_418 = arith.constant dense<0.000000e+00> : vector<17xf32>
    %537 = vector.multi_reduction <add>, %536, %cst_418 [1] : vector<17x32xf32> to vector<17xf32>
    %538 = vector.shape_cast %537 : vector<17xf32> to vector<17x1xf32>
    %cst_419 = arith.constant 3.200000e+01 : f32
    %539 = vector.broadcast %cst_419 : f32 to vector<17x1xf32>
    %540 = arith.divf %538, %539 : vector<17x1xf32>
    %541 = vector.broadcast %533 : vector<17x1xf32> to vector<17x32xf32>
    %542 = arith.subf %525, %541 : vector<17x32xf32>
    %cst_420 = arith.constant 9.99999974E-6 : f32
    %543 = vector.broadcast %cst_420 : f32 to vector<17x1xf32>
    %544 = arith.addf %540, %543 : vector<17x1xf32>
    %545 = math.rsqrt %544 : vector<17x1xf32>
    %546 = vector.broadcast %545 : vector<17x1xf32> to vector<17x32xf32>
    %547 = arith.mulf %542, %546 : vector<17x32xf32>
    %548 = vector.broadcast %527 : vector<1x32xf32> to vector<17x32xf32>
    %549 = arith.mulf %547, %548 : vector<17x32xf32>
    %550 = vector.broadcast %529 : vector<1x32xf32> to vector<17x32xf32>
    %551 = arith.addf %549, %550 : vector<17x32xf32>
    %552 = arith.truncf %551 : vector<17x32xf32> to vector<17x32xbf16>
    %c1_421 = arith.constant 1 : index
    %c0_422 = arith.constant 0 : index
    %c0_423 = arith.constant 0 : index
    %553 = vector.load %arg18[%c1_421, %c0_422, %c0_423] : memref<2x32x128xbf16, #tpu.memory_space<vmem>>, vector<1x32x128xbf16>
    %554 = vector.shape_cast %553 : vector<1x32x128xbf16> to vector<32x128xbf16>
    %cst_424 = arith.constant dense<0.000000e+00> : vector<17x128xf32>
    %555 = tpu.matmul %552, %554, %cst_424 {dimension_numbers = #tpu.dot_dimension_numbers<[1], [0], [0], [1], [0, 0, 1, 1], [], []>} : vector<17x32xbf16>, vector<32x128xbf16>, vector<17x128xf32> -> vector<17x128xf32>
    %c1_425 = arith.constant 1 : index
    %c0_426 = arith.constant 0 : index
    %c0_427 = arith.constant 0 : index
    %556 = vector.load %arg19[%c1_425, %c0_426, %c0_427] : memref<2x1x128xf32, #tpu.memory_space<vmem>>, vector<1x1x128xf32>
    %557 = vector.shape_cast %556 : vector<1x1x128xf32> to vector<1x128xf32>
    %558 = vector.broadcast %557 : vector<1x128xf32> to vector<17x128xf32>
    %559 = arith.addf %555, %558 : vector<17x128xf32>
    %560 = arith.mulf %559, %559 : vector<17x128xf32>
    %561 = arith.mulf %559, %560 : vector<17x128xf32>
    %cst_428 = arith.constant 4.471500e-02 : f32
    %562 = vector.broadcast %cst_428 : f32 to vector<17x128xf32>
    %563 = arith.mulf %562, %561 : vector<17x128xf32>
    %564 = arith.addf %559, %563 : vector<17x128xf32>
    %cst_429 = arith.constant 0.797884583 : f32
    %565 = vector.broadcast %cst_429 : f32 to vector<17x128xf32>
    %566 = arith.mulf %565, %564 : vector<17x128xf32>
    %567 = math.tanh %566 : vector<17x128xf32>
    %cst_430 = arith.constant 1.000000e+00 : f32
    %568 = vector.broadcast %cst_430 : f32 to vector<17x128xf32>
    %569 = arith.addf %568, %567 : vector<17x128xf32>
    %cst_431 = arith.constant 5.000000e-01 : f32
    %570 = vector.broadcast %cst_431 : f32 to vector<17x128xf32>
    %571 = arith.mulf %570, %569 : vector<17x128xf32>
    %572 = arith.mulf %559, %571 : vector<17x128xf32>
    %573 = arith.truncf %572 : vector<17x128xf32> to vector<17x128xbf16>
    %c1_432 = arith.constant 1 : index
    %c0_433 = arith.constant 0 : index
    %c0_434 = arith.constant 0 : index
    %574 = vector.load %arg20[%c1_432, %c0_433, %c0_434] : memref<2x128x32xbf16, #tpu.memory_space<vmem>>, vector<1x128x32xbf16>
    %575 = vector.shape_cast %574 : vector<1x128x32xbf16> to vector<128x32xbf16>
    %cst_435 = arith.constant dense<0.000000e+00> : vector<17x32xf32>
    %576 = tpu.matmul %573, %575, %cst_435 {dimension_numbers = #tpu.dot_dimension_numbers<[1], [0], [0], [1], [0, 0, 1, 1], [], []>} : vector<17x128xbf16>, vector<128x32xbf16>, vector<17x32xf32> -> vector<17x32xf32>
    %c1_436 = arith.constant 1 : index
    %c0_437 = arith.constant 0 : index
    %c0_438 = arith.constant 0 : index
    %577 = vector.load %arg21[%c1_436, %c0_437, %c0_438] : memref<2x1x32xf32, #tpu.memory_space<vmem>>, vector<1x1x32xf32>
    %578 = vector.shape_cast %577 : vector<1x1x32xf32> to vector<1x32xf32>
    %579 = vector.broadcast %578 : vector<1x32xf32> to vector<17x32xf32>
    %580 = arith.addf %576, %579 : vector<17x32xf32>
    %581 = arith.addf %525, %580 : vector<17x32xf32>
    %c0_439 = arith.constant 0 : index
    %c0_440 = arith.constant 0 : index
    %c0_441 = arith.constant 0 : index
    %582 = vector.load %arg22[%c0_439, %c0_440, %c0_441] : memref<1x17x32xf32, #tpu.memory_space<vmem>>, vector<1x17x32xf32>
    %583 = vector.shape_cast %582 : vector<1x17x32xf32> to vector<17x32xf32>
    %584 = vector.shape_cast %581 : vector<17x32xf32> to vector<1x17x32xf32>
    tpu.vector_store %arg22[%c0_439, %c0_440, %c0_441], %584 {strides = array<i32>} : memref<1x17x32xf32, #tpu.memory_space<vmem>>, vector<1x17x32xf32>,
    return
  }
  func.func @transform_0(%arg0: i32) -> (i32, i32, i32) {
    %c0_i32 = arith.constant 0 : i32
    %c0_i32_0 = arith.constant 0 : i32
    %c0_i32_1 = arith.constant 0 : i32
    return %arg0, %c0_i32, %c0_i32_0 : i32, i32, i32
  }
  func.func @transform_1(%arg0: i32) -> (i32, i32) {
    %c0_i32 = arith.constant 0 : i32
    %c0_i32_0 = arith.constant 0 : i32
    %c0_i32_1 = arith.constant 0 : i32
    return %c0_i32, %c0_i32_0 : i32, i32
  }
  func.func @transform_2(%arg0: i32) -> (i32, i32) {
    %c0_i32 = arith.constant 0 : i32
    %c0_i32_0 = arith.constant 0 : i32
    %c0_i32_1 = arith.constant 0 : i32
    return %c0_i32, %c0_i32_0 : i32, i32
  }
  func.func @transform_3(%arg0: i32) -> (i32, i32) {
    %c0_i32 = arith.constant 0 : i32
    %c0_i32_0 = arith.constant 0 : i32
    %c0_i32_1 = arith.constant 0 : i32
    return %c0_i32, %c0_i32_0 : i32, i32
  }
  func.func @transform_4(%arg0: i32) -> (i32, i32) {
    %c0_i32 = arith.constant 0 : i32
    %c0_i32_0 = arith.constant 0 : i32
    %c0_i32_1 = arith.constant 0 : i32
    return %c0_i32, %c0_i32_0 : i32, i32
  }
  func.func @transform_5(%arg0: i32) -> (i32, i32, i32) {
    %c0_i32 = arith.constant 0 : i32
    %c0_i32_0 = arith.constant 0 : i32
    %c0_i32_1 = arith.constant 0 : i32
    %c0_i32_2 = arith.constant 0 : i32
    return %c0_i32, %c0_i32_0, %c0_i32_1 : i32, i32, i32
  }
  func.func @transform_6(%arg0: i32) -> (i32, i32, i32) {
    %c0_i32 = arith.constant 0 : i32
    %c0_i32_0 = arith.constant 0 : i32
    %c0_i32_1 = arith.constant 0 : i32
    %c0_i32_2 = arith.constant 0 : i32
    return %c0_i32, %c0_i32_0, %c0_i32_1 : i32, i32, i32
  }
  func.func @transform_7(%arg0: i32) -> (i32, i32, i32, i32) {
    %c0_i32 = arith.constant 0 : i32
    %c0_i32_0 = arith.constant 0 : i32
    %c0_i32_1 = arith.constant 0 : i32
    %c0_i32_2 = arith.constant 0 : i32
    %c0_i32_3 = arith.constant 0 : i32
    return %c0_i32, %c0_i32_0, %c0_i32_1, %c0_i32_2 : i32, i32, i32, i32
  }
  func.func @transform_8(%arg0: i32) -> (i32, i32, i32, i32) {
    %c0_i32 = arith.constant 0 : i32
    %c0_i32_0 = arith.constant 0 : i32
    %c0_i32_1 = arith.constant 0 : i32
    %c0_i32_2 = arith.constant 0 : i32
    %c0_i32_3 = arith.constant 0 : i32
    return %c0_i32, %c0_i32_0, %c0_i32_1, %c0_i32_2 : i32, i32, i32, i32
  }
  func.func @transform_9(%arg0: i32) -> (i32, i32, i32, i32) {
    %c0_i32 = arith.constant 0 : i32
    %c0_i32_0 = arith.constant 0 : i32
    %c0_i32_1 = arith.constant 0 : i32
    %c0_i32_2 = arith.constant 0 : i32
    %c0_i32_3 = arith.constant 0 : i32
    return %c0_i32, %c0_i32_0, %c0_i32_1, %c0_i32_2 : i32, i32, i32, i32
  }
  func.func @transform_10(%arg0: i32) -> (i32, i32, i32, i32) {
    %c0_i32 = arith.constant 0 : i32
    %c0_i32_0 = arith.constant 0 : i32
    %c0_i32_1 = arith.constant 0 : i32
    %c0_i32_2 = arith.constant 0 : i32
    %c0_i32_3 = arith.constant 0 : i32
    return %c0_i32, %c0_i32_0, %c0_i32_1, %c0_i32_2 : i32, i32, i32, i32
  }
  func.func @transform_11(%arg0: i32) -> (i32, i32, i32, i32) {
    %c0_i32 = arith.constant 0 : i32
    %c0_i32_0 = arith.constant 0 : i32
    %c0_i32_1 = arith.constant 0 : i32
    %c0_i32_2 = arith.constant 0 : i32
    %c0_i32_3 = arith.constant 0 : i32
    return %c0_i32, %c0_i32_0, %c0_i32_1, %c0_i32_2 : i32, i32, i32, i32
  }
  func.func @transform_12(%arg0: i32) -> (i32, i32, i32, i32) {
    %c0_i32 = arith.constant 0 : i32
    %c0_i32_0 = arith.constant 0 : i32
    %c0_i32_1 = arith.constant 0 : i32
    %c0_i32_2 = arith.constant 0 : i32
    %c0_i32_3 = arith.constant 0 : i32
    return %c0_i32, %c0_i32_0, %c0_i32_1, %c0_i32_2 : i32, i32, i32, i32
  }
  func.func @transform_13(%arg0: i32) -> (i32, i32, i32, i32) {
    %c0_i32 = arith.constant 0 : i32
    %c0_i32_0 = arith.constant 0 : i32
    %c0_i32_1 = arith.constant 0 : i32
    %c0_i32_2 = arith.constant 0 : i32
    %c0_i32_3 = arith.constant 0 : i32
    return %c0_i32, %c0_i32_0, %c0_i32_1, %c0_i32_2 : i32, i32, i32, i32
  }
  func.func @transform_14(%arg0: i32) -> (i32, i32, i32) {
    %c0_i32 = arith.constant 0 : i32
    %c0_i32_0 = arith.constant 0 : i32
    %c0_i32_1 = arith.constant 0 : i32
    %c0_i32_2 = arith.constant 0 : i32
    return %c0_i32, %c0_i32_0, %c0_i32_1 : i32, i32, i32
  }
  func.func @transform_15(%arg0: i32) -> (i32, i32, i32) {
    %c0_i32 = arith.constant 0 : i32
    %c0_i32_0 = arith.constant 0 : i32
    %c0_i32_1 = arith.constant 0 : i32
    %c0_i32_2 = arith.constant 0 : i32
    return %c0_i32, %c0_i32_0, %c0_i32_1 : i32, i32, i32
  }
  func.func @transform_16(%arg0: i32) -> (i32, i32, i32) {
    %c0_i32 = arith.constant 0 : i32
    %c0_i32_0 = arith.constant 0 : i32
    %c0_i32_1 = arith.constant 0 : i32
    %c0_i32_2 = arith.constant 0 : i32
    return %c0_i32, %c0_i32_0, %c0_i32_1 : i32, i32, i32
  }
  func.func @transform_17(%arg0: i32) -> (i32, i32, i32) {
    %c0_i32 = arith.constant 0 : i32
    %c0_i32_0 = arith.constant 0 : i32
    %c0_i32_1 = arith.constant 0 : i32
    %c0_i32_2 = arith.constant 0 : i32
    return %c0_i32, %c0_i32_0, %c0_i32_1 : i32, i32, i32
  }
  func.func @transform_18(%arg0: i32) -> (i32, i32, i32) {
    %c0_i32 = arith.constant 0 : i32
    %c0_i32_0 = arith.constant 0 : i32
    %c0_i32_1 = arith.constant 0 : i32
    %c0_i32_2 = arith.constant 0 : i32
    return %c0_i32, %c0_i32_0, %c0_i32_1 : i32, i32, i32
  }
  func.func @transform_19(%arg0: i32) -> (i32, i32, i32) {
    %c0_i32 = arith.constant 0 : i32
    %c0_i32_0 = arith.constant 0 : i32
    %c0_i32_1 = arith.constant 0 : i32
    %c0_i32_2 = arith.constant 0 : i32
    return %c0_i32, %c0_i32_0, %c0_i32_1 : i32, i32, i32
  }
  func.func @transform_20(%arg0: i32) -> (i32, i32, i32) {
    %c0_i32 = arith.constant 0 : i32
    %c0_i32_0 = arith.constant 0 : i32
    %c0_i32_1 = arith.constant 0 : i32
    %c0_i32_2 = arith.constant 0 : i32
    return %c0_i32, %c0_i32_0, %c0_i32_1 : i32, i32, i32
  }
  func.func @transform_21(%arg0: i32) -> (i32, i32, i32) {
    %c0_i32 = arith.constant 0 : i32
    %c0_i32_0 = arith.constant 0 : i32
    %c0_i32_1 = arith.constant 0 : i32
    return %arg0, %c0_i32, %c0_i32_0 : i32, i32, i32
  }
  func.func @transform_22(%arg0: i32) -> (i32, i32, i32, i32, i32) {
    %c0_i32 = arith.constant 0 : i32
    %c0_i32_0 = arith.constant 0 : i32
    %c0_i32_1 = arith.constant 0 : i32
    %c0_i32_2 = arith.constant 0 : i32
    %c0_i32_3 = arith.constant 0 : i32
    return %arg0, %c0_i32, %c0_i32_0, %c0_i32_1, %c0_i32_2 : i32, i32, i32, i32, i32
  }
}

</mosaic_0001>

<bundles_post_ra>
// kernel: tpu_custom_call.1
= control target key start
LH: loop header
LB: loop body
LE: loop exit
PB: predicated region body
PF: predicated region fallthrough
CT: control target
= control target key end

     0   :  { %s5552_s0 = inlined_call_operand.vmem [shape: f32[2,16,64], index: 0, kind: input, shape index: {}]   ;;  %s5553_s1 = inlined_call_operand.vmem [shape: bf16[64,32], index: 1, kind: input, shape index: {}]   ;;  %s5554_s2 = inlined_call_operand.vmem [shape: f32[1,32], index: 2, kind: input, shape index: {}]   ;;  %s5555_s3 = inlined_call_operand.vmem [shape: f32[1,32], index: 3, kind: input, shape index: {}]   ;;  %s5556_s4 = inlined_call_operand.vmem [shape: f32[17,32], index: 4, kind: input, shape index: {}]   ;;  %s5557_s5 = inlined_call_operand.vmem [shape: f32[2,1,32], index: 5, kind: input, shape index: {}]   ;;  %s5558_s6 = inlined_call_operand.vmem [shape: f32[2,1,32], index: 6, kind: input, shape index: {}]   ;;  %s5559_s7 = inlined_call_operand.vmem [shape: bf16[2,4,32,8], index: 7, kind: input, shape index: {}]   ;;  %s5560_s8 = inlined_call_operand.vmem [shape: bf16[2,4,32,8], index: 8, kind: input, shape index: {}]   ;;  %s5561_s9 = inlined_call_operand.vmem [shape: bf16[2,4,32,8], index: 9, kind: input, shape index: {}]   ;;  %s5562_s10 = inlined_call_operand.vmem [shape: f32[2,4,1,8], index: 10, kind: input, shape index: {}]   ;;  %s5563_s11 = inlined_call_operand.vmem [shape: f32[2,4,1,8], index: 11, kind: input, shape index: {}]   ;;  %s5564_s12 = inlined_call_operand.vmem [shape: f32[2,4,1,8], index: 12, kind: input, shape index: {}]   ;;  %s5565_s13 = inlined_call_operand.vmem [shape: bf16[2,4,8,32], index: 13, kind: input, shape index: {}]   ;;  %s5566_s14 = inlined_call_operand.vmem [shape: f32[2,1,32], index: 14, kind: input, shape index: {}]   ;;  %s5567_s15 = inlined_call_operand.vmem [shape: f32[2,1,32], index: 15, kind: input, shape index: {}]   ;;  %s5568_s16 = inlined_call_operand.vmem [shape: f32[2,1,32], index: 16, kind: input, shape index: {}]   ;;  %s5569_s17 = inlined_call_operand.vmem [shape: bf16[2,32,128], index: 17, kind: input, shape index: {}]   ;;  %s5570_s18 = inlined_call_operand.vmem [shape: f32[2,1,128], index: 18, kind: input, shape index: {}]   ;;  %s5571_s19 = inlined_call_operand.vmem [shape: bf16[2,128,32], index: 19, kind: input, shape index: {}]   ;;  %s5572_s20 = inlined_call_operand.vmem [shape: f32[2,1,32], index: 20, kind: input, shape index: {}]   ;;  %s5573_s21 = inlined_call_operand.vmem [shape: f32[2,17,32], index: 21, kind: output, shape index: {0}]   ;;  %s5574_s22 = inlined_call_operand.vmem [shape: f32[2,2,4,17,128], index: 22, kind: output, shape index: {1}]  }
   0x1   :  { %5581 = sst [smem:[#allocation2_spill]] %s5552_s0 }
   0x2   :  { %5582 = sst [smem:[#allocation3_spill]] %s5553_s1 }
   0x3   :  { %5583 = sst [smem:[#allocation4_spill]] %s5554_s2 }
   0x4   :  { %5584 = sst [smem:[#allocation5_spill]] %s5555_s3  ;;  %s4592_s3 = smov 0  }
   0x5   :  { %5585 = sst [smem:[#allocation6_spill]] %s5556_s4 }
   0x6   :  { %5586 = sst [smem:[#allocation7_spill]] %s5557_s5 }
   0x7   :  { %5587 = sst [smem:[#allocation8_spill]] %s5558_s6 }
   0x8 LB: > { %s3647_s28 = sadd.s32 4294967295, %s4473_s3   ;;  %p3651_p0 = scmp.ge.s32.totalorder %s4473_s3, 1  ;;  %s4473_s3 = sphi %s4592_s3, %s33_s3  }
   0x9   : > { %p615_p1 = scmp.lt.s32.totalorder %s4473_s3, 3 }
   0xb   : > { %p616_p2 = pnand %p3651_p0, %p615_p1 }
   0xc   : > { %s5588_s4 = sld [smem:[#allocation3_spill]] (!%p616_p2)  ;;  %p682_p3 = scmp.lt.s32.totalorder (!%p616_p2), %s3647_s28, 1 }
   0xd   : > { %619 = sbr.rel (%p616_p2) target bundleno = 6731 (0x1a4b), region = 104  ;;  %s5589_s6 = sld [smem:[#allocation2_spill]] (!%p616_p2) }
   0xe   : > { %s5590_s23 = sld [smem:[#allocation4_spill]] (!%p616_p2) }
   0xf   : > { %s5591_s24 = sld [smem:[#allocation5_spill]] (!%p616_p2) }
  0x10   : > { %s5592_s2 = sld [smem:[#allocation6_spill]] (!%p616_p2) }
  0x11   : > { %s5593_s0 = sld [smem:[#allocation7_spill]] (!%p616_p2) }
  0x12   : > { %v4211_v0 = vld [vmem:[%s5588_s4 + $0x18] sm:$0xff]  ;;  %v4210_v1 = vld [vmem:[%s5588_s4 + $0x10] sm:$0xff]  ;;  %s5596_s28 = smov (!%p682_p3, %s3647_s28), 1  ;;  %v4209_v2 = vld [vmem:[%s5588_s4 + $0x8] sm:$0xff]  ;;  %vm737_vm0 = vcmask 523264   ;;  %vm758_vm1 = vcmask 1040384  }
  0x13   : > { %745 = vmatpush.bf16.msra.mxu0 %v4211_v0  ;;  %s4207_s1 = sshll.u32 %s5596_s28, 4  ;;  %v4208_v3 = vld [vmem:[%s5588_s4] sm:$0xff]  ;;  %vm774_vm2 = vcmask 261120   ;;  %vm781_vm3 = vcmask 253952   ;;  %v4475_v26 = vmov 32.0   ;;  %v4213_v48 = vld [vmem:[%s5559_s7 + $0x8] sm:$0xff] }
  0x14   : > { %s686_s25 = scalar_lea.vmem %s5589_s6, %s4207_s1  ;;  %v4294_v7 = vld [vmem:[%s5590_s23] ss:$0 sm:$0xff]  ;;  %4333 = vrcp.f32 %v4475_v26  ;;  %v4215_v49 = vld [vmem:[%s5560_s8 + $0x8] sm:$0xff]  ;;  %895 = vmatpush.bf16.msra.mxu1 %v4213_v48  ;;  %s5594_s5 = sld [smem:[#allocation8_spill]]  ;;  %vm987_vm14 = vcmask 64512   ;;  %vm1021_vm15 = vcmask 138240  }
  0x15   : > { %v698_v4 = vld [vmem:[%s686_s25] sm:$0xff]  ;;  %v699_v5 = vld [vmem:[%s686_s25 + $0x8] sm:$0xff]  ;;  %933 = vmatpush.bf16.msra.mxu2 %v4215_v49  ;;  %s4283_s29 = smul.u32 192, %s5596_s28 }
  0x16   : > { %v700_v6 = vpack.c.bf16 %v699_v5, %v698_v4  ;;  %v755_v10 = vld [vmem:[%s5591_s24] sm:$0x1]  ;;  %v768_v18 = vld [vmem:[%s5592_s2 + $0x10] sm:$0x1]  ;;  %v767_v20 = vld [vmem:[%s5592_s2 + $0x8] sm:$0xff]  ;;  %s4282_s6 = smul.u32 24, %s5596_s28 }
  0x17   : > { %746 = vmatpush.bf16.msra.mxu0 %v4210_v1  ;;  %v766_v12 = vld [vmem:[%s5592_s2] sm:$0xff]  ;;  %v4217_v50 = vld [vmem:[%s5561_s9 + $0x8] sm:$0xff]  ;;  %s4788_s1 = scalar_lea.vmem %s5574_s22, %s4283_s29 }
  0x18   : > { %971 = vmatpush.bf16.msra.mxu3 %v4217_v50  ;;  %v4212_v53 = vld [vmem:[%s5559_s7] sm:$0xff]  ;;  %s691_s27 = scalar_lea.vmem %s5573_s21, %s4282_s6 }
  0x19   : > { %v4214_v54 = vld [vmem:[%s5560_s8] sm:$0xff]  ;;  %896 = vmatpush.bf16.msra.mxu1 %v4212_v53 }
  0x1a   : > { %v4334_v27 = vpop.eup %4333  ;;  %v4216_v55 = vld [vmem:[%s5561_s9] sm:$0xff]  ;;  %934 = vmatpush.bf16.msra.mxu2 %v4214_v54 }
  0x1b   : > { %747 = vmatpush.bf16.msra.mxu0 %v4209_v2  ;;  %v786_v28 = vmul.f32 32.0, %v4334_v27  ;;  %vm790_vm4 = vweird.f32 %v4334_v27  ;;  %v4298_v48 = vld [vmem:[%s5563_s11] ss:$0 sm:$0xff] }
  0x1c   : > { %972 = vmatpush.bf16.msra.mxu3 %v4216_v55  ;;  %v4299_v53 = vld [vmem:[%s5564_s12] ss:$0 sm:$0xff] }
  0x1d   : > { %v787_v29 = vsub.f32 1.0, %v786_v28 }
  0x1f   : > { %748 = vmatpush.bf16.msra.mxu0 %v4208_v3  ;;  %v788_v30 = vmul.f32 %v4334_v27, %v787_v29 }
  0x21   : > { %v789_v31 = vadd.f32 %v4334_v27, %v788_v30 }
  0x22   : > { %3672 = vmatmul.msk.bf16.vlgmr.msra.gmra.mxu0 %vm737_vm0, %v700_v6  ;;  %vm1028_vm0 = vcmask 131072  }
  0x23   : > { %v4647_v32 = vsel %vm790_vm4, %v4334_v27, %v789_v31 }
  0x9f   : > { %v750_v8 = vpop.f32.mrf.mxu0 }
  0xa0   : > { %v751_v9 = vadd.f32 %v4294_v7, %v750_v8 }
  0xa2   : > { %v759_v11 = vrot.slane %v751_v9, 7 }
  0xa4   : > { %v765_v13 = vsel %vm758_vm1, %v755_v10, %v759_v11  ;;  %v4219_v10 = vld [vmem:[%s5559_s7 + $0x18] sm:$0xff] }
  0xa5   : > { %v4628_v14 = vadd.f32 %v766_v12, %v765_v13  ;;  %1126 = vmatpush.bf16.msrb.mxu2 %v4219_v10  ;;  %v4218_v13 = vld [vmem:[%s5559_s7 + $0x10] sm:$0xff] }
  0xa7   : > { %v752_v15 = vpop.f32.mrf.mxu0  ;;  %v775_v16 = vsel %vm774_vm2, %v4628_v14, 0.0 }
  0xa8   : > { %v753_v17 = vadd.f32 %v4294_v7, %v752_v15  ;;  %776 = vadd.xlane.f32.xlu0 %v775_v16  ;;  %v4220_v15 = vld [vmem:[%s5560_s8 + $0x10] sm:$0xff] }
  0xa9   : > { %1127 = vmatpush.bf16.msrb.mxu2 %v4218_v13 }
  0xaa   : > { %v760_v19 = vrot.slane %v753_v17, 7  ;;  %v4295_v17 = vld [vmem:[%s5593_s0] ss:$0 sm:$0xff] }
  0xac   : > { %v4638_v21 = vadd.f32 %v768_v18, %v760_v19  ;;  %v761_v22 = vsel %vm758_vm1, %v759_v11, %v760_v19  ;;  %v4221_v11 = vld [vmem:[%s5560_s8 + $0x18] sm:$0xff] }
  0xad   : > { %v4641_v23 = vadd.f32 %v767_v20, %v761_v22  ;;  %1166 = vmatpush.bf16.msrb.mxu3 %v4221_v11 }
  0xae   : > { %v782_v24 = vsel %vm781_vm3, %v4638_v21, 0.0 }
  0xaf   : > { %783 = vadd.xlane.f32.xlu1 %v782_v24  ;;  %v778_v25 = vsel %vm774_vm2, %v4641_v23, 0.0 }
  0xb0   : > { %779 = vadd.xlane.f32.xlu0 %v778_v25  ;;  %v4296_v25 = vld [vmem:[%s5594_s5] ss:$0 sm:$0xff] }
  0xb1   : > { %1167 = vmatpush.bf16.msrb.mxu3 %v4220_v15 }
 0x11b   : > { %v777_v33 = vpop.xlane.xlu0 %776 }
 0x11c   : > { %v792_v34 = vmul.f32 %v4647_v32, %v777_v33 }
 0x11e   : > { %v4651_v35 = vsub.f32 %v4628_v14, %v792_v34 }
 0x120   : > { %v798_v36 = vmul.f32 %v4651_v35, %v4651_v35 }
 0x122   : > { %v801_v37 = vsel %vm774_vm2, %v798_v36, 0.0  ;;  %v784_v38 = vpop.xlane.xlu1 %783 }
 0x123   : > { %802 = vadd.xlane.f32.xlu1 %v801_v37  ;;  %v780_v39 = vpop.xlane.xlu0 %779  ;;  %v794_v41 = vmul.f32 %v4647_v32, %v784_v38 }
 0x124   : > { %v793_v40 = vmul.f32 %v4647_v32, %v780_v39 }
 0x125   : > { %v4664_v44 = vsub.f32 %v4638_v21, %v794_v41 }
 0x126   : > { %v4659_v42 = vsub.f32 %v4641_v23, %v793_v40 }
 0x127   : > { %v800_v46 = vmul.f32 %v4664_v44, %v4664_v44 }
 0x128   : > { %v799_v43 = vmul.f32 %v4659_v42, %v4659_v42 }
 0x129   : > { %v807_v47 = vsel %vm781_vm3, %v800_v46, 0.0 }
 0x12a   : > { %v804_v45 = vsel %vm774_vm2, %v799_v43, 0.0 }
 0x12b   : > { %805 = vadd.xlane.f32.xlu2 %v804_v45 }
 0x133   : > { %808 = vadd.xlane.f32.xlu2 %v807_v47 }
 0x196   : > { %v803_v51 = vpop.xlane.xlu1 %802 }
 0x197   : > { %v810_v52 = vmul.f32 %v803_v51, %v4647_v32 }
 0x199   : > { %v813_v56 = vadd.f32 1e-05, %v810_v52 }
 0x19b   : > { %4335 = vrsqrt.f32 %v813_v56  ;;  %vm822_vm6 = vweird.f32 %v813_v56 }
 0x19e   : > { %v806_v57 = vpop.xlane.xlu2 %805 }
 0x19f   : > { %v811_v58 = vmul.f32 %v806_v57, %v4647_v32 }
 0x1a1   : > { %v4336_v59 = vpop.eup %4335  ;;  %v814_v60 = vadd.f32 1e-05, %v811_v58 }
 0x1a2   : > { %v817_v61 = vmul.f32 %v4336_v59, %v813_v56  ;;  %vm823_vm5 = vweird.f32 %v4336_v59 }
 0x1a3   : > { %4337 = vrsqrt.f32 %v814_v60  ;;  %vm824_vm7 = vmor %vm822_vm6, %vm823_vm5  ;;  %vm832_vm9 = vweird.f32 %v814_v60 }
 0x1a4   : > { %v818_v62 = vmul.f32 %v4336_v59, %v817_v61 }
 0x1a6   : > { %v819_v63 = vmul.f32 0.5, %v818_v62  ;;  %v809_v0 = vpop.xlane.xlu2 %808 }
 0x1a7   : > { %v812_v1 = vmul.f32 %v809_v0, %v4647_v32 }
 0x1a8   : > { %v820_v2 = vsub.f32 1.5, %v819_v63  ;;  %v4476_v63 = vmov 0  }
 0x1a9   : > { %v4338_v3 = vpop.eup %4337  ;;  %v815_v4 = vadd.f32 1e-05, %v812_v1  ;;  %v4744_v0 = vsel %vm758_vm1, 65535, %v4476_v63  ;;  %v4223_v1 = vld [vmem:[%s5561_s9 + $0x18] sm:$0xff]  ;;  %vm1336_vm1 = vcmask 1043456  }
 0x1aa   : > { %v821_v5 = vmul.f32 %v4336_v59, %v820_v2  ;;  %v827_v6 = vmul.f32 %v4338_v3, %v814_v60  ;;  %vm833_vm8 = vweird.f32 %v4338_v3  ;;  %v4297_v2 = vld [vmem:[%s5562_s10] ss:$0 sm:$0xff] }
 0x1ab   : > { %4339 = vrsqrt.f32 %v815_v4  ;;  %vm834_vm10 = vmor %vm832_vm9, %vm833_vm8  ;;  %vm842_vm12 = vweird.f32 %v815_v4 }
 0x1ac   : > { %v828_v7 = vmul.f32 %v4338_v3, %v827_v6  ;;  %v825_v8 = vsel %vm824_vm7, %v4336_v59, %v821_v5 }
 0x1ad   : > { %v846_v18 = vmul.f32 %v825_v8, %v4651_v35 }
 0x1ae   : > { %v829_v9 = vmul.f32 0.5, %v828_v7 }
 0x1af   : > { %v852_v26 = vmul.f32 %v4295_v17, %v846_v18 }
 0x1b0   : > { %v830_v12 = vsub.f32 1.5, %v829_v9  ;;  %v4222_v9 = vld [vmem:[%s5561_s9 + $0x10] sm:$0xff] }
 0x1b1   : > { %v4340_v16 = vpop.eup %4339  ;;  %v858_v31 = vadd.f32 %v4296_v25, %v852_v26 }
 0x1b2   : > { %v831_v19 = vmul.f32 %v4338_v3, %v830_v12  ;;  %v837_v20 = vmul.f32 %v4340_v16, %v815_v4  ;;  %vm843_vm11 = vweird.f32 %v4340_v16 }
 0x1b3   : > { %vm844_vm13 = vmor %vm842_vm12, %vm843_vm11 }
 0x1b4   : > { %v835_v22 = vsel %vm834_vm10, %v4338_v3, %v831_v19  ;;  %v838_v24 = vmul.f32 %v4340_v16, %v837_v20  ;;  %v4301_v19 = vld [vmem:[%s5563_s11 + $0x1] ss:$0 sm:$0xff] }
 0x1b5   : > { %v847_v27 = vmul.f32 %v835_v22, %v4659_v42 }
 0x1b6   : > { %v839_v28 = vmul.f32 0.5, %v838_v24 }
 0x1b7   : > { %v853_v29 = vmul.f32 %v4295_v17, %v847_v27 }
 0x1b8   : > { %v840_v30 = vsub.f32 1.5, %v839_v28 }
 0x1b9   : > { %v859_v33 = vadd.f32 %v4296_v25, %v853_v29 }
 0x1ba   : > { %v841_v34 = vmul.f32 %v4340_v16, %v840_v30 }
 0x1bb   : > { %v4711_v35 = vpack.c.bf16 %v859_v33, %v858_v31 }
 0x1bc   : > { %v845_v36 = vsel %vm844_vm13, %v4340_v16, %v841_v34 }
 0x1bd   : > { %3681 = vmatmul.msk.bf16.vlgmr.msra.gmra.mxu1 %vm774_vm2, %v4711_v35  ;;  %3691 = vmatmul.msk.bf16.vlgmr.msra.gmra.mxu2 %vm774_vm2, %v4711_v35  ;;  %v848_v37 = vmul.f32 %v845_v36, %v4664_v44 }
 0x1be   : > { %3701 = vmatmul.msk.bf16.vlgmr.msra.gmra.mxu3 %vm774_vm2, %v4711_v35 }
 0x1bf   : > { %v854_v38 = vmul.f32 %v4295_v17, %v848_v37 }
 0x1c1   : > { %v860_v39 = vadd.f32 %v4296_v25, %v854_v38 }
 0x1c3   : > { %v4720_v40 = vpack.c.bf16 %v860_v39, %v860_v39 }
 0x1cd   : > { %3682 = vmatmul.msk.bf16.gmra.mxu1 %vm774_vm2, %v4720_v40  ;;  %3692 = vmatmul.msk.bf16.gmra.mxu2 %vm774_vm2, %v4720_v40 }
 0x1ce   : > { %3702 = vmatmul.msk.bf16.gmra.mxu3 %vm774_vm2, %v4720_v40 }
 0x1dd   : > { %3720 = vmatmul.msk.bf16.vlgmr.msrb.gmra.mxu2 %vm774_vm2, %v4711_v35 }
 0x1de   : > { %3735 = vmatmul.msk.bf16.vlgmr.msrb.gmra.mxu3 %vm774_vm2, %v4711_v35 }
 0x1ed   : > { %3721 = vmatmul.msk.bf16.gmra.mxu2 %vm774_vm2, %v4720_v40 }
 0x1ee   : > { %3736 = vmatmul.msk.bf16.gmra.mxu3 %vm774_vm2, %v4720_v40 }
 0x23a   : > { %v898_v41 = vpop.f32.mrf.mxu1 }
 0x23b   : > { %v899_v11 = vadd.f32 %v4297_v2, %v898_v41 }
 0x240   : > { %v936_v42 = vpop.f32.mrf.mxu2 }
 0x241   : > { %v974_v43 = vpop.f32.mrf.mxu3  ;;  %v937_v58 = vadd.f32 %v4298_v48, %v936_v42 }
 0x242   : > { %v900_v44 = vpop.f32.mrf.mxu1  ;;  %v975_v6 = vadd.f32 %v4299_v53, %v974_v43 }
 0x243   : > { %v901_v7 = vadd.f32 %v4297_v2, %v900_v44 }
 0x245   : > { %v983_v15 = vpack.c.bf16 %v901_v7, %v899_v11 }
 0x248   : > { %v938_v45 = vpop.f32.mrf.mxu2 }
 0x249   : > { %v976_v46 = vpop.f32.mrf.mxu3  ;;  %v939_v55 = vadd.f32 %v4298_v48, %v938_v45 }
 0x24a   : > { %v903_v47 = vpop.f32.mrf.mxu1  ;;  %v977_v3 = vadd.f32 %v4299_v53, %v976_v46 }
 0x24b   : > { %v985_v62 = vpack.c.bf16 %v939_v55, %v937_v58  ;;  %v904_v8 = vadd.f32 %v4297_v2, %v903_v47 }
 0x24c   : > { %v1064_v12 = vpack.c.bf16 %v977_v3, %v975_v6 }
 0x24d   : > { %v995_v5 = vsel %vm987_vm14, %v985_v62, 0  ;;  %v984_v16 = vpack.c.bf16 %v904_v8, %v904_v8 }
 0x250   : > { %v941_v49 = vpop.f32.mrf.mxu2 }
 0x251   : > { %v942_v50 = vadd.f32 %v4298_v48, %v941_v49  ;;  %v979_v51 = vpop.f32.mrf.mxu3  ;;  %v4302_v48 = vld [vmem:[%s5564_s12 + $0x1] ss:$0 sm:$0xff] }
 0x252   : > { %v905_v52 = vpop.f32.mrf.mxu1  ;;  %v980_v56 = vadd.f32 %v4299_v53, %v979_v51 }
 0x253   : > { %v986_v54 = vpack.c.bf16 %v942_v50, %v942_v50 }
 0x254   : > { %v1065_v60 = vpack.c.bf16 %v980_v56, %v980_v56 }
 0x255   : > { %v998_v57 = vsel %vm987_vm14, %v986_v54, 0 }
 0x256   : > { %1006 = vmatpush.bf16.xpose.msrb.mxu0 %v998_v57  ;;  %4280 = vmatpush.bf16.xpose.msrb.mxu1 %v998_v57  ;;  %v1075_v4 = vand.u32 %v4744_v0, %v1065_v60 }
 0x258   : > { %v943_v59 = vpop.f32.mrf.mxu2 }
 0x259   : > { %v981_v61 = vpop.f32.mrf.mxu3 }
 0x25e   : > { %1007 = vmatpush.bf16.xpose.msrb.mxu0 %v995_v5  ;;  %4281 = vmatpush.bf16.xpose.msrb.mxu1 %v995_v5 }
 0x260   : > { %v4757_v10 = vpop.f32.mrf.mxu2 }
 0x261   : > { %v1169_v13 = vpop.f32.mrf.mxu3 }
 0x262   : > { %v1170_v28 = vadd.f32 %v4301_v19, %v1169_v13 }
 0x265   : > { %3703 = vmatmul.msk.bf16.vlgmr.msrb.gmra.mxu0 %vm987_vm14, %v983_v15  ;;  %3704 = vmatmul.msk.bf16.vlgmr.msrb.gmra.mxu1 %vm987_vm14, %v984_v16 }
 0x266   : > { %1083 = vmatpush.bf16.msra.mxu1 %v1075_v4  ;;  %1206 = vmatpush.bf16.msra.mxu0 %v4223_v1 }
 0x268   : > { %v4761_v17 = vpop.f32.mrf.mxu2 }
 0x269   : > { %v1171_v18 = vpop.f32.mrf.mxu3 }
 0x26a   : > { %1084 = vmatpush.bf16.msra.mxu1 %v1064_v12  ;;  %1207 = vmatpush.bf16.msra.mxu0 %v4222_v9  ;;  %v1172_v26 = vadd.f32 %v4301_v19, %v1171_v18 }
 0x26c   : > { %v1220_v31 = vpack.c.bf16 %v1172_v26, %v1170_v28 }
 0x26e   : > { %v1229_v33 = vsel %vm987_vm14, %v1220_v31, 0  ;;  %v4300_v31 = vld [vmem:[%s5562_s10 + $0x1] ss:$0 sm:$0xff] }
 0x270   : > { %v4766_v20 = vpop.f32.mrf.mxu2 }
 0x271   : > { %v1174_v22 = vpop.f32.mrf.mxu3 }
 0x272   : > { %v1175_v24 = vadd.f32 %v4301_v19, %v1174_v22 }
 0x274   : > { %v1221_v25 = vpack.c.bf16 %v1175_v24, %v1175_v24 }
 0x275   : > { %3750 = vmatmul.msk.bf16.vlgmr.msra.gmra.mxu0 %vm774_vm2, %v4711_v35 }
 0x276   : > { %v1232_v27 = vsel %vm987_vm14, %v1221_v25, 0 }
 0x277   : > { %1240 = vmatpush.bf16.xpose.msrb.mxu1 %v1232_v27 }
 0x278   : > { %v1136_v29 = vpop.f32.mrf.mxu2 }
 0x279   : > { %v1176_v30 = vpop.f32.mrf.mxu3  ;;  %v4225_v29 = vld [vmem:[%s5559_s7 + $0x28] sm:$0xff] }
 0x27a   : > { %v4224_v30 = vld [vmem:[%s5559_s7 + $0x20] sm:$0xff] }
 0x27f   : > { %1241 = vmatpush.bf16.xpose.msrb.mxu1 %v1229_v33  ;;  %v1132_v33 = vadd.f32 %v4300_v31, %v4761_v17  ;;  %v1097_v17 = vld [vmem:[%s5565_s13] sm:$0xf] }
 0x285   : > { %3751 = vmatmul.msk.bf16.gmra.mxu0 %vm774_vm2, %v4720_v40 }
 0x2e2   : > { %v1009_v34 = vpop.f32.mrf.mxu0  ;;  %v1014_v36 = vpop.f32.mrf.mxu1 }
 0x2e3   : > { %v1018_v37 = vmul.f32 0.35355338, %v1009_v34  ;;  %v1020_v38 = vmul.f32 0.35355338, %v1014_v36  ;;  %v1130_v34 = vadd.f32 %v4300_v31, %v4757_v10  ;;  %v1365_v10 = vsel %vm1336_vm1, %v1097_v17, 0 }
 0x2e4   : > { %1374 = vmatpush.bf16.msrb.mxu0 %v1365_v10  ;;  %v3759_v17 = vld [vmem:[%s5565_s13 + $0x4] sm:$0xf] }
 0x2e5   : > { %v1022_v39 = vsel %vm1021_vm15, %v1018_v37, -inf  ;;  %v1029_v41 = vsel %vm1028_vm0, %v1020_v38, -inf  ;;  %v1218_v36 = vpack.c.bf16 %v1132_v33, %v1130_v34  ;;  %v1338_v10 = vsel %vm1336_vm1, %v3759_v17, 0 }
 0x2e6   : > { %1023 = vmax.xlane.f32.xlu0 %v1022_v39  ;;  %1030 = vmax.xlane.f32.xlu2 %v1029_v41 }
 0x2e7   : > { %1347 = vmatpush.bf16.msra.mxu3 %v1338_v10 }
 0x2ea   : > { %v1011_v42 = vpop.f32.mrf.mxu0  ;;  %v1016_v43 = vpop.f32.mrf.mxu1 }
 0x2eb   : > { %v1019_v44 = vmul.f32 0.35355338, %v1011_v42 }
 0x2ed   : > { %v1025_v45 = vsel %vm1021_vm15, %v1019_v44, -inf }
 0x2ee   : > { %1026 = vmax.xlane.f32.xlu1 %v1025_v45 }
 0x2f2   : > { %v1209_v46 = vpop.f32.mrf.mxu0 }
 0x2f3   : > { %v1210_v54 = vadd.f32 %v4302_v48, %v1209_v46 }
 0x2fa   : > { %v1211_v47 = vpop.f32.mrf.mxu0 }
 0x2fb   : > { %v1212_v52 = vadd.f32 %v4302_v48, %v1211_v47 }
 0x2fd   : > { %v1297_v56 = vpack.c.bf16 %v1212_v52, %v1210_v54 }
 0x302   : > { %v1214_v49 = vpop.f32.mrf.mxu0 }
 0x303   : > { %v1215_v50 = vadd.f32 %v4302_v48, %v1214_v49 }
 0x305   : > { %v1298_v51 = vpack.c.bf16 %v1215_v50, %v1215_v50 }
 0x307   : > { %v1306_v53 = vand.u32 %v1298_v51, %v4744_v0 }
 0x309   : > { %1314 = vmatpush.bf16.msra.mxu2 %v1306_v53 }
 0x30a   : > { %v1216_v55 = vpop.f32.mrf.mxu0 }
 0x30d   : > { %1315 = vmatpush.bf16.msra.mxu2 %v1297_v56 }
 0x359   : > { %v1024_v57 = vpop.xlane.xlu0 %1023  ;;  %v1031_v58 = vpop.xlane.xlu2 %1030 }
 0x35a   : > { %v1032_v59 = vsub.f32 %v1018_v37, %v1024_v57  ;;  %v1034_v60 = vsub.f32 %v1020_v38, %v1031_v58  ;;  %v1135_v37 = vadd.f32 %v4300_v31, %v4766_v20 }
 0x35c   : > { %v1035_v61 = vmul.f32 1.442695, %v1032_v59  ;;  %v1039_v62 = vmul.f32 1.442695, %v1034_v60  ;;  %v1219_v38 = vpack.c.bf16 %v1135_v37, %v1135_v37 }
 0x35e   : > { %4341 = vpow2.f32 %v1035_v61 }
 0x35f   : > { %4343 = vpow2.f32 %v1039_v62 }
 0x361   : > { %v1027_v63 = vpop.xlane.xlu1 %1026 }
 0x362   : > { %v1033_v1 = vsub.f32 %v1019_v44, %v1027_v63 }
 0x364   : > { %v4342_v2 = vpop.eup %4341  ;;  %v1037_v3 = vmul.f32 1.442695, %v1033_v1 }
 0x365   : > { %v4344_v4 = vpop.eup %4343  ;;  %v1041_v5 = vsel %vm1021_vm15, %v4342_v2, 0.0 }
 0x366   : > { %4345 = vpow2.f32 %v1037_v3  ;;  %1042 = vadd.xlane.f32.xlu0 %v1041_v5  ;;  %v1047_v6 = vsel %vm1028_vm0, %v4344_v4, 0.0 }
 0x367   : > { %1048 = vadd.xlane.f32.xlu2 %v1047_v6 }
 0x36c   : > { %v4346_v7 = vpop.eup %4345 }
 0x36d   : > { %v1044_v8 = vsel %vm1021_vm15, %v4346_v7, 0.0 }
 0x36e   : > { %1045 = vadd.xlane.f32.xlu1 %v1044_v8 }
 0x3d9   : > { %v1043_v9 = vpop.xlane.xlu0 %1042 }
 0x3da   : > { %4347 = vrcp.f32 %v1043_v9  ;;  %v1049_v11 = vpop.xlane.xlu2 %1048 }
 0x3db   : > { %4349 = vrcp.f32 %v1049_v11 }
 0x3e0   : > { %v4348_v12 = vpop.eup %4347 }
 0x3e1   : > { %v4350_v13 = vpop.eup %4349  ;;  %v1053_v15 = vmul.f32 %v4348_v12, %v4342_v2  ;;  %v1046_v16 = vpop.xlane.xlu1 %1045 }
 0x3e2   : > { %4351 = vrcp.f32 %v1046_v16  ;;  %v1055_v18 = vmul.f32 %v4350_v13, %v4344_v4 }
 0x3e3   : > { %v1056_v19 = vsel %vm1021_vm15, %v1053_v15, 0.0 }
 0x3e4   : > { %1059 = vst [vmem:[%s4788_s1] sm:$0xff] %v1056_v19  ;;  %v1058_v22 = vsel %vm1021_vm15, %v1055_v18, 0.0  ;;  %v1063_v28 = vpack.c.bf16 %v1055_v18, %v1055_v18  ;;  %v4227_v19 = vld [vmem:[%s5560_s8 + $0x28] sm:$0xff] }
 0x3e5   : > { %1061 = vst [vmem:[%s4788_s1 + $0x10] sm:$0x1] %v1058_v22  ;;  %1453 = vmatpush.bf16.msrb.mxu2 %v4227_v19  ;;  %v4226_v22 = vld [vmem:[%s5560_s8 + $0x20] sm:$0xff] }
 0x3e8   : > { %v4352_v24 = vpop.eup %4351 }
 0x3e9   : > { %v1054_v25 = vmul.f32 %v4352_v24, %v4346_v7  ;;  %1454 = vmatpush.bf16.msrb.mxu2 %v4226_v22 }
 0x3eb   : > { %v1057_v26 = vsel %vm1021_vm15, %v1054_v25, 0.0  ;;  %v1062_v27 = vpack.c.bf16 %v1054_v25, %v1053_v15 }
 0x3ec   : > { %1060 = vst [vmem:[%s4788_s1 + $0x8] sm:$0xff] %v1057_v26 }
 0x3ed   : > { %3705 = vmatmul.msk.bf16.vlgmr.msra.gmra.mxu1 %vm1021_vm15, %v1062_v27 }
 0x3ee   : > { %1413 = vmatpush.bf16.msra.mxu1 %v4225_v29 }
 0x3f2   : > { %1414 = vmatpush.bf16.msra.mxu1 %v4224_v30 }
 0x3fd   : > { %3706 = vmatmul.msk.bf16.gmra.mxu1 %vm1021_vm15, %v1063_v28 }
 0x40d   : > { %3752 = vmatmul.msk.bf16.vlgmr.msrb.gmra.mxu1 %vm987_vm14, %v1218_v36 }
 0x41d   : > { %3753 = vmatmul.msk.bf16.gmra.mxu1 %vm987_vm14, %v1219_v38 }
 0x42d   : > { %3777 = vmatmul.msk.bf16.vlgmr.msra.gmra.mxu1 %vm774_vm2, %v4711_v35 }
 0x43d   : > { %3778 = vmatmul.msk.bf16.gmra.mxu1 %vm774_vm2, %v4720_v40 }
 0x46a   : > { %v1086_v39 = vpop.f32.mrf.mxu1 }
 0x472   : > { %v1088_v41 = vpop.f32.mrf.mxu1 }
 0x473   : > { %v1095_v20 = vpack.c.bf16 %v1088_v41, %v1086_v39  ;;  %v4229_v41 = vld [vmem:[%s5561_s9 + $0x28] sm:$0xff] }
 0x474   : > { %1493 = vmatpush.bf16.msrb.mxu3 %v4229_v41 }
 0x475   : > { %3762 = vmatmul.msk.bf16.vlgmr.msrb.gmra.mxu0 %vm987_vm14, %v1095_v20  ;;  %v4228_v20 = vld [vmem:[%s5561_s9 + $0x20] sm:$0xff] }
 0x478   : > { %1494 = vmatpush.bf16.msrb.mxu3 %v4228_v20  ;;  %v3816_v20 = vld [vmem:[%s5565_s13 + $0x8] sm:$0xf] }
 0x47a   : > { %v1091_v42 = vpop.f32.mrf.mxu1 }
 0x47b   : > { %v1096_v44 = vpack.c.bf16 %v1091_v42, %v1091_v42 }
 0x482   : > { %v1093_v43 = vpop.f32.mrf.mxu1 }
 0x485   : > { %3763 = vmatmul.msk.bf16.gmra.mxu0 %vm987_vm14, %v1096_v44 }
 0x48a   : > { %v1243_v45 = vpop.f32.mrf.mxu1 }
 0x48b   : > { %v1252_v46 = vmul.f32 0.35355338, %v1243_v45 }
 0x48d   : > { %v1255_v47 = vsel %vm1021_vm15, %v1252_v46, -inf }
 0x48e   : > { %1256 = vmax.xlane.f32.xlu0 %v1255_v47  ;;  %v4231_v47 = vld [vmem:[%s5559_s7 + $0x38] sm:$0xff] }
 0x492   : > { %v1245_v48 = vpop.f32.mrf.mxu1 }
 0x493   : > { %v1253_v49 = vmul.f32 0.35355338, %v1245_v48 }
 0x495   : > { %v1258_v50 = vsel %vm1021_vm15, %v1253_v49, -inf }
 0x496   : > { %1259 = vmax.xlane.f32.xlu1 %v1258_v50 }
 0x49a   : > { %v1248_v51 = vpop.f32.mrf.mxu1 }
 0x49b   : > { %v1254_v52 = vmul.f32 0.35355338, %v1248_v51  ;;  %v4304_v51 = vld [vmem:[%s5563_s11 + $0x2] ss:$0 sm:$0xff] }
 0x49d   : > { %v1261_v53 = vsel %vm1028_vm0, %v1254_v52, -inf }
 0x49e   : > { %1262 = vmax.xlane.f32.xlu2 %v1261_v53 }
 0x4a2   : > { %v1250_v54 = vpop.f32.mrf.mxu1 }
 0x4aa   : > { %v4825_v55 = vpop.f32.mrf.mxu1 }
 0x4b2   : > { %v4827_v56 = vpop.f32.mrf.mxu1 }
 0x4ba   : > { %v4829_v57 = vpop.f32.mrf.mxu1 }
 0x4c2   : > { %v1423_v58 = vpop.f32.mrf.mxu1 }
 0x4f2   : > { %v4831_v59 = vpop.f32.mrf.mxu0 }
 0x4fa   : > { %v4833_v60 = vpop.f32.mrf.mxu0 }
 0x501   : > { %v1257_v61 = vpop.xlane.xlu0 %1256 }
 0x502   : > { %v1264_v62 = vsub.f32 %v1252_v46, %v1257_v61  ;;  %v4835_v63 = vpop.f32.mrf.mxu0 }
 0x504   : > { %v1267_v1 = vmul.f32 1.442695, %v1264_v62 }
 0x506   : > { %4353 = vpow2.f32 %v1267_v1 }
 0x509   : > { %v1260_v2 = vpop.xlane.xlu1 %1259 }
 0x50a   : > { %v1265_v3 = vsub.f32 %v1253_v49, %v1260_v2  ;;  %v1383_v4 = vpop.f32.mrf.mxu0  ;;  %v4230_v49 = vld [vmem:[%s5559_s7 + $0x30] sm:$0xff] }
 0x50b   : > { %v4303_v4 = vld [vmem:[%s5562_s10 + $0x2] ss:$0 sm:$0xff] }
 0x50c   : > { %v4354_v5 = vpop.eup %4353  ;;  %v1269_v6 = vmul.f32 1.442695, %v1265_v3  ;;  %v4233_v3 = vld [vmem:[%s5560_s8 + $0x38] sm:$0xff] }
 0x50d   : > { %v1273_v7 = vsel %vm1021_vm15, %v4354_v5, 0.0 }
 0x50e   : > { %4355 = vpow2.f32 %v1269_v6  ;;  %1274 = vadd.xlane.f32.xlu0 %v1273_v7  ;;  %v1419_v6 = vadd.f32 %v4303_v4, %v4827_v56  ;;  %v4232_v7 = vld [vmem:[%s5560_s8 + $0x30] sm:$0xff] }
 0x511   : > { %v1263_v8 = vpop.xlane.xlu2 %1262 }
 0x512   : > { %v1266_v9 = vsub.f32 %v1254_v52, %v1263_v8  ;;  %v1417_v8 = vadd.f32 %v4303_v4, %v4825_v55 }
 0x514   : > { %v4356_v11 = vpop.eup %4355  ;;  %v1271_v12 = vmul.f32 1.442695, %v1266_v9  ;;  %v1505_v9 = vpack.c.bf16 %v1419_v6, %v1417_v8 }
 0x515   : > { %v1276_v13 = vsel %vm1021_vm15, %v4356_v11, 0.0 }
 0x516   : > { %4357 = vpow2.f32 %v1271_v12  ;;  %1277 = vadd.xlane.f32.xlu1 %v1276_v13 }
 0x51c   : > { %v4358_v15 = vpop.eup %4357 }
 0x51d   : > { %v1279_v16 = vsel %vm1028_vm0, %v4358_v15, 0.0 }
 0x51e   : > { %1280 = vadd.xlane.f32.xlu2 %v1279_v16 }
 0x581   : > { %v1275_v18 = vpop.xlane.xlu0 %1274 }
 0x582   : > { %4359 = vrcp.f32 %v1275_v18  ;;  %v4305_v18 = vld [vmem:[%s5564_s12 + $0x2] ss:$0 sm:$0xff] }
 0x588   : > { %v4360_v24 = vpop.eup %4359 }
 0x589   : > { %v1285_v25 = vmul.f32 %v4360_v24, %v4354_v5  ;;  %v1278_v26 = vpop.xlane.xlu1 %1277 }
 0x58a   : > { %4361 = vrcp.f32 %v1278_v26 }
 0x58b   : > { %v1288_v27 = vsel %vm1021_vm15, %v1285_v25, 0.0 }
 0x58c   : > { %3754 = vst [vmem:[%s4788_s1 + $0x18] sm:$0xff] %v1288_v27 }
 0x590   : > { %v4362_v28 = vpop.eup %4361 }
 0x591   : > { %v1286_v29 = vmul.f32 %v4362_v28, %v4356_v11  ;;  %v1281_v30 = vpop.xlane.xlu2 %1280  ;;  %v1422_v11 = vadd.f32 %v4303_v4, %v4829_v57 }
 0x592   : > { %4363 = vrcp.f32 %v1281_v30 }
 0x593   : > { %v1289_v31 = vsel %vm1021_vm15, %v1286_v29, 0.0  ;;  %v1295_v33 = vpack.c.bf16 %v1286_v29, %v1285_v25  ;;  %v1506_v12 = vpack.c.bf16 %v1422_v11, %v1422_v11 }
 0x594   : > { %3755 = vst [vmem:[%s4788_s1 + $0x20] sm:$0xff] %v1289_v31 }
 0x595   : > { %3757 = vmatmul.msk.bf16.vlgmr.msra.gmra.mxu2 %vm1021_vm15, %v1295_v33 }
 0x598   : > { %v4364_v34 = vpop.eup %4363 }
 0x599   : > { %v1287_v36 = vmul.f32 %v4364_v34, %v4358_v15 }
 0x59b   : > { %v1290_v37 = vsel %vm1021_vm15, %v1287_v36, 0.0  ;;  %v1296_v38 = vpack.c.bf16 %v1287_v36, %v1287_v36 }
 0x59c   : > { %3756 = vst [vmem:[%s4788_s1 + $0x28] sm:$0x1] %v1290_v37 }
 0x5a5   : > { %3758 = vmatmul.msk.bf16.gmra.mxu2 %vm1021_vm15, %v1296_v38 }
 0x5b5   : > { %3792 = vmatmul.msk.bf16.vlgmr.msrb.gmra.mxu2 %vm774_vm2, %v4711_v35 }
 0x5c5   : > { %3793 = vmatmul.msk.bf16.gmra.mxu2 %vm774_vm2, %v4720_v40 }
 0x618   : > { %v1317_v39 = vpop.f32.mrf.mxu2 }
 0x620   : > { %v1319_v42 = vpop.f32.mrf.mxu2 }
 0x621   : > { %v1326_v43 = vpack.c.bf16 %v1319_v42, %v1317_v39  ;;  %v1624_v42 = vsel %vm1336_vm1, %v3816_v20, 0 }
 0x622   : > { %1633 = vmatpush.bf16.msra.mxu2 %v1624_v42 }
 0x623   : > { %3760 = vmatmul.msk.bf16.vlgmr.msra.gmra.mxu3 %vm987_vm14, %v1326_v43 }
 0x624   : > { %1675 = vmatpush.bf16.msra.mxu3 %v4231_v47 }
 0x628   : > { %v1322_v44 = vpop.f32.mrf.mxu2  ;;  %1676 = vmatpush.bf16.msra.mxu3 %v4230_v49 }
 0x629   : > { %v1327_v46 = vpack.c.bf16 %v1322_v44, %v1322_v44 }
 0x630   : > { %v1324_v45 = vpop.f32.mrf.mxu2 }
 0x633   : > { %3761 = vmatmul.msk.bf16.gmra.mxu3 %vm987_vm14, %v1327_v46 }
 0x638   : > { %v1456_v48 = vpop.f32.mrf.mxu2 }
 0x639   : > { %v1457_v62 = vadd.f32 %v4304_v51, %v1456_v48  ;;  %v4307_v48 = vld [vmem:[%s5563_s11 + $0x3] ss:$0 sm:$0xff] }
 0x640   : > { %v1458_v50 = vpop.f32.mrf.mxu2 }
 0x641   : > { %v1459_v58 = vadd.f32 %v4304_v51, %v1458_v50 }
 0x643   : > { %3807 = vmatmul.msk.bf16.vlgmr.msrb.gmra.mxu3 %vm774_vm2, %v4711_v35  ;;  %v1507_v2 = vpack.c.bf16 %v1459_v58, %v1457_v62 }
 0x645   : > { %v1516_v5 = vsel %vm987_vm14, %v1507_v2, 0 }
 0x648   : > { %v1461_v52 = vpop.f32.mrf.mxu2 }
 0x649   : > { %v1462_v53 = vadd.f32 %v4304_v51, %v1461_v52 }
 0x64b   : > { %v1508_v54 = vpack.c.bf16 %v1462_v53, %v1462_v53 }
 0x64d   : > { %v1519_v61 = vsel %vm987_vm14, %v1508_v54, 0 }
 0x64e   : > { %1527 = vmatpush.bf16.xpose.msra.mxu0 %v1519_v61 }
 0x650   : > { %v1463_v1 = vpop.f32.mrf.mxu2 }
 0x653   : > { %3808 = vmatmul.msk.bf16.gmra.mxu3 %vm774_vm2, %v4720_v40 }
 0x656   : > { %1528 = vmatpush.bf16.xpose.msra.mxu0 %v1516_v5 }
 0x65d   : > { %3809 = vmatmul.msk.bf16.vlgmr.msra.gmra.mxu0 %vm987_vm14, %v1505_v9 }
 0x65e   : > { %1715 = vmatpush.bf16.msrb.mxu0 %v4233_v3 }
 0x662   : > { %1716 = vmatpush.bf16.msrb.mxu0 %v4232_v7 }
 0x663   : > { %3832 = vmatmul.msk.bf16.vlgmr.msra.gmra.mxu3 %vm774_vm2, %v4711_v35 }
 0x66d   : > { %3810 = vmatmul.msk.bf16.gmra.mxu0 %vm987_vm14, %v1506_v12 }
 0x673   : > { %3833 = vmatmul.msk.bf16.gmra.mxu3 %vm774_vm2, %v4720_v40 }
 0x67d   : > { %3847 = vmatmul.msk.bf16.vlgmr.msrb.gmra.mxu0 %vm774_vm2, %v4711_v35 }
 0x68d   : > { %3848 = vmatmul.msk.bf16.gmra.mxu0 %vm774_vm2, %v4720_v40 }
 0x6a6   : > { %v4907_v55 = vpop.f32.mrf.mxu3 }
 0x6ae   : > { %v4909_v56 = vpop.f32.mrf.mxu3 }
 0x6b6   : > { %v4911_v13 = vpop.f32.mrf.mxu3 }
 0x6be   : > { %v1356_v15 = vpop.f32.mrf.mxu3 }
 0x6c6   : > { %v1496_v57 = vpop.f32.mrf.mxu3 }
 0x6c7   : > { %v1497_v29 = vadd.f32 %v4305_v18, %v1496_v57 }
 0x6ce   : > { %v1498_v16 = vpop.f32.mrf.mxu3 }
 0x6cf   : > { %v1499_v26 = vadd.f32 %v4305_v18, %v1498_v16 }
 0x6d1   : > { %v1584_v33 = vpack.c.bf16 %v1499_v26, %v1497_v29 }
 0x6d6   : > { %v1501_v19 = vpop.f32.mrf.mxu3 }
 0x6d7   : > { %v1502_v22 = vadd.f32 %v4305_v18, %v1501_v19 }
 0x6d9   : > { %v1585_v24 = vpack.c.bf16 %v1502_v22, %v1502_v22  ;;  %v4235_v22 = vld [vmem:[%s5561_s9 + $0x38] sm:$0xff] }
 0x6da   : > { %v1530_v25 = vpop.f32.mrf.mxu0 }
 0x6db   : > { %v1593_v27 = vand.u32 %v1585_v24, %v4744_v0  ;;  %v1539_v28 = vmul.f32 0.35355338, %v1530_v25  ;;  %v4234_v24 = vld [vmem:[%s5561_s9 + $0x30] sm:$0xff] }
 0x6dd   : > { %1601 = vmatpush.bf16.msrb.mxu1 %v1593_v27  ;;  %v1542_v30 = vsel %vm1021_vm15, %v1539_v28, -inf }
 0x6de   : > { %v1503_v31 = vpop.f32.mrf.mxu3  ;;  %1543 = vmax.xlane.f32.xlu0 %v1542_v30 }
 0x6e1   : > { %1602 = vmatpush.bf16.msrb.mxu1 %v1584_v33 }
 0x6e2   : > { %v1532_v34 = vpop.f32.mrf.mxu0 }
 0x6e3   : > { %v1540_v36 = vmul.f32 0.35355338, %v1532_v34 }
 0x6e5   : > { %v1545_v37 = vsel %vm1021_vm15, %v1540_v36, -inf  ;;  %1755 = vmatpush.bf16.msra.mxu1 %v4235_v22 }
 0x6e6   : > { %v4919_v38 = vpop.f32.mrf.mxu3  ;;  %1546 = vmax.xlane.f32.xlu1 %v1545_v37 }
 0x6e9   : > { %1756 = vmatpush.bf16.msra.mxu1 %v4234_v24 }
 0x6ea   : > { %v1535_v17 = vpop.f32.mrf.mxu0 }
 0x6eb   : > { %v1541_v10 = vmul.f32 0.35355338, %v1535_v17 }
 0x6ed   : > { %v1548_v39 = vsel %vm1028_vm0, %v1541_v10, -inf }
 0x6ee   : > { %v4922_v41 = vpop.f32.mrf.mxu3  ;;  %1549 = vmax.xlane.f32.xlu2 %v1548_v39 }
 0x6f2   : > { %v1537_v43 = vpop.f32.mrf.mxu0 }
 0x6f6   : > { %v4928_v44 = vpop.f32.mrf.mxu3 }
 0x6fa   : > { %v1718_v45 = vpop.f32.mrf.mxu0 }
 0x6fb   : > { %v1719_v54 = vadd.f32 %v4307_v48, %v1718_v45 }
 0x6fe   : > { %v1685_v46 = vpop.f32.mrf.mxu3 }
 0x702   : > { %v1720_v47 = vpop.f32.mrf.mxu0 }
 0x703   : > { %v1721_v52 = vadd.f32 %v4307_v48, %v1720_v47 }
 0x705   : > { %v1769_v61 = vpack.c.bf16 %v1721_v52, %v1719_v54 }
 0x707   : > { %v1778_v62 = vsel %vm987_vm14, %v1769_v61, 0 }
 0x70a   : > { %v1723_v49 = vpop.f32.mrf.mxu0 }
 0x70b   : > { %v1724_v50 = vadd.f32 %v4307_v48, %v1723_v49  ;;  %v4306_v48 = vld [vmem:[%s5562_s10 + $0x3] ss:$0 sm:$0xff] }
 0x70c   : > { %v1679_v49 = vadd.f32 %v4306_v48, %v4919_v38 }
 0x70d   : > { %v1770_v51 = vpack.c.bf16 %v1724_v50, %v1724_v50 }
 0x70f   : > { %v1781_v53 = vsel %vm987_vm14, %v1770_v51, 0  ;;  %v4308_v51 = vld [vmem:[%s5564_s12 + $0x3] ss:$0 sm:$0xff] }
 0x710   : > { %1789 = vmatpush.bf16.xpose.msrb.mxu2 %v1781_v53 }
 0x712   : > { %v1725_v58 = vpop.f32.mrf.mxu0 }
 0x713   : > { %v1684_v58 = vadd.f32 %v4306_v48, %v4928_v44  ;;  %v1382_v44 = vadd.f32 %v4835_v63, %v4911_v13 }
 0x715   : > { %v1768_v38 = vpack.c.bf16 %v1684_v58, %v1684_v58 }
 0x718   : > { %1790 = vmatpush.bf16.xpose.msrb.mxu2 %v1778_v62 }
 0x751   : > { %v1544_v1 = vpop.xlane.xlu0 %1543 }
 0x752   : > { %v1551_v2 = vsub.f32 %v1539_v28, %v1544_v1 }
 0x754   : > { %v1554_v3 = vmul.f32 1.442695, %v1551_v2 }
 0x756   : > { %4365 = vpow2.f32 %v1554_v3  ;;  %v1377_v3 = vadd.f32 %v4831_v59, %v4907_v55 }
 0x759   : > { %v1547_v4 = vpop.xlane.xlu1 %1546 }
 0x75a   : > { %v1552_v5 = vsub.f32 %v1540_v36, %v1547_v4 }
 0x75c   : > { %v4366_v6 = vpop.eup %4365  ;;  %v1556_v7 = vmul.f32 1.442695, %v1552_v5 }
 0x75d   : > { %v1560_v8 = vsel %vm1021_vm15, %v4366_v6, 0.0 }
 0x75e   : > { %4367 = vpow2.f32 %v1556_v7  ;;  %1561 = vadd.xlane.f32.xlu0 %v1560_v8 }
 0x761   : > { %v1550_v9 = vpop.xlane.xlu2 %1549 }
 0x762   : > { %v1553_v11 = vsub.f32 %v1541_v10, %v1550_v9 }
 0x764   : > { %v4368_v12 = vpop.eup %4367  ;;  %v1558_v15 = vmul.f32 1.442695, %v1553_v11 }
 0x765   : > { %v1563_v57 = vsel %vm1021_vm15, %v4368_v12, 0.0 }
 0x766   : > { %4369 = vpow2.f32 %v1558_v15  ;;  %1564 = vadd.xlane.f32.xlu1 %v1563_v57 }
 0x76c   : > { %v4370_v16 = vpop.eup %4369 }
 0x76d   : > { %v1566_v18 = vsel %vm1028_vm0, %v4370_v16, 0.0 }
 0x76e   : > { %1567 = vadd.xlane.f32.xlu2 %v1566_v18 }
 0x7d1   : > { %v1562_v19 = vpop.xlane.xlu0 %1561 }
 0x7d2   : > { %4371 = vrcp.f32 %v1562_v19 }
 0x7d8   : > { %v4372_v25 = vpop.eup %4371 }
 0x7d9   : > { %v1572_v26 = vmul.f32 %v4372_v25, %v4366_v6  ;;  %v1565_v27 = vpop.xlane.xlu1 %1564 }
 0x7da   : > { %4373 = vrcp.f32 %v1565_v27 }
 0x7db   : > { %v1575_v28 = vsel %vm1021_vm15, %v1572_v26, 0.0 }
 0x7dc   : > { %3811 = vst [vmem:[%s4788_s1 + $0x30] sm:$0xff] %v1575_v28 }
 0x7e0   : > { %v4374_v29 = vpop.eup %4373 }
 0x7e1   : > { %v1573_v30 = vmul.f32 %v4374_v29, %v4368_v12  ;;  %v1568_v31 = vpop.xlane.xlu2 %1567 }
 0x7e2   : > { %4375 = vrcp.f32 %v1568_v31 }
 0x7e3   : > { %v1576_v33 = vsel %vm1021_vm15, %v1573_v30, 0.0  ;;  %v1582_v34 = vpack.c.bf16 %v1573_v30, %v1572_v26 }
 0x7e4   : > { %3812 = vst [vmem:[%s4788_s1 + $0x38] sm:$0xff] %v1576_v33 }
 0x7e5   : > { %3814 = vmatmul.msk.bf16.vlgmr.msrb.gmra.mxu1 %vm1021_vm15, %v1582_v34 }
 0x7e8   : > { %v4376_v36 = vpop.eup %4375 }
 0x7e9   : > { %v1574_v37 = vmul.f32 %v4376_v36, %v4370_v16 }
 0x7eb   : > { %v1577_v17 = vsel %vm1021_vm15, %v1574_v37, 0.0  ;;  %v1583_v10 = vpack.c.bf16 %v1574_v37, %v1574_v37 }
 0x7ec   : > { %3813 = vst [vmem:[%s4788_s1 + $0x40] sm:$0x1] %v1577_v17 }
 0x7f5   : > { %3815 = vmatmul.msk.bf16.gmra.mxu1 %vm1021_vm15, %v1583_v10 }
 0x805   : > { %3862 = vmatmul.msk.bf16.vlgmr.msra.gmra.mxu1 %vm774_vm2, %v4711_v35  ;;  %v1681_v35 = vadd.f32 %v4306_v48, %v4922_v41 }
 0x807   : > { %v1767_v50 = vpack.c.bf16 %v1681_v35, %v1679_v49 }
 0x815   : > { %3863 = vmatmul.msk.bf16.gmra.mxu1 %vm774_vm2, %v4720_v40 }
 0x862   : > { %v1604_v39 = vpop.f32.mrf.mxu1 }
 0x86a   : > { %v1606_v20 = vpop.f32.mrf.mxu1 }
 0x86b   : > { %v1613_v42 = vpack.c.bf16 %v1606_v20, %v1604_v39  ;;  %v3871_v39 = vld [vmem:[%s5565_s13 + $0xc] sm:$0xf] }
 0x86c   : > { %v1886_v20 = vsel %vm1336_vm1, %v3871_v39, 0 }
 0x86d   : > { %3817 = vmatmul.msk.bf16.vlgmr.msra.gmra.mxu2 %vm987_vm14, %v1613_v42  ;;  %1895 = vmatpush.bf16.msra.mxu0 %v1886_v20 }
 0x872   : > { %v1609_v43 = vpop.f32.mrf.mxu1 }
 0x873   : > { %v1614_v46 = vpack.c.bf16 %v1609_v43, %v1609_v43 }
 0x87a   : > { %v1611_v45 = vpop.f32.mrf.mxu1 }
 0x87d   : > { %3818 = vmatmul.msk.bf16.gmra.mxu2 %vm987_vm14, %v1614_v46 }
 0x882   : > { %v1758_v47 = vpop.f32.mrf.mxu1 }
 0x883   : > { %v1759_v1 = vadd.f32 %v4308_v51, %v1758_v47 }
 0x88a   : > { %v1760_v40 = vpop.f32.mrf.mxu1 }
 0x88b   : > { %v1761_v61 = vadd.f32 %v4308_v51, %v1760_v40 }
 0x88d   : > { %3864 = vmatmul.msk.bf16.vlgmr.msrb.gmra.mxu2 %vm987_vm14, %v1767_v50  ;;  %v1846_v2 = vpack.c.bf16 %v1761_v61, %v1759_v1 }
 0x892   : > { %v1763_v52 = vpop.f32.mrf.mxu1 }
 0x893   : > { %v1764_v53 = vadd.f32 %v4308_v51, %v1763_v52 }
 0x895   : > { %v1847_v54 = vpack.c.bf16 %v1764_v53, %v1764_v53 }
 0x897   : > { %v1855_v62 = vand.u32 %v1847_v54, %v4744_v0 }
 0x899   : > { %1863 = vmatpush.bf16.msrb.mxu3 %v1855_v62 }
 0x89a   : > { %v1765_v41 = vpop.f32.mrf.mxu1 }
 0x89d   : > { %3865 = vmatmul.msk.bf16.gmra.mxu2 %vm987_vm14, %v1768_v38  ;;  %1864 = vmatpush.bf16.msrb.mxu3 %v1846_v2 }
 0x8f0   : > { %v1635_v4 = vpop.f32.mrf.mxu2 }
 0x8f1   : > { %v4972_v5 = vadd.f32 %v1635_v4, %v1377_v3  ;;  %v4309_v3 = vld [vmem:[%s5566_s14] ss:$0 sm:$0xff] }
 0x8f8   : > { %v4974_v6 = vpop.f32.mrf.mxu2 }
 0x900   : > { %v1640_v7 = vpop.f32.mrf.mxu2 }
 0x901   : > { %v4978_v8 = vadd.f32 %v1640_v7, %v1382_v44  ;;  %v1379_v44 = vadd.f32 %v4833_v60, %v4909_v56 }
 0x908   : > { %v1642_v9 = vpop.f32.mrf.mxu2 }
 0x909   : > { %v1645_v9 = vadd.f32 %v4974_v6, %v1379_v44 }
 0x910   : > { %v1792_v11 = vpop.f32.mrf.mxu2 }
 0x911   : > { %v1801_v12 = vmul.f32 0.35355338, %v1792_v11 }
 0x913   : > { %v1804_v15 = vsel %vm1021_vm15, %v1801_v12, -inf }
 0x914   : > { %1805 = vmax.xlane.f32.xlu0 %v1804_v15 }
 0x918   : > { %v1794_v57 = vpop.f32.mrf.mxu2 }
 0x919   : > { %v1802_v16 = vmul.f32 0.35355338, %v1794_v57 }
 0x91b   : > { %v1807_v59 = vsel %vm1021_vm15, %v1802_v16, -inf }
 0x91c   : > { %1808 = vmax.xlane.f32.xlu1 %v1807_v59 }
 0x920   : > { %v1797_v55 = vpop.f32.mrf.mxu2 }
 0x921   : > { %v1803_v18 = vmul.f32 0.35355338, %v1797_v55 }
 0x923   : > { %v1810_v19 = vsel %vm1028_vm0, %v1803_v18, -inf }
 0x924   : > { %1811 = vmax.xlane.f32.xlu2 %v1810_v19 }
 0x928   : > { %v1799_v63 = vpop.f32.mrf.mxu2 }
 0x987   : > { %v1806_v13 = vpop.xlane.xlu0 %1805 }
 0x988   : > { %v1813_v22 = vsub.f32 %v1801_v12, %v1806_v13 }
 0x98a   : > { %v1816_v24 = vmul.f32 1.442695, %v1813_v22 }
 0x98c   : > { %4377 = vpow2.f32 %v1816_v24 }
 0x98f   : > { %v1809_v25 = vpop.xlane.xlu1 %1808 }
 0x990   : > { %v1814_v26 = vsub.f32 %v1802_v16, %v1809_v25 }
 0x992   : > { %v4378_v27 = vpop.eup %4377  ;;  %v1818_v28 = vmul.f32 1.442695, %v1814_v26 }
 0x993   : > { %v1822_v29 = vsel %vm1021_vm15, %v4378_v27, 0.0 }
 0x994   : > { %4379 = vpow2.f32 %v1818_v28  ;;  %1823 = vadd.xlane.f32.xlu0 %v1822_v29 }
 0x997   : > { %v1812_v30 = vpop.xlane.xlu2 %1811 }
 0x998   : > { %v1815_v31 = vsub.f32 %v1803_v18, %v1812_v30 }
 0x99a   : > { %v4380_v33 = vpop.eup %4379  ;;  %v1820_v34 = vmul.f32 1.442695, %v1815_v31  ;;  %v4237_v31 = vld [vmem:[%s5569_s17 + $0x8] sm:$0xff] }
 0x99b   : > { %v1825_v36 = vsel %vm1021_vm15, %v4380_v33, 0.0  ;;  %2033 = vmatpush.bf16.msrb.mxu1 %v4237_v31 }
 0x99c   : > { %4381 = vpow2.f32 %v1820_v34  ;;  %1826 = vadd.xlane.f32.xlu1 %v1825_v36 }
 0x9a2   : > { %v4382_v37 = vpop.eup %4381 }
 0x9a3   : > { %v1828_v17 = vsel %vm1028_vm0, %v4382_v37, 0.0 }
 0x9a4   : > { %1829 = vadd.xlane.f32.xlu2 %v1828_v17 }
 0xa07   : > { %v1824_v10 = vpop.xlane.xlu0 %1823 }
 0xa08   : > { %4383 = vrcp.f32 %v1824_v10 }
 0xa0e   : > { %v4384_v42 = vpop.eup %4383 }
 0xa0f   : > { %v1834_v43 = vmul.f32 %v4384_v42, %v4378_v27  ;;  %v1827_v45 = vpop.xlane.xlu1 %1826 }
 0xa10   : > { %4385 = vrcp.f32 %v1827_v45 }
 0xa11   : > { %v1837_v46 = vsel %vm1021_vm15, %v1834_v43, 0.0 }
 0xa12   : > { %3866 = vst [vmem:[%s4788_s1 + $0x48] sm:$0xff] %v1837_v46 }
 0xa16   : > { %v4386_v47 = vpop.eup %4385 }
 0xa17   : > { %v1835_v48 = vmul.f32 %v4386_v47, %v4380_v33  ;;  %v1830_v35 = vpop.xlane.xlu2 %1829 }
 0xa18   : > { %4387 = vrcp.f32 %v1830_v35 }
 0xa19   : > { %v1838_v49 = vsel %vm1021_vm15, %v1835_v48, 0.0  ;;  %v1844_v40 = vpack.c.bf16 %v1835_v48, %v1834_v43 }
 0xa1a   : > { %3867 = vst [vmem:[%s4788_s1 + $0x50] sm:$0xff] %v1838_v49 }
 0xa1b   : > { %3869 = vmatmul.msk.bf16.vlgmr.msrb.gmra.mxu3 %vm1021_vm15, %v1844_v40 }
 0xa1e   : > { %v4388_v50 = vpop.eup %4387 }
 0xa1f   : > { %v1836_v51 = vmul.f32 %v4388_v50, %v4382_v37  ;;  %v4236_v37 = vld [vmem:[%s5569_s17] sm:$0xff] }
 0xa20   : > { %2034 = vmatpush.bf16.msrb.mxu1 %v4236_v37 }
 0xa21   : > { %v1839_v52 = vsel %vm1021_vm15, %v1836_v51, 0.0  ;;  %v1845_v53 = vpack.c.bf16 %v1836_v51, %v1836_v51 }
 0xa22   : > { %3868 = vst [vmem:[%s4788_s1 + $0x58] sm:$0x1] %v1839_v52 }
 0xa2b   : > { %3870 = vmatmul.msk.bf16.gmra.mxu3 %vm1021_vm15, %v1845_v53 }
 0xa9e   : > { %v1866_v54 = vpop.f32.mrf.mxu3 }
 0xaa6   : > { %v1868_v58 = vpop.f32.mrf.mxu3 }
 0xaa7   : > { %v1875_v61 = vpack.c.bf16 %v1868_v58, %v1866_v54 }
 0xaa9   : > { %3872 = vmatmul.msk.bf16.vlgmr.msra.gmra.mxu0 %vm987_vm14, %v1875_v61  ;;  %v4310_v61 = vld [vmem:[%s5567_s15] ss:$0 sm:$0xff] }
 0xaae   : > { %v1871_v62 = vpop.f32.mrf.mxu3 }
 0xaaf   : > { %v1876_v41 = vpack.c.bf16 %v1871_v62, %v1871_v62 }
 0xab6   : > { %v1873_v1 = vpop.f32.mrf.mxu3 }
 0xab9   : > { %3873 = vmatmul.msk.bf16.gmra.mxu0 %vm987_vm14, %v1876_v41 }
 0xb26   : > { %v1897_v38 = vpop.f32.mrf.mxu0 }
 0xb27   : > { %v1906_v2 = vadd.f32 %v1897_v38, %v4972_v5 }
 0xb29   : > { %v1909_v4 = vadd.f32 %v1906_v2, %v4628_v14 }
 0xb2b   : > { %v5007_v7 = vadd.f32 %v4309_v3, %v1909_v4 }
 0xb2d   : > { %v1921_v11 = vsel %vm774_vm2, %v5007_v7, 0.0 }
 0xb2e   : > { %1922 = vadd.xlane.f32.xlu0 %v1921_v11  ;;  %v1899_v12 = vpop.f32.mrf.mxu0 }
 0xb2f   : > { %v1907_v15 = vadd.f32 %v1899_v12, %v1645_v9 }
 0xb31   : > { %v1910_v5 = vadd.f32 %v1907_v15, %v4641_v23 }
 0xb33   : > { %v5013_v57 = vadd.f32 %v4309_v3, %v1910_v5 }
 0xb35   : > { %v1924_v14 = vsel %vm774_vm2, %v5013_v57, 0.0 }
 0xb36   : > { %1925 = vadd.xlane.f32.xlu1 %v1924_v14  ;;  %v1902_v16 = vpop.f32.mrf.mxu0 }
 0xb37   : > { %v1908_v60 = vadd.f32 %v1902_v16, %v4978_v8 }
 0xb39   : > { %v1911_v56 = vadd.f32 %v1908_v60, %v4638_v21 }
 0xb3b   : > { %v5019_v6 = vadd.f32 %v4309_v3, %v1911_v56  ;;  %v4311_v3 = vld [vmem:[%s5568_s16] ss:$0 sm:$0xff] }
 0xb3d   : > { %v1927_v59 = vsel %vm781_vm3, %v5019_v6, 0.0 }
 0xb3e   : > { %1928 = vadd.xlane.f32.xlu2 %v1927_v59  ;;  %v1904_v55 = vpop.f32.mrf.mxu0 }
 0xba1   : > { %v1923_v18 = vpop.xlane.xlu0 %1922 }
 0xba2   : > { %v1930_v23 = vmul.f32 %v1923_v18, %v4647_v32 }
 0xba4   : > { %v1933_v19 = vsub.f32 %v5007_v7, %v1930_v23  ;;  %v4245_v23 = vld [vmem:[%s5571_s19 + $0x38] sm:$0xff] }
 0xba5   : > { %2142 = vmatpush.bf16.msra.mxu2 %v4245_v23 }
 0xba6   : > { %v1936_v63 = vmul.f32 %v1933_v19, %v1933_v19 }
 0xba8   : > { %v1939_v13 = vsel %vm774_vm2, %v1936_v63, 0.0  ;;  %v4243_v63 = vld [vmem:[%s5571_s19 + $0x28] sm:$0xff] }
 0xba9   : > { %1940 = vadd.xlane.f32.xlu0 %v1939_v13  ;;  %v1926_v22 = vpop.xlane.xlu1 %1925  ;;  %v4242_v13 = vld [vmem:[%s5571_s19 + $0x20] sm:$0xff] }
 0xbaa   : > { %v1931_v8 = vmul.f32 %v1926_v22, %v4647_v32  ;;  %v4241_v22 = vld [vmem:[%s5571_s19 + $0x18] sm:$0xff] }
 0xbac   : > { %v1934_v21 = vsub.f32 %v5013_v57, %v1931_v8  ;;  %v4240_v8 = vld [vmem:[%s5571_s19 + $0x10] sm:$0xff] }
 0xbae   : > { %v1937_v24 = vmul.f32 %v1934_v21, %v1934_v21 }
 0xbb0   : > { %v1942_v25 = vsel %vm774_vm2, %v1937_v24, 0.0  ;;  %v4312_v24 = vld [vmem:[%s5570_s18] ss:$0 sm:$0xff] }
 0xbb1   : > { %1943 = vadd.xlane.f32.xlu1 %v1942_v25  ;;  %v1929_v26 = vpop.xlane.xlu2 %1928 }
 0xbb2   : > { %v1932_v27 = vmul.f32 %v1929_v26, %v4647_v32  ;;  %v4238_v26 = vld [vmem:[%s5571_s19] sm:$0xff] }
 0xbb4   : > { %v1935_v28 = vsub.f32 %v5019_v6, %v1932_v27 }
 0xbb6   : > { %v1938_v29 = vmul.f32 %v1935_v28, %v1935_v28 }
 0xbb8   : > { %v1945_v30 = vsel %vm781_vm3, %v1938_v29, 0.0 }
 0xbb9   : > { %1946 = vadd.xlane.f32.xlu2 %v1945_v30 }
 0xc1c   : > { %v1941_v33 = vpop.xlane.xlu0 %1940 }
 0xc1d   : > { %v1948_v34 = vmul.f32 %v1941_v33, %v4647_v32 }
 0xc1f   : > { %v1951_v36 = vadd.f32 1e-05, %v1948_v34 }
 0xc21   : > { %4389 = vrsqrt.f32 %v1951_v36  ;;  %vm1960_vm5 = vweird.f32 %v1951_v36 }
 0xc24   : > { %v1944_v17 = vpop.xlane.xlu1 %1943 }
 0xc25   : > { %v1949_v10 = vmul.f32 %v1944_v17, %v4647_v32 }
 0xc27   : > { %v4390_v39 = vpop.eup %4389  ;;  %v1952_v20 = vadd.f32 1e-05, %v1949_v10 }
 0xc28   : > { %v1955_v42 = vmul.f32 %v4390_v39, %v1951_v36  ;;  %vm1961_vm4 = vweird.f32 %v4390_v39 }
 0xc29   : > { %4391 = vrsqrt.f32 %v1952_v20  ;;  %vm1962_vm6 = vmor %vm1960_vm5, %vm1961_vm4  ;;  %vm1970_vm8 = vweird.f32 %v1952_v20 }
 0xc2a   : > { %v1956_v43 = vmul.f32 %v4390_v39, %v1955_v42 }
 0xc2c   : > { %v1957_v45 = vmul.f32 0.5, %v1956_v43  ;;  %v1947_v46 = vpop.xlane.xlu2 %1946 }
 0xc2d   : > { %v1950_v47 = vmul.f32 %v1947_v46, %v4647_v32 }
 0xc2e   : > { %v1958_v48 = vsub.f32 1.5, %v1957_v45 }
 0xc2f   : > { %v4392_v35 = vpop.eup %4391  ;;  %v1953_v49 = vadd.f32 1e-05, %v1950_v47 }
 0xc30   : > { %v1959_v40 = vmul.f32 %v4390_v39, %v1958_v48  ;;  %v1965_v50 = vmul.f32 %v4392_v35, %v1952_v20  ;;  %vm1971_vm7 = vweird.f32 %v4392_v35 }
 0xc31   : > { %4393 = vrsqrt.f32 %v1953_v49  ;;  %vm1972_vm9 = vmor %vm1970_vm8, %vm1971_vm7  ;;  %vm1980_vm11 = vweird.f32 %v1953_v49 }
 0xc32   : > { %v1966_v51 = vmul.f32 %v4392_v35, %v1965_v50  ;;  %v1963_v52 = vsel %vm1962_vm6, %v4390_v39, %v1959_v40 }
 0xc33   : > { %v1984_v62 = vmul.f32 %v1963_v52, %v1933_v19  ;;  %v4244_v19 = vld [vmem:[%s5571_s19 + $0x30] sm:$0xff] }
 0xc34   : > { %v1967_v53 = vmul.f32 0.5, %v1966_v51  ;;  %2143 = vmatpush.bf16.msra.mxu2 %v4244_v19 }
 0xc35   : > { %v1990_v4 = vmul.f32 %v4310_v61, %v1984_v62 }
 0xc36   : > { %v1968_v54 = vsub.f32 1.5, %v1967_v53 }
 0xc37   : > { %v4394_v58 = vpop.eup %4393  ;;  %v1996_v15 = vadd.f32 %v4311_v3, %v1990_v4  ;;  %v4313_v4 = vld [vmem:[%s5572_s20] ss:$0 sm:$0xff] }
 0xc38   : > { %v1969_v1 = vmul.f32 %v4392_v35, %v1968_v54  ;;  %v1975_v41 = vmul.f32 %v4394_v58, %v1953_v49  ;;  %vm1981_vm10 = vweird.f32 %v4394_v58  ;;  %2144 = vmatpush.bf16.msra.mxu2 %v4243_v63 }
 0xc39   : > { %vm1982_vm12 = vmor %vm1980_vm11, %vm1981_vm10 }
 0xc3a   : > { %v1973_v38 = vsel %vm1972_vm9, %v4392_v35, %v1969_v1  ;;  %v1976_v2 = vmul.f32 %v4394_v58, %v1975_v41 }
 0xc3b   : > { %v1985_v44 = vmul.f32 %v1973_v38, %v1934_v21  ;;  %v4239_v21 = vld [vmem:[%s5571_s19 + $0x8] sm:$0xff] }
 0xc3c   : > { %v1977_v9 = vmul.f32 0.5, %v1976_v2  ;;  %2145 = vmatpush.bf16.msra.mxu2 %v4242_v13 }
 0xc3d   : > { %v1991_v11 = vmul.f32 %v4310_v61, %v1985_v44 }
 0xc3e   : > { %v1978_v12 = vsub.f32 1.5, %v1977_v9 }
 0xc3f   : > { %v1997_v5 = vadd.f32 %v4311_v3, %v1991_v11 }
 0xc40   : > { %v1979_v14 = vmul.f32 %v4394_v58, %v1978_v12  ;;  %2146 = vmatpush.bf16.msra.mxu2 %v4241_v22 }
 0xc41   : > { %v1999_v16 = vpack.c.bf16 %v1997_v5, %v1996_v15 }
 0xc42   : > { %v1983_v60 = vsel %vm1982_vm12, %v4394_v58, %v1979_v14 }
 0xc43   : > { %3882 = vmatmul.msk.bf16.vlgmr.msrb.gmra.mxu1 %vm774_vm2, %v1999_v16  ;;  %v1986_v56 = vmul.f32 %v1983_v60, %v1935_v28 }
 0xc44   : > { %2147 = vmatpush.bf16.msra.mxu2 %v4240_v8 }
 0xc45   : > { %v1992_v59 = vmul.f32 %v4310_v61, %v1986_v56 }
 0xc47   : > { %v1998_v55 = vadd.f32 %v4311_v3, %v1992_v59 }
 0xc48   : > { %2148 = vmatpush.bf16.msra.mxu2 %v4239_v21 }
 0xc49   : > { %v2000_v18 = vpack.c.bf16 %v1998_v55, %v1998_v55 }
 0xc4c   : > { %2149 = vmatpush.bf16.msra.mxu2 %v4238_v26 }
 0xc53   : > { %3883 = vmatmul.msk.bf16.gmra.mxu1 %vm774_vm2, %v2000_v18 }
 0xcc0   : > { %v2036_v25 = vpop.f32.mrf.mxu1 }
 0xcc1   : > { %v2037_v27 = vadd.f32 %v4312_v24, %v2036_v25 }
 0xcc3   : > { %v2045_v28 = vmul.f32 %v2037_v27, %v2037_v27 }
 0xcc5   : > { %v2048_v29 = vmul.f32 %v2045_v28, %v2037_v27 }
 0xcc7   : > { %v2051_v30 = vmul.f32 0.044715, %v2048_v29  ;;  %v4249_v29 = vld [vmem:[%s5560_s8 + $0x48] sm:$0xff] }
 0xcc8   : > { %v2038_v31 = vpop.f32.mrf.mxu1  ;;  %2321 = vmatpush.bf16.msrb.mxu0 %v4249_v29  ;;  %v4316_v29 = vld [vmem:[%s5563_s11 + $0x4] ss:$0 sm:$0xff] }
 0xcc9   : > { %v2054_v33 = vadd.f32 %v2051_v30, %v2037_v27  ;;  %v2039_v34 = vadd.f32 %v4312_v24, %v2038_v31  ;;  %v4247_v30 = vld [vmem:[%s5559_s7 + $0x48] sm:$0xff] }
 0xcca   : > { %v4251_v31 = vld [vmem:[%s5561_s9 + $0x48] sm:$0xff]  ;;  %2281 = vmatpush.bf16.msra.mxu3 %v4247_v30  ;;  %v4317_v30 = vld [vmem:[%s5564_s12 + $0x4] ss:$0 sm:$0xff] }
 0xccb   : > { %v2057_v36 = vmul.f32 0.7978846, %v2054_v33  ;;  %v2046_v37 = vmul.f32 %v2039_v34, %v2039_v34  ;;  %2361 = vmatpush.bf16.msra.mxu1 %v4251_v31 }
 0xccd   : > { %v2049_v17 = vmul.f32 %v2046_v37, %v2039_v34  ;;  %4395 = vtanh.f32 %v2057_v36  ;;  %v4246_v37 = vld [vmem:[%s5559_s7 + $0x40] sm:$0xff] }
 0xcce   : > { %2282 = vmatpush.bf16.msra.mxu3 %v4246_v37 }
 0xccf   : > { %v2052_v10 = vmul.f32 0.044715, %v2049_v17  ;;  %v4248_v17 = vld [vmem:[%s5560_s8 + $0x40] sm:$0xff] }
 0xcd0   : > { %v2041_v39 = vpop.f32.mrf.mxu1  ;;  %2322 = vmatpush.bf16.msrb.mxu0 %v4248_v17 }
 0xcd1   : > { %v2055_v20 = vadd.f32 %v2052_v10, %v2039_v34  ;;  %v2042_v42 = vadd.f32 %v4312_v24, %v2041_v39  ;;  %v4250_v10 = vld [vmem:[%s5561_s9 + $0x40] sm:$0xff] }
 0xcd2   : > { %2362 = vmatpush.bf16.msra.mxu1 %v4250_v10 }
 0xcd3   : > { %v2058_v43 = vmul.f32 0.7978846, %v2055_v20  ;;  %v2047_v45 = vmul.f32 %v2042_v42, %v2042_v42  ;;  %v4396_v46 = vpop.eup %4395 }
 0xcd4   : > { %v2063_v35 = vadd.f32 1.0, %v4396_v46 }
 0xcd5   : > { %4397 = vtanh.f32 %v2058_v43  ;;  %v2050_v47 = vmul.f32 %v2047_v45, %v2042_v42 }
 0xcd6   : > { %v2066_v52 = vmul.f32 0.5, %v2063_v35 }
 0xcd7   : > { %v2053_v48 = vmul.f32 0.044715, %v2050_v47 }
 0xcd8   : > { %v2043_v49 = vpop.f32.mrf.mxu1  ;;  %v2069_v58 = vmul.f32 %v2066_v52, %v2037_v27 }
 0xcd9   : > { %v2056_v40 = vadd.f32 %v2053_v48, %v2042_v42 }
 0xcdb   : > { %v4398_v50 = vpop.eup %4397  ;;  %v2059_v51 = vmul.f32 0.7978846, %v2056_v40 }
 0xcdc   : > { %v2064_v53 = vadd.f32 1.0, %v4398_v50 }
 0xcdd   : > { %4399 = vtanh.f32 %v2059_v51 }
 0xcde   : > { %v2067_v54 = vmul.f32 0.5, %v2064_v53 }
 0xce0   : > { %v2070_v61 = vmul.f32 %v2067_v54, %v2039_v34 }
 0xce2   : > { %v2072_v62 = vpack.c.bf16 %v2070_v61, %v2069_v58  ;;  %v4253_v61 = vld [vmem:[%s5559_s7 + $0x58] sm:$0xff] }
 0xce3   : > { %v4400_v1 = vpop.eup %4399  ;;  %2513 = vmatpush.bf16.msra.mxu0 %v4253_v61 }
 0xce4   : > { %2150 = vmatmul.bf16.vlgmr.msra.gmra.mxu2 %v2072_v62  ;;  %v2065_v41 = vadd.f32 1.0, %v4400_v1  ;;  %v4255_v62 = vld [vmem:[%s5560_s8 + $0x58] sm:$0xff] }
 0xce5   : > { %2553 = vmatpush.bf16.msrb.mxu1 %v4255_v62 }
 0xce6   : > { %v2068_v38 = vmul.f32 0.5, %v2065_v41  ;;  %v4252_v41 = vld [vmem:[%s5559_s7 + $0x50] sm:$0xff] }
 0xce7   : > { %2514 = vmatpush.bf16.msra.mxu0 %v4252_v41  ;;  %v5202_v41 = vld [vmem:[%s5562_s10 + $0x5] ss:$0 sm:$0xff] }
 0xce8   : > { %v2071_v2 = vmul.f32 %v2068_v38, %v2042_v42  ;;  %v4254_v38 = vld [vmem:[%s5560_s8 + $0x50] sm:$0xff] }
 0xce9   : > { %2554 = vmatpush.bf16.msrb.mxu1 %v4254_v38 }
 0xcea   : > { %v2073_v3 = vpack.c.bf16 %v2071_v2, %v2071_v2 }
 0xcf4   : > { %2155 = vmatmul.bf16.gmra.mxu2 %v2073_v3  ;;  %v4314_v3 = vld [vmem:[%s5593_s0 + $0x1] ss:$0 sm:$0xff] }
 0xd67   : > { %v2151_v44 = vpop.f32.mrf.mxu2 }
 0xd68   : > { %v2152_v9 = vadd.f32 %v4313_v4, %v2151_v44 }
 0xd6a   : > { %v5080_v11 = vadd.f32 %v2152_v9, %v5007_v7 }
 0xd6c   : > { %v2167_v12 = vsel %vm774_vm2, %v5080_v11, 0.0 }
 0xd6d   : > { %2168 = vadd.xlane.f32.xlu0 %v2167_v12 }
 0xd6f   : > { %v2153_v15 = vpop.f32.mrf.mxu2 }
 0xd70   : > { %v2154_v5 = vadd.f32 %v4313_v4, %v2153_v15 }
 0xd72   : > { %v5085_v14 = vadd.f32 %v2154_v5, %v5013_v57  ;;  %v4315_v5 = vld [vmem:[%s5594_s5 + $0x1] ss:$0 sm:$0xff] }
 0xd74   : > { %v2170_v16 = vsel %vm774_vm2, %v5085_v14, 0.0 }
 0xd75   : > { %2171 = vadd.xlane.f32.xlu1 %v2170_v16 }
 0xd77   : > { %v2156_v60 = vpop.f32.mrf.mxu2 }
 0xd78   : > { %v2157_v56 = vadd.f32 %v4313_v4, %v2156_v60 }
 0xd7a   : > { %v5090_v59 = vadd.f32 %v2157_v56, %v5019_v6 }
 0xd7c   : > { %v2173_v7 = vsel %vm781_vm3, %v5090_v59, 0.0 }
 0xd7d   : > { %2174 = vadd.xlane.f32.xlu2 %v2173_v7 }
 0xd7f   : > { %v2158_v55 = vpop.f32.mrf.mxu2 }
 0xde0   : > { %v2169_v18 = vpop.xlane.xlu0 %2168 }
 0xde1   : > { %v2176_v23 = vmul.f32 %v2169_v18, %v4647_v32 }
 0xde3   : > { %v5096_v57 = vsub.f32 %v5080_v11, %v2176_v23 }
 0xde5   : > { %v2182_v19 = vmul.f32 %v5096_v57, %v5096_v57 }
 0xde7   : > { %v2185_v63 = vsel %vm774_vm2, %v2182_v19, 0.0 }
 0xde8   : > { %v2172_v13 = vpop.xlane.xlu1 %2171  ;;  %2186 = vadd.xlane.f32.xlu0 %v2185_v63 }
 0xde9   : > { %v2177_v6 = vmul.f32 %v2172_v13, %v4647_v32 }
 0xdeb   : > { %v5103_v22 = vsub.f32 %v5085_v14, %v2177_v6 }
 0xded   : > { %v2183_v8 = vmul.f32 %v5103_v22, %v5103_v22 }
 0xdef   : > { %v2188_v21 = vsel %vm774_vm2, %v2183_v8, 0.0 }
 0xdf0   : > { %v2175_v24 = vpop.xlane.xlu2 %2174  ;;  %2189 = vadd.xlane.f32.xlu1 %v2188_v21 }
 0xdf1   : > { %v2178_v25 = vmul.f32 %v2175_v24, %v4647_v32 }
 0xdf3   : > { %v5110_v26 = vsub.f32 %v5090_v59, %v2178_v25 }
 0xdf5   : > { %v2184_v27 = vmul.f32 %v5110_v26, %v5110_v26 }
 0xdf7   : > { %v2191_v28 = vsel %vm781_vm3, %v2184_v27, 0.0 }
 0xdf8   : > { %2192 = vadd.xlane.f32.xlu2 %v2191_v28 }
 0xe5b   : > { %v2187_v33 = vpop.xlane.xlu0 %2186 }
 0xe5c   : > { %v2194_v34 = vmul.f32 %v2187_v33, %v4647_v32 }
 0xe5e   : > { %v2197_v36 = vadd.f32 1e-05, %v2194_v34 }
 0xe60   : > { %4401 = vrsqrt.f32 %v2197_v36  ;;  %vm2206_vm4 = vweird.f32 %v2197_v36 }
 0xe63   : > { %v2190_v39 = vpop.xlane.xlu1 %2189 }
 0xe64   : > { %v2195_v20 = vmul.f32 %v2190_v39, %v4647_v32 }
 0xe66   : > { %v4402_v42 = vpop.eup %4401  ;;  %v2198_v43 = vadd.f32 1e-05, %v2195_v20 }
 0xe67   : > { %v2201_v45 = vmul.f32 %v4402_v42, %v2197_v36  ;;  %vm2207_vm13 = vweird.f32 %v4402_v42 }
 0xe68   : > { %4403 = vrsqrt.f32 %v2198_v43  ;;  %vm2208_vm5 = vmor %vm2206_vm4, %vm2207_vm13  ;;  %vm2216_vm7 = vweird.f32 %v2198_v43 }
 0xe69   : > { %v2202_v46 = vmul.f32 %v4402_v42, %v2201_v45 }
 0xe6b   : > { %v2203_v47 = vmul.f32 0.5, %v2202_v46  ;;  %v2193_v48 = vpop.xlane.xlu2 %2192 }
 0xe6c   : > { %v2196_v35 = vmul.f32 %v2193_v48, %v4647_v32 }
 0xe6d   : > { %v2204_v49 = vsub.f32 1.5, %v2203_v47 }
 0xe6e   : > { %v4404_v40 = vpop.eup %4403  ;;  %v2199_v50 = vadd.f32 1e-05, %v2196_v35 }
 0xe6f   : > { %v2205_v51 = vmul.f32 %v4402_v42, %v2204_v49  ;;  %v2211_v52 = vmul.f32 %v4404_v40, %v2198_v43  ;;  %vm2217_vm6 = vweird.f32 %v4404_v40 }
 0xe70   : > { %4405 = vrsqrt.f32 %v2199_v50  ;;  %vm2218_vm8 = vmor %vm2216_vm7, %vm2217_vm6  ;;  %vm2226_vm10 = vweird.f32 %v2199_v50 }
 0xe71   : > { %v2212_v53 = vmul.f32 %v4404_v40, %v2211_v52  ;;  %v2209_v54 = vsel %vm2208_vm5, %v4402_v42, %v2205_v51 }
 0xe72   : > { %v2230_v4 = vmul.f32 %v2209_v54, %v5096_v57  ;;  %v4256_v54 = vld [vmem:[%s5561_s9 + $0x50] sm:$0xff] }
 0xe73   : > { %v2213_v58 = vmul.f32 0.5, %v2212_v53 }
 0xe74   : > { %v2236_v16 = vmul.f32 %v4314_v3, %v2230_v4 }
 0xe75   : > { %v2214_v1 = vsub.f32 1.5, %v2213_v58 }
 0xe76   : > { %v4406_v2 = vpop.eup %4405  ;;  %v2242_v18 = vadd.f32 %v4315_v5, %v2236_v16 }
 0xe77   : > { %v2215_v44 = vmul.f32 %v4404_v40, %v2214_v1  ;;  %v2221_v9 = vmul.f32 %v4406_v2, %v2199_v50  ;;  %vm2227_vm9 = vweird.f32 %v4406_v2  ;;  %v4318_v50 = vld [vmem:[%s5562_s10 + $0x4] ss:$0 sm:$0xff] }
 0xe78   : > { %vm2228_vm11 = vmor %vm2226_vm10, %vm2227_vm9 }
 0xe79   : > { %v2219_v12 = vsel %vm2218_vm8, %v4404_v40, %v2215_v44  ;;  %v2222_v15 = vmul.f32 %v4406_v2, %v2221_v9  ;;  %v4257_v40 = vld [vmem:[%s5561_s9 + $0x58] sm:$0xff] }
 0xe7a   : > { %v2231_v60 = vmul.f32 %v2219_v12, %v5103_v22  ;;  %v4320_v12 = vld [vmem:[%s5563_s11 + $0x5] ss:$0 sm:$0xff] }
 0xe7b   : > { %v2223_v56 = vmul.f32 0.5, %v2222_v15 }
 0xe7c   : > { %v2237_v7 = vmul.f32 %v4314_v3, %v2231_v60 }
 0xe7d   : > { %v2224_v55 = vsub.f32 1.5, %v2223_v56 }
 0xe7e   : > { %v2243_v23 = vadd.f32 %v4315_v5, %v2237_v7 }
 0xe7f   : > { %v2225_v57 = vmul.f32 %v4406_v2, %v2224_v55 }
 0xe80   : > { %v5156_v19 = vpack.c.bf16 %v2243_v23, %v2242_v18 }
 0xe81   : > { %v2229_v63 = vsel %vm2228_vm11, %v4406_v2, %v2225_v57 }
 0xe82   : > { %3931 = vmatmul.msk.bf16.vlgmr.msra.gmra.mxu3 %vm774_vm2, %v5156_v19  ;;  %3946 = vmatmul.msk.bf16.vlgmr.msrb.gmra.mxu0 %vm774_vm2, %v5156_v19  ;;  %v2232_v13 = vmul.f32 %v2229_v63, %v5110_v26 }
 0xe83   : > { %3961 = vmatmul.msk.bf16.vlgmr.msra.gmra.mxu1 %vm774_vm2, %v5156_v19 }
 0xe84   : > { %v2238_v6 = vmul.f32 %v4314_v3, %v2232_v13 }
 0xe86   : > { %v2244_v22 = vadd.f32 %v4315_v5, %v2238_v6 }
 0xe88   : > { %v5165_v8 = vpack.c.bf16 %v2244_v22, %v2244_v22 }
 0xe92   : > { %3932 = vmatmul.msk.bf16.gmra.mxu3 %vm774_vm2, %v5165_v8  ;;  %3947 = vmatmul.msk.bf16.gmra.mxu0 %vm774_vm2, %v5165_v8 }
 0xe93   : > { %3962 = vmatmul.msk.bf16.gmra.mxu1 %vm774_vm2, %v5165_v8 }
 0xea2   : > { %3984 = vmatmul.msk.bf16.vlgmr.msra.gmra.mxu0 %vm774_vm2, %v5156_v19 }
 0xea3   : > { %3999 = vmatmul.msk.bf16.vlgmr.msrb.gmra.mxu1 %vm774_vm2, %v5156_v19 }
 0xeb2   : > { %3985 = vmatmul.msk.bf16.gmra.mxu0 %vm774_vm2, %v5165_v8 }
 0xeb3   : > { %4000 = vmatmul.msk.bf16.gmra.mxu1 %vm774_vm2, %v5165_v8 }
 0xeff   : > { %v2324_v21 = vpop.f32.mrf.mxu0 }
 0xf00   : > { %v2364_v24 = vpop.f32.mrf.mxu1  ;;  %v2325_v45 = vadd.f32 %v4316_v29, %v2324_v21 }
 0xf01   : > { %v2365_v46 = vadd.f32 %v4317_v30, %v2364_v24 }
 0xf05   : > { %v2284_v25 = vpop.f32.mrf.mxu3 }
 0xf06   : > { %v2285_v61 = vadd.f32 %v4318_v50, %v2284_v25 }
 0xf07   : > { %v2326_v26 = vpop.f32.mrf.mxu0 }
 0xf08   : > { %v2366_v27 = vpop.f32.mrf.mxu1  ;;  %v2327_v10 = vadd.f32 %v4316_v29, %v2326_v26 }
 0xf09   : > { %v2367_v20 = vadd.f32 %v4317_v30, %v2366_v27 }
 0xf0a   : > { %v2375_v35 = vpack.c.bf16 %v2327_v10, %v2325_v45 }
 0xf0b   : > { %v2452_v49 = vpack.c.bf16 %v2367_v20, %v2365_v46 }
 0xf0c   : > { %v2384_v51 = vsel %vm987_vm14, %v2375_v35, 0 }
 0xf0d   : > { %v2286_v28 = vpop.f32.mrf.mxu3 }
 0xf0e   : > { %v2287_v53 = vadd.f32 %v4318_v50, %v2286_v28 }
 0xf0f   : > { %v2329_v31 = vpop.f32.mrf.mxu0 }
 0xf10   : > { %v2330_v33 = vadd.f32 %v4316_v29, %v2329_v31  ;;  %v2369_v34 = vpop.f32.mrf.mxu1  ;;  %v2373_v1 = vpack.c.bf16 %v2287_v53, %v2285_v61 }
 0xf11   : > { %v2370_v36 = vadd.f32 %v4317_v30, %v2369_v34  ;;  %v4321_v34 = vld [vmem:[%s5564_s12 + $0x5] ss:$0 sm:$0xff] }
 0xf12   : > { %v2376_v37 = vpack.c.bf16 %v2330_v33, %v2330_v33 }
 0xf13   : > { %v2453_v17 = vpack.c.bf16 %v2370_v36, %v2370_v36 }
 0xf14   : > { %v2387_v39 = vsel %vm987_vm14, %v2376_v37, 0 }
 0xf15   : > { %v2461_v42 = vand.u32 %v2453_v17, %v4744_v0  ;;  %v2289_v43 = vpop.f32.mrf.mxu3  ;;  %2395 = vmatpush.bf16.xpose.msrb.mxu2 %v2387_v39 }
 0xf16   : > { %v2290_v9 = vadd.f32 %v4318_v50, %v2289_v43 }
 0xf17   : > { %2469 = vmatpush.bf16.msrb.mxu3 %v2461_v42  ;;  %v2331_v47 = vpop.f32.mrf.mxu0 }
 0xf18   : > { %v2371_v48 = vpop.f32.mrf.mxu1  ;;  %v2374_v60 = vpack.c.bf16 %v2290_v9, %v2290_v9 }
 0xf1b   : > { %2470 = vmatpush.bf16.msrb.mxu3 %v2452_v49 }
 0xf1d   : > { %v2291_v52 = vpop.f32.mrf.mxu3  ;;  %2396 = vmatpush.bf16.xpose.msrb.mxu2 %v2384_v51 }
 0xf1f   : > { %v2516_v58 = vpop.f32.mrf.mxu0 }
 0xf20   : > { %v2556_v62 = vpop.f32.mrf.mxu1  ;;  %v5206_v2 = vadd.f32 %v5202_v41, %v2516_v58 }
 0xf21   : > { %v2557_v18 = vadd.f32 %v4320_v12, %v2556_v62 }
 0xf24   : > { %3963 = vmatmul.msk.bf16.vlgmr.msrb.gmra.mxu2 %vm987_vm14, %v2373_v1 }
 0xf25   : > { %2593 = vmatpush.bf16.msra.mxu2 %v4257_v40 }
 0xf27   : > { %v2518_v38 = vpop.f32.mrf.mxu0 }
 0xf28   : > { %v5209_v3 = vadd.f32 %v5202_v41, %v2518_v38  ;;  %v2558_v4 = vpop.f32.mrf.mxu1 }
 0xf29   : > { %2594 = vmatpush.bf16.msra.mxu2 %v4256_v54  ;;  %v2559_v7 = vadd.f32 %v4320_v12, %v2558_v4 }
 0xf2a   : > { %v2605_v44 = vpack.c.bf16 %v5209_v3, %v5206_v2 }
 0xf2b   : > { %v2607_v63 = vpack.c.bf16 %v2559_v7, %v2557_v18 }
 0xf2d   : > { %v2616_v13 = vsel %vm987_vm14, %v2607_v63, 0  ;;  %v4259_v63 = vld [vmem:[%s5559_s7 + $0x68] sm:$0xff] }
 0xf2f   : > { %v5216_v15 = vpop.f32.mrf.mxu0 }
 0xf30   : > { %v2561_v5 = vpop.f32.mrf.mxu1 }
 0xf31   : > { %v2562_v16 = vadd.f32 %v4320_v12, %v2561_v5 }
 0xf33   : > { %v2608_v56 = vpack.c.bf16 %v2562_v16, %v2562_v16 }
 0xf34   : > { %3964 = vmatmul.msk.bf16.gmra.mxu2 %vm987_vm14, %v2374_v60 }
 0xf35   : > { %v2619_v55 = vsel %vm987_vm14, %v2608_v56, 0 }
 0xf36   : > { %2627 = vmatpush.bf16.xpose.msra.mxu3 %v2619_v55 }
 0xf37   : > { %v2523_v23 = vpop.f32.mrf.mxu0 }
 0xf38   : > { %v2563_v57 = vpop.f32.mrf.mxu1 }
 0xf3e   : > { %2628 = vmatpush.bf16.xpose.msra.mxu3 %v2616_v13  ;;  %v4258_v13 = vld [vmem:[%s5559_s7 + $0x60] sm:$0xff] }
 0xf44   : > { %4014 = vmatmul.msk.bf16.vlgmr.msra.gmra.mxu2 %vm774_vm2, %v5156_v19 }
 0xf54   : > { %4015 = vmatmul.msk.bf16.gmra.mxu2 %vm774_vm2, %v5165_v8 }
 0xfa7   : > { %v2398_v6 = vpop.f32.mrf.mxu2 }
 0xfa8   : > { %v2407_v22 = vmul.f32 0.35355338, %v2398_v6  ;;  %v2522_v6 = vadd.f32 %v5202_v41, %v5216_v15 }
 0xfaa   : > { %v2410_v21 = vsel %vm1021_vm15, %v2407_v22, -inf }
 0xfab   : > { %2411 = vmax.xlane.f32.xlu0 %v2410_v21  ;;  %v3970_v21 = vld [vmem:[%s5565_s13 + $0x10] sm:$0xf] }
 0xfac   : > { %v2751_v2 = vsel %vm1336_vm1, %v3970_v21, 0 }
 0xfad   : > { %2760 = vmatpush.bf16.msrb.mxu2 %v2751_v2 }
 0xfaf   : > { %v2400_v24 = vpop.f32.mrf.mxu2 }
 0xfb0   : > { %v2408_v25 = vmul.f32 0.35355338, %v2400_v24 }
 0xfb2   : > { %v2413_v26 = vsel %vm1021_vm15, %v2408_v25, -inf }
 0xfb3   : > { %2414 = vmax.xlane.f32.xlu1 %v2413_v26 }
 0xfb7   : > { %v2403_v27 = vpop.f32.mrf.mxu2 }
 0xfb8   : > { %v2409_v28 = vmul.f32 0.35355338, %v2403_v27 }
 0xfba   : > { %v2416_v29 = vsel %vm1028_vm0, %v2409_v28, -inf }
 0xfbb   : > { %2417 = vmax.xlane.f32.xlu2 %v2416_v29 }
 0xfbf   : > { %v2405_v30 = vpop.f32.mrf.mxu2 }
 0xfc7   : > { %v2596_v31 = vpop.f32.mrf.mxu2 }
 0xfc8   : > { %v2597_v20 = vadd.f32 %v4321_v34, %v2596_v31 }
 0xfcf   : > { %v2598_v33 = vpop.f32.mrf.mxu2 }
 0xfd0   : > { %v2599_v10 = vadd.f32 %v4321_v34, %v2598_v33 }
 0xfd2   : > { %v2684_v43 = vpack.c.bf16 %v2599_v10, %v2597_v20  ;;  %v5272_v10 = vld [vmem:[%s5562_s10 + $0x6] ss:$0 sm:$0xff] }
 0xfd7   : > { %v2601_v36 = vpop.f32.mrf.mxu2 }
 0xfd8   : > { %v2602_v37 = vadd.f32 %v4321_v34, %v2601_v36 }
 0xfda   : > { %v2685_v17 = vpack.c.bf16 %v2602_v37, %v2602_v37 }
 0xfdc   : > { %v2693_v39 = vand.u32 %v2685_v17, %v4744_v0 }
 0xfde   : > { %2701 = vmatpush.bf16.msrb.mxu0 %v2693_v39 }
 0xfdf   : > { %v2603_v42 = vpop.f32.mrf.mxu2 }
 0xfe2   : > { %2702 = vmatpush.bf16.msrb.mxu0 %v2684_v43 }
0x101e   : > { %v2412_v45 = vpop.xlane.xlu0 %2411 }
0x101f   : > { %v2419_v46 = vsub.f32 %v2407_v22, %v2412_v45  ;;  %v2606_v22 = vpack.c.bf16 %v2522_v6, %v2522_v6 }
0x1021   : > { %v2422_v47 = vmul.f32 1.442695, %v2419_v46 }
0x1023   : > { %4407 = vpow2.f32 %v2422_v47 }
0x1026   : > { %v2415_v48 = vpop.xlane.xlu1 %2414 }
0x1027   : > { %v2420_v35 = vsub.f32 %v2408_v25, %v2415_v48 }
0x1029   : > { %v4408_v49 = vpop.eup %4407  ;;  %v2424_v40 = vmul.f32 1.442695, %v2420_v35 }
0x102a   : > { %v2428_v50 = vsel %vm1021_vm15, %v4408_v49, 0.0 }
0x102b   : > { %4409 = vpow2.f32 %v2424_v40  ;;  %2429 = vadd.xlane.f32.xlu0 %v2428_v50 }
0x102e   : > { %v2418_v51 = vpop.xlane.xlu2 %2417 }
0x102f   : > { %v2421_v52 = vsub.f32 %v2409_v28, %v2418_v51 }
0x1031   : > { %v4410_v53 = vpop.eup %4409  ;;  %v2426_v54 = vmul.f32 1.442695, %v2421_v52 }
0x1032   : > { %v2431_v58 = vsel %vm1021_vm15, %v4410_v53, 0.0 }
0x1033   : > { %4411 = vpow2.f32 %v2426_v54  ;;  %2432 = vadd.xlane.f32.xlu1 %v2431_v58 }
0x1039   : > { %v4412_v61 = vpop.eup %4411 }
0x103a   : > { %v2434_v62 = vsel %vm1028_vm0, %v4412_v61, 0.0 }
0x103b   : > { %2435 = vadd.xlane.f32.xlu2 %v2434_v62 }
0x109e   : > { %v2430_v1 = vpop.xlane.xlu0 %2429 }
0x109f   : > { %4413 = vrcp.f32 %v2430_v1 }
0x10a5   : > { %v4414_v38 = vpop.eup %4413 }
0x10a6   : > { %v2440_v4 = vmul.f32 %v4414_v38, %v4408_v49  ;;  %v2433_v9 = vpop.xlane.xlu1 %2432 }
0x10a7   : > { %4415 = vrcp.f32 %v2433_v9 }
0x10a8   : > { %v2443_v12 = vsel %vm1021_vm15, %v2440_v4, 0.0 }
0x10a9   : > { %3965 = vst [vmem:[%s4788_s1 + $0x60] sm:$0xff] %v2443_v12 }
0x10ad   : > { %v4416_v5 = vpop.eup %4415 }
0x10ae   : > { %v2441_v16 = vmul.f32 %v4416_v5, %v4410_v53  ;;  %v2436_v60 = vpop.xlane.xlu2 %2435 }
0x10af   : > { %4417 = vrcp.f32 %v2436_v60  ;;  %v4261_v60 = vld [vmem:[%s5560_s8 + $0x68] sm:$0xff] }
0x10b0   : > { %v2444_v56 = vsel %vm1021_vm15, %v2441_v16, 0.0  ;;  %v2450_v7 = vpack.c.bf16 %v2441_v16, %v2440_v4  ;;  %2839 = vmatpush.bf16.msra.mxu0 %v4261_v60 }
0x10b1   : > { %3966 = vst [vmem:[%s4788_s1 + $0x68] sm:$0xff] %v2444_v56  ;;  %v4260_v56 = vld [vmem:[%s5560_s8 + $0x60] sm:$0xff] }
0x10b2   : > { %3968 = vmatmul.msk.bf16.vlgmr.msrb.gmra.mxu3 %vm1021_vm15, %v2450_v7 }
0x10b3   : > { %2799 = vmatpush.bf16.msrb.mxu3 %v4259_v63 }
0x10b4   : > { %2840 = vmatpush.bf16.msra.mxu0 %v4260_v56 }
0x10b5   : > { %v4418_v55 = vpop.eup %4417 }
0x10b6   : > { %v2442_v18 = vmul.f32 %v4418_v55, %v4412_v61 }
0x10b7   : > { %2800 = vmatpush.bf16.msrb.mxu3 %v4258_v13 }
0x10b8   : > { %v2445_v23 = vsel %vm1021_vm15, %v2442_v18, 0.0  ;;  %v2451_v57 = vpack.c.bf16 %v2442_v18, %v2442_v18 }
0x10b9   : > { %3967 = vst [vmem:[%s4788_s1 + $0x70] sm:$0x1] %v2445_v23 }
0x10c2   : > { %3969 = vmatmul.msk.bf16.gmra.mxu3 %vm1021_vm15, %v2451_v57 }
0x10d2   : > { %4016 = vmatmul.msk.bf16.vlgmr.msra.gmra.mxu3 %vm987_vm14, %v2605_v44 }
0x10e2   : > { %4017 = vmatmul.msk.bf16.gmra.mxu3 %vm987_vm14, %v2606_v22 }
0x10f2   : > { %4041 = vmatmul.msk.bf16.vlgmr.msrb.gmra.mxu3 %vm774_vm2, %v5156_v19 }
0x1102   : > { %4042 = vmatmul.msk.bf16.gmra.mxu3 %vm774_vm2, %v5165_v8 }
0x1135   : > { %v2472_v3 = vpop.f32.mrf.mxu3 }
0x113d   : > { %v2474_v44 = vpop.f32.mrf.mxu3 }
0x113e   : > { %v2481_v24 = vpack.c.bf16 %v2474_v44, %v2472_v3 }
0x1140   : > { %4026 = vmatmul.msk.bf16.vlgmr.msrb.gmra.mxu2 %vm987_vm14, %v2481_v24  ;;  %v4023_v24 = vld [vmem:[%s5565_s13 + $0x14] sm:$0xf] }
0x1145   : > { %v2477_v41 = vpop.f32.mrf.mxu3 }
0x1146   : > { %v2482_v25 = vpack.c.bf16 %v2477_v41, %v2477_v41  ;;  %v2724_v41 = vsel %vm1336_vm1, %v4023_v24, 0 }
0x1147   : > { %2733 = vmatpush.bf16.msra.mxu1 %v2724_v41 }
0x114d   : > { %v2479_v15 = vpop.f32.mrf.mxu3 }
0x1150   : > { %4027 = vmatmul.msk.bf16.gmra.mxu2 %vm987_vm14, %v2482_v25  ;;  %v4263_v25 = vld [vmem:[%s5561_s9 + $0x68] sm:$0xff] }
0x1151   : > { %2879 = vmatpush.bf16.msrb.mxu1 %v4263_v25 }
0x1155   : > { %v2630_v26 = vpop.f32.mrf.mxu3 }
0x1156   : > { %v2639_v27 = vmul.f32 0.35355338, %v2630_v26  ;;  %v4262_v26 = vld [vmem:[%s5561_s9 + $0x60] sm:$0xff] }
0x1157   : > { %2880 = vmatpush.bf16.msrb.mxu1 %v4262_v26 }
0x1158   : > { %v2642_v28 = vsel %vm1021_vm15, %v2639_v27, -inf }
0x1159   : > { %2643 = vmax.xlane.f32.xlu0 %v2642_v28 }
0x115d   : > { %v2632_v29 = vpop.f32.mrf.mxu3 }
0x115e   : > { %v2640_v30 = vmul.f32 0.35355338, %v2632_v29 }
0x1160   : > { %v2645_v31 = vsel %vm1021_vm15, %v2640_v30, -inf }
0x1161   : > { %2646 = vmax.xlane.f32.xlu1 %v2645_v31 }
0x1165   : > { %v2635_v33 = vpop.f32.mrf.mxu3 }
0x1166   : > { %v2641_v34 = vmul.f32 0.35355338, %v2635_v33  ;;  %v4265_v33 = vld [vmem:[%s5559_s7 + $0x78] sm:$0xff] }
0x1168   : > { %v2648_v36 = vsel %vm1028_vm0, %v2641_v34, -inf }
0x1169   : > { %2649 = vmax.xlane.f32.xlu2 %v2648_v36  ;;  %v4264_v36 = vld [vmem:[%s5559_s7 + $0x70] sm:$0xff] }
0x116d   : > { %v2637_v37 = vpop.f32.mrf.mxu3 }
0x1175   : > { %v2802_v17 = vpop.f32.mrf.mxu3 }
0x1176   : > { %v5275_v20 = vadd.f32 %v5272_v10, %v2802_v17  ;;  %v4323_v17 = vld [vmem:[%s5563_s11 + $0x6] ss:$0 sm:$0xff] }
0x117d   : > { %v2804_v39 = vpop.f32.mrf.mxu3 }
0x117e   : > { %v5278_v42 = vadd.f32 %v5272_v10, %v2804_v39 }
0x1180   : > { %v2891_v43 = vpack.c.bf16 %v5278_v42, %v5275_v20 }
0x1185   : > { %v5282_v45 = vpop.f32.mrf.mxu3 }
0x118d   : > { %v2809_v46 = vpop.f32.mrf.mxu3 }
0x11c3   : > { %v5284_v47 = vpop.f32.mrf.mxu2 }
0x11cb   : > { %v5286_v48 = vpop.f32.mrf.mxu2 }
0x11cc   : > { %v2644_v35 = vpop.xlane.xlu0 %2643 }
0x11cd   : > { %v2651_v49 = vsub.f32 %v2639_v27, %v2644_v35 }
0x11cf   : > { %v2654_v40 = vmul.f32 1.442695, %v2651_v49 }
0x11d1   : > { %4419 = vpow2.f32 %v2654_v40 }
0x11d3   : > { %v5288_v50 = vpop.f32.mrf.mxu2 }
0x11d4   : > { %v2647_v51 = vpop.xlane.xlu1 %2646 }
0x11d5   : > { %v2652_v52 = vsub.f32 %v2640_v30, %v2647_v51 }
0x11d7   : > { %v4420_v53 = vpop.eup %4419  ;;  %v2656_v54 = vmul.f32 1.442695, %v2652_v52 }
0x11d8   : > { %v2660_v58 = vsel %vm1021_vm15, %v4420_v53, 0.0 }
0x11d9   : > { %4421 = vpow2.f32 %v2656_v54  ;;  %2661 = vadd.xlane.f32.xlu0 %v2660_v58  ;;  %v4267_v54 = vld [vmem:[%s5560_s8 + $0x78] sm:$0xff] }
0x11db   : > { %v2769_v61 = vpop.f32.mrf.mxu2 }
0x11dc   : > { %v2650_v62 = vpop.xlane.xlu2 %2649  ;;  %v4266_v61 = vld [vmem:[%s5560_s8 + $0x70] sm:$0xff] }
0x11dd   : > { %v2653_v1 = vsub.f32 %v2641_v34, %v2650_v62  ;;  %v2808_v62 = vadd.f32 %v5272_v10, %v5282_v45 }
0x11df   : > { %v4422_v38 = vpop.eup %4421  ;;  %v2658_v4 = vmul.f32 1.442695, %v2653_v1  ;;  %v2892_v1 = vpack.c.bf16 %v2808_v62, %v2808_v62 }
0x11e0   : > { %v2663_v9 = vsel %vm1021_vm15, %v4422_v38, 0.0 }
0x11e1   : > { %4423 = vpow2.f32 %v2658_v4  ;;  %2664 = vadd.xlane.f32.xlu1 %v2663_v9  ;;  %v4324_v4 = vld [vmem:[%s5564_s12 + $0x6] ss:$0 sm:$0xff] }
0x11e7   : > { %v4424_v12 = vpop.eup %4423 }
0x11e8   : > { %v2666_v5 = vsel %vm1028_vm0, %v4424_v12, 0.0 }
0x11e9   : > { %2667 = vadd.xlane.f32.xlu2 %v2666_v5 }
0x124c   : > { %v2662_v16 = vpop.xlane.xlu0 %2661 }
0x124d   : > { %4425 = vrcp.f32 %v2662_v16 }
0x1253   : > { %v4426_v7 = vpop.eup %4425 }
0x1254   : > { %v2672_v55 = vmul.f32 %v4426_v7, %v4420_v53  ;;  %v2665_v18 = vpop.xlane.xlu1 %2664 }
0x1255   : > { %4427 = vrcp.f32 %v2665_v18 }
0x1256   : > { %v2675_v23 = vsel %vm1021_vm15, %v2672_v55, 0.0 }
0x1257   : > { %4018 = vst [vmem:[%s4788_s1 + $0x78] sm:$0xff] %v2675_v23 }
0x125b   : > { %v4428_v57 = vpop.eup %4427 }
0x125c   : > { %v2673_v63 = vmul.f32 %v4428_v57, %v4422_v38  ;;  %v2668_v13 = vpop.xlane.xlu2 %2667 }
0x125d   : > { %4429 = vrcp.f32 %v2668_v13  ;;  %v5373_v13 = vld [vmem:[%s5562_s10 + $0x7] ss:$0 sm:$0xff] }
0x125e   : > { %v2676_v6 = vsel %vm1021_vm15, %v2673_v63, 0.0  ;;  %v2682_v22 = vpack.c.bf16 %v2673_v63, %v2672_v55 }
0x125f   : > { %4019 = vst [vmem:[%s4788_s1 + $0x80] sm:$0xff] %v2676_v6 }
0x1260   : > { %4021 = vmatmul.msk.bf16.vlgmr.msrb.gmra.mxu0 %vm1021_vm15, %v2682_v22 }
0x1263   : > { %v4430_v21 = vpop.eup %4429 }
0x1264   : > { %v2674_v2 = vmul.f32 %v4430_v21, %v4424_v12 }
0x1266   : > { %v2677_v3 = vsel %vm1021_vm15, %v2674_v2, 0.0  ;;  %v2683_v44 = vpack.c.bf16 %v2674_v2, %v2674_v2 }
0x1267   : > { %4020 = vst [vmem:[%s4788_s1 + $0x88] sm:$0x1] %v2677_v3 }
0x1270   : > { %4022 = vmatmul.msk.bf16.gmra.mxu0 %vm1021_vm15, %v2683_v44 }
0x1280   : > { %4056 = vmatmul.msk.bf16.vlgmr.msra.gmra.mxu0 %vm774_vm2, %v5156_v19 }
0x1290   : > { %4057 = vmatmul.msk.bf16.gmra.mxu0 %vm774_vm2, %v5165_v8 }
0x12dd   : > { %v2704_v15 = vpop.f32.mrf.mxu0 }
0x12e5   : > { %v2706_v27 = vpop.f32.mrf.mxu0 }
0x12e6   : > { %v2713_v28 = vpack.c.bf16 %v2706_v27, %v2704_v15  ;;  %v4080_v27 = vld [vmem:[%s5565_s13 + $0x18] sm:$0xf] }
0x12e8   : > { %4024 = vmatmul.msk.bf16.vlgmr.msra.gmra.mxu1 %vm987_vm14, %v2713_v28  ;;  %v3010_v28 = vsel %vm1336_vm1, %v4080_v27, 0 }
0x12e9   : > { %3061 = vmatpush.bf16.msra.mxu1 %v4265_v33  ;;  %3019 = vmatpush.bf16.msrb.mxu0 %v3010_v28 }
0x12ed   : > { %v2709_v29 = vpop.f32.mrf.mxu0  ;;  %3062 = vmatpush.bf16.msra.mxu1 %v4264_v36 }
0x12ee   : > { %v2714_v31 = vpack.c.bf16 %v2709_v29, %v2709_v29 }
0x12f5   : > { %v2711_v30 = vpop.f32.mrf.mxu0 }
0x12f8   : > { %4025 = vmatmul.msk.bf16.gmra.mxu1 %vm987_vm14, %v2714_v31 }
0x12fd   : > { %v2842_v34 = vpop.f32.mrf.mxu0 }
0x12fe   : > { %v2843_v51 = vadd.f32 %v4323_v17, %v2842_v34  ;;  %v4326_v34 = vld [vmem:[%s5563_s11 + $0x7] ss:$0 sm:$0xff] }
0x1305   : > { %v2844_v37 = vpop.f32.mrf.mxu0 }
0x1306   : > { %v2845_v49 = vadd.f32 %v4323_v17, %v2844_v37 }
0x1308   : > { %4071 = vmatmul.msk.bf16.vlgmr.msrb.gmra.mxu1 %vm774_vm2, %v5156_v19  ;;  %v2893_v53 = vpack.c.bf16 %v2845_v49, %v2843_v51 }
0x130a   : > { %v2902_v58 = vsel %vm987_vm14, %v2893_v53, 0 }
0x130d   : > { %v2847_v39 = vpop.f32.mrf.mxu0 }
0x130e   : > { %v2848_v46 = vadd.f32 %v4323_v17, %v2847_v39 }
0x1310   : > { %v2894_v35 = vpack.c.bf16 %v2848_v46, %v2848_v46 }
0x1312   : > { %v2905_v40 = vsel %vm987_vm14, %v2894_v35, 0 }
0x1313   : > { %2913 = vmatpush.bf16.xpose.msra.mxu2 %v2905_v40 }
0x1315   : > { %v2849_v52 = vpop.f32.mrf.mxu0 }
0x1318   : > { %4072 = vmatmul.msk.bf16.gmra.mxu1 %vm774_vm2, %v5165_v8 }
0x131b   : > { %2914 = vmatpush.bf16.xpose.msra.mxu2 %v2902_v58 }
0x1322   : > { %4073 = vmatmul.msk.bf16.vlgmr.msra.gmra.mxu2 %vm987_vm14, %v2891_v43 }
0x1323   : > { %3101 = vmatpush.bf16.msrb.mxu2 %v4267_v54 }
0x1327   : > { %3102 = vmatpush.bf16.msrb.mxu2 %v4266_v61 }
0x1328   : > { %4096 = vmatmul.msk.bf16.vlgmr.msra.gmra.mxu1 %vm774_vm2, %v5156_v19 }
0x1332   : > { %4074 = vmatmul.msk.bf16.gmra.mxu2 %vm987_vm14, %v2892_v1 }
0x1338   : > { %4097 = vmatmul.msk.bf16.gmra.mxu1 %vm774_vm2, %v5165_v8 }
0x1342   : > { %4111 = vmatmul.msk.bf16.vlgmr.msrb.gmra.mxu2 %vm774_vm2, %v5156_v19 }
0x1352   : > { %4112 = vmatmul.msk.bf16.gmra.mxu2 %vm774_vm2, %v5165_v8 }
0x1365   : > { %v5359_v20 = vpop.f32.mrf.mxu1 }
0x136d   : > { %v5361_v42 = vpop.f32.mrf.mxu1 }
0x1375   : > { %v5363_v43 = vpop.f32.mrf.mxu1 }
0x137d   : > { %v2742_v38 = vpop.f32.mrf.mxu1 }
0x1385   : > { %v2882_v10 = vpop.f32.mrf.mxu1 }
0x1386   : > { %v2883_v56 = vadd.f32 %v4324_v4, %v2882_v10 }
0x138d   : > { %v2884_v45 = vpop.f32.mrf.mxu1 }
0x138e   : > { %v2885_v16 = vadd.f32 %v4324_v4, %v2884_v45 }
0x1390   : > { %v2970_v55 = vpack.c.bf16 %v2885_v16, %v2883_v56  ;;  %v4269_v56 = vld [vmem:[%s5561_s9 + $0x78] sm:$0xff] }
0x1395   : > { %v2887_v9 = vpop.f32.mrf.mxu1 }
0x1396   : > { %v2888_v12 = vadd.f32 %v4324_v4, %v2887_v9 }
0x1398   : > { %v2971_v5 = vpack.c.bf16 %v2888_v12, %v2888_v12 }
0x139a   : > { %v2979_v60 = vand.u32 %v2971_v5, %v4744_v0 }
0x139c   : > { %2987 = vmatpush.bf16.msra.mxu3 %v2979_v60 }
0x139d   : > { %v2889_v7 = vpop.f32.mrf.mxu1 }
0x139e   : > { %v4268_v7 = vld [vmem:[%s5561_s9 + $0x70] sm:$0xff] }
0x13a0   : > { %2988 = vmatpush.bf16.msra.mxu3 %v2970_v55 }
0x13a4   : > { %3141 = vmatpush.bf16.msrb.mxu3 %v4269_v56 }
0x13a5   : > { %v2916_v18 = vpop.f32.mrf.mxu2  ;;  %v3064_v23 = vpop.f32.mrf.mxu1 }
0x13a6   : > { %v2925_v57 = vmul.f32 0.35355338, %v2916_v18  ;;  %v5376_v21 = vadd.f32 %v5373_v13, %v3064_v23 }
0x13a8   : > { %v2928_v63 = vsel %vm1021_vm15, %v2925_v57, -inf  ;;  %3142 = vmatpush.bf16.msrb.mxu3 %v4268_v7 }
0x13a9   : > { %2929 = vmax.xlane.f32.xlu0 %v2928_v63 }
0x13ad   : > { %v2918_v6 = vpop.f32.mrf.mxu2  ;;  %v3066_v22 = vpop.f32.mrf.mxu1 }
0x13ae   : > { %v2926_v2 = vmul.f32 0.35355338, %v2918_v6  ;;  %v5379_v3 = vadd.f32 %v5373_v13, %v3066_v22 }
0x13b0   : > { %v3153_v44 = vpack.c.bf16 %v5379_v3, %v5376_v21  ;;  %v2931_v24 = vsel %vm1021_vm15, %v2926_v2, -inf  ;;  %v2763_v3 = vadd.f32 %v5284_v47, %v5359_v20 }
0x13b1   : > { %2932 = vmax.xlane.f32.xlu1 %v2931_v24 }
0x13b5   : > { %v2921_v41 = vpop.f32.mrf.mxu2  ;;  %v5384_v15 = vpop.f32.mrf.mxu1 }
0x13b6   : > { %v2927_v25 = vmul.f32 0.35355338, %v2921_v41 }
0x13b8   : > { %v2934_v26 = vsel %vm1028_vm0, %v2927_v25, -inf }
0x13b9   : > { %2935 = vmax.xlane.f32.xlu2 %v2934_v26 }
0x13bd   : > { %v2923_v29 = vpop.f32.mrf.mxu2  ;;  %v3071_v30 = vpop.f32.mrf.mxu1 }
0x13c5   : > { %v3104_v31 = vpop.f32.mrf.mxu2 }
0x13c6   : > { %v3105_v35 = vadd.f32 %v4326_v34, %v3104_v31 }
0x13cd   : > { %v3106_v33 = vpop.f32.mrf.mxu2 }
0x13ce   : > { %v3107_v39 = vadd.f32 %v4326_v34, %v3106_v33 }
0x13d0   : > { %v3155_v40 = vpack.c.bf16 %v3107_v39, %v3105_v35 }
0x13d2   : > { %v3164_v51 = vsel %vm987_vm14, %v3155_v40, 0 }
0x13d5   : > { %v3109_v36 = vpop.f32.mrf.mxu2 }
0x13d6   : > { %v3110_v37 = vadd.f32 %v4326_v34, %v3109_v36 }
0x13d8   : > { %v3156_v17 = vpack.c.bf16 %v3110_v37, %v3110_v37 }
0x13da   : > { %v3167_v46 = vsel %vm987_vm14, %v3156_v17, 0 }
0x13db   : > { %3175 = vmatpush.bf16.xpose.msra.mxu0 %v3167_v46  ;;  %v3070_v46 = vadd.f32 %v5373_v13, %v5384_v15  ;;  %v2765_v13 = vadd.f32 %v5286_v48, %v5361_v42 }
0x13dd   : > { %v3111_v49 = vpop.f32.mrf.mxu2 }
0x13e3   : > { %3176 = vmatpush.bf16.xpose.msra.mxu0 %v3164_v51 }
0x141c   : > { %v2930_v52 = vpop.xlane.xlu0 %2929 }
0x141d   : > { %v2937_v53 = vsub.f32 %v2925_v57, %v2930_v52  ;;  %v3154_v52 = vpack.c.bf16 %v3070_v46, %v3070_v46 }
0x141f   : > { %v2940_v54 = vmul.f32 1.442695, %v2937_v53 }
0x1421   : > { %4431 = vpow2.f32 %v2940_v54 }
0x1424   : > { %v2933_v58 = vpop.xlane.xlu1 %2932 }
0x1425   : > { %v2938_v61 = vsub.f32 %v2926_v2, %v2933_v58 }
0x1427   : > { %v4432_v62 = vpop.eup %4431  ;;  %v2942_v1 = vmul.f32 1.442695, %v2938_v61 }
0x1428   : > { %v2946_v38 = vsel %vm1021_vm15, %v4432_v62, 0.0 }
0x1429   : > { %4433 = vpow2.f32 %v2942_v1  ;;  %2947 = vadd.xlane.f32.xlu0 %v2946_v38 }
0x142c   : > { %v2936_v10 = vpop.xlane.xlu2 %2935 }
0x142d   : > { %v2939_v45 = vsub.f32 %v2927_v25, %v2936_v10 }
0x142f   : > { %v4434_v4 = vpop.eup %4433  ;;  %v2944_v9 = vmul.f32 1.442695, %v2939_v45 }
0x1430   : > { %v2949_v12 = vsel %vm1021_vm15, %v4434_v4, 0.0 }
0x1431   : > { %4435 = vpow2.f32 %v2944_v9  ;;  %2950 = vadd.xlane.f32.xlu1 %v2949_v12 }
0x1437   : > { %v4436_v5 = vpop.eup %4435 }
0x1438   : > { %v2952_v16 = vsel %vm1028_vm0, %v4436_v5, 0.0 }
0x1439   : > { %2953 = vadd.xlane.f32.xlu2 %v2952_v16 }
0x149c   : > { %v2948_v60 = vpop.xlane.xlu0 %2947 }
0x149d   : > { %4437 = vrcp.f32 %v2948_v60 }
0x14a3   : > { %v4438_v55 = vpop.eup %4437 }
0x14a4   : > { %v2958_v18 = vmul.f32 %v4438_v55, %v4432_v62  ;;  %v2951_v23 = vpop.xlane.xlu1 %2950 }
0x14a5   : > { %4439 = vrcp.f32 %v2951_v23 }
0x14a6   : > { %v2961_v57 = vsel %vm1021_vm15, %v2958_v18, 0.0 }
0x14a7   : > { %4075 = vst [vmem:[%s4788_s1 + $0x90] sm:$0xff] %v2961_v57 }
0x14ab   : > { %v4440_v63 = vpop.eup %4439 }
0x14ac   : > { %v2959_v6 = vmul.f32 %v4440_v63, %v4434_v4  ;;  %v2954_v22 = vpop.xlane.xlu2 %2953 }
0x14ad   : > { %4441 = vrcp.f32 %v2954_v22 }
0x14ae   : > { %v2962_v2 = vsel %vm1021_vm15, %v2959_v6, 0.0  ;;  %v2968_v24 = vpack.c.bf16 %v2959_v6, %v2958_v18 }
0x14af   : > { %4076 = vst [vmem:[%s4788_s1 + $0x98] sm:$0xff] %v2962_v2 }
0x14b0   : > { %4078 = vmatmul.msk.bf16.vlgmr.msra.gmra.mxu3 %vm1021_vm15, %v2968_v24  ;;  %v4135_v24 = vld [vmem:[%s5565_s13 + $0x1c] sm:$0xf] }
0x14b3   : > { %v4442_v41 = vpop.eup %4441 }
0x14b4   : > { %v2960_v25 = vmul.f32 %v4442_v41, %v4436_v5  ;;  %v3272_v41 = vsel %vm1336_vm1, %v4135_v24, 0 }
0x14b5   : > { %3281 = vmatpush.bf16.msra.mxu2 %v3272_v41 }
0x14b6   : > { %v2963_v26 = vsel %vm1021_vm15, %v2960_v25, 0.0  ;;  %v2969_v27 = vpack.c.bf16 %v2960_v25, %v2960_v25 }
0x14b7   : > { %4077 = vst [vmem:[%s4788_s1 + $0xa0] sm:$0x1] %v2963_v26 }
0x14c0   : > { %4079 = vmatmul.msk.bf16.gmra.mxu3 %vm1021_vm15, %v2969_v27 }
0x14d0   : > { %4126 = vmatmul.msk.bf16.vlgmr.msrb.gmra.mxu3 %vm774_vm2, %v5156_v19  ;;  %v4327_v19 = vld [vmem:[%s5564_s12 + $0x7] ss:$0 sm:$0xff] }
0x14e0   : > { %4127 = vmatmul.msk.bf16.gmra.mxu3 %vm774_vm2, %v5165_v8 }
0x1533   : > { %v2990_v28 = vpop.f32.mrf.mxu3 }
0x153b   : > { %v2992_v29 = vpop.f32.mrf.mxu3 }
0x153c   : > { %v2999_v30 = vpack.c.bf16 %v2992_v29, %v2990_v28 }
0x153e   : > { %4081 = vmatmul.msk.bf16.vlgmr.msrb.gmra.mxu0 %vm987_vm14, %v2999_v30 }
0x1543   : > { %v2995_v31 = vpop.f32.mrf.mxu3 }
0x1544   : > { %v3000_v34 = vpack.c.bf16 %v2995_v31, %v2995_v31 }
0x154b   : > { %v2997_v33 = vpop.f32.mrf.mxu3 }
0x154e   : > { %4082 = vmatmul.msk.bf16.gmra.mxu0 %vm987_vm14, %v3000_v34 }
0x1553   : > { %v3144_v36 = vpop.f32.mrf.mxu3 }
0x1554   : > { %v3145_v40 = vadd.f32 %v4327_v19, %v3144_v36 }
0x155b   : > { %v3146_v37 = vpop.f32.mrf.mxu3 }
0x155c   : > { %v3147_v35 = vadd.f32 %v4327_v19, %v3146_v37 }
0x155e   : > { %4128 = vmatmul.msk.bf16.vlgmr.msra.gmra.mxu0 %vm987_vm14, %v3153_v44  ;;  %v3232_v21 = vpack.c.bf16 %v3147_v35, %v3145_v40 }
0x1563   : > { %v3149_v8 = vpop.f32.mrf.mxu3 }
0x1564   : > { %v3150_v17 = vadd.f32 %v4327_v19, %v3149_v8 }
0x1566   : > { %v3233_v39 = vpack.c.bf16 %v3150_v17, %v3150_v17 }
0x1568   : > { %v3241_v49 = vand.u32 %v3233_v39, %v4744_v0  ;;  %v2768_v0 = vadd.f32 %v5288_v50, %v5363_v43 }
0x156a   : > { %3249 = vmatpush.bf16.msrb.mxu1 %v3241_v49 }
0x156b   : > { %v3151_v51 = vpop.f32.mrf.mxu3 }
0x156e   : > { %4129 = vmatmul.msk.bf16.gmra.mxu0 %vm987_vm14, %v3154_v52  ;;  %3250 = vmatpush.bf16.msrb.mxu1 %v3232_v21  ;;  %v4328_v21 = vld [vmem:[%s5566_s14 + $0x1] ss:$0 sm:$0xff] }
0x15bb   : > { %v3021_v44 = vpop.f32.mrf.mxu0 }
0x15bc   : > { %v5432_v53 = vadd.f32 %v3021_v44, %v2763_v3 }
0x15c3   : > { %v3023_v15 = vpop.f32.mrf.mxu0 }
0x15c4   : > { %v5436_v54 = vadd.f32 %v3023_v15, %v2765_v13 }
0x15cb   : > { %v3026_v58 = vpop.f32.mrf.mxu0 }
0x15cc   : > { %v5440_v61 = vadd.f32 %v3026_v58, %v2768_v0 }
0x15d3   : > { %v3028_v62 = vpop.f32.mrf.mxu0 }
0x15db   : > { %v3178_v1 = vpop.f32.mrf.mxu0 }
0x15dc   : > { %v3187_v38 = vmul.f32 0.35355338, %v3178_v1 }
0x15de   : > { %v3190_v47 = vsel %vm1021_vm15, %v3187_v38, -inf }
0x15df   : > { %3191 = vmax.xlane.f32.xlu0 %v3190_v47 }
0x15e3   : > { %v3180_v20 = vpop.f32.mrf.mxu0 }
0x15e4   : > { %v3188_v10 = vmul.f32 0.35355338, %v3180_v20 }
0x15e6   : > { %v3193_v45 = vsel %vm1021_vm15, %v3188_v10, -inf }
0x15e7   : > { %3194 = vmax.xlane.f32.xlu1 %v3193_v45 }
0x15eb   : > { %v3183_v48 = vpop.f32.mrf.mxu0 }
0x15ec   : > { %v3189_v42 = vmul.f32 0.35355338, %v3183_v48 }
0x15ee   : > { %v3196_v4 = vsel %vm1028_vm0, %v3189_v42, -inf }
0x15ef   : > { %3197 = vmax.xlane.f32.xlu2 %v3196_v4 }
0x15f3   : > { %v3185_v50 = vpop.f32.mrf.mxu0 }
0x1652   : > { %v3192_v43 = vpop.xlane.xlu0 %3191 }
0x1653   : > { %v3199_v9 = vsub.f32 %v3187_v38, %v3192_v43 }
0x1655   : > { %v3202_v12 = vmul.f32 1.442695, %v3199_v9 }
0x1657   : > { %4443 = vpow2.f32 %v3202_v12 }
0x165a   : > { %v3195_v5 = vpop.xlane.xlu1 %3194 }
0x165b   : > { %v3200_v16 = vsub.f32 %v3188_v10, %v3195_v5 }
0x165d   : > { %v4444_v60 = vpop.eup %4443  ;;  %v3204_v56 = vmul.f32 1.442695, %v3200_v16 }
0x165e   : > { %v3208_v7 = vsel %vm1021_vm15, %v4444_v60, 0.0 }
0x165f   : > { %4445 = vpow2.f32 %v3204_v56  ;;  %3209 = vadd.xlane.f32.xlu0 %v3208_v7  ;;  %v4271_v56 = vld [vmem:[%s5569_s17 + $0x18] sm:$0xff] }
0x1660   : > { %3424 = vmatpush.bf16.msra.mxu3 %v4271_v56 }
0x1662   : > { %v3198_v55 = vpop.xlane.xlu2 %3197 }
0x1663   : > { %v3201_v18 = vsub.f32 %v3189_v42, %v3198_v55 }
0x1665   : > { %v4446_v23 = vpop.eup %4445  ;;  %v3206_v57 = vmul.f32 1.442695, %v3201_v18 }
0x1666   : > { %v3211_v63 = vsel %vm1021_vm15, %v4446_v23, 0.0 }
0x1667   : > { %4447 = vpow2.f32 %v3206_v57  ;;  %3212 = vadd.xlane.f32.xlu1 %v3211_v63 }
0x166d   : > { %v4448_v6 = vpop.eup %4447 }
0x166e   : > { %v3214_v22 = vsel %vm1028_vm0, %v4448_v6, 0.0 }
0x166f   : > { %3215 = vadd.xlane.f32.xlu2 %v3214_v22 }
0x16d2   : > { %v3210_v2 = vpop.xlane.xlu0 %3209 }
0x16d3   : > { %4449 = vrcp.f32 %v3210_v2 }
0x16d9   : > { %v4450_v25 = vpop.eup %4449 }
0x16da   : > { %v3220_v26 = vmul.f32 %v4450_v25, %v4444_v60  ;;  %v3213_v27 = vpop.xlane.xlu1 %3212 }
0x16db   : > { %4451 = vrcp.f32 %v3213_v27 }
0x16dc   : > { %v3223_v28 = vsel %vm1021_vm15, %v3220_v26, 0.0 }
0x16dd   : > { %4130 = vst [vmem:[%s4788_s1 + $0xa8] sm:$0xff] %v3223_v28 }
0x16e1   : > { %v4452_v29 = vpop.eup %4451 }
0x16e2   : > { %v3221_v30 = vmul.f32 %v4452_v29, %v4446_v23  ;;  %v3216_v31 = vpop.xlane.xlu2 %3215  ;;  %v4270_v23 = vld [vmem:[%s5569_s17 + $0x10] sm:$0xff] }
0x16e3   : > { %4453 = vrcp.f32 %v3216_v31  ;;  %3425 = vmatpush.bf16.msra.mxu3 %v4270_v23 }
0x16e4   : > { %v3224_v33 = vsel %vm1021_vm15, %v3221_v30, 0.0  ;;  %v3230_v34 = vpack.c.bf16 %v3221_v30, %v3220_v26 }
0x16e5   : > { %4131 = vst [vmem:[%s4788_s1 + $0xb0] sm:$0xff] %v3224_v33 }
0x16e6   : > { %4133 = vmatmul.msk.bf16.vlgmr.msrb.gmra.mxu1 %vm1021_vm15, %v3230_v34 }
0x16e9   : > { %v4454_v36 = vpop.eup %4453 }
0x16ea   : > { %v3222_v37 = vmul.f32 %v4454_v36, %v4448_v6 }
0x16ec   : > { %v3225_v19 = vsel %vm1021_vm15, %v3222_v37, 0.0  ;;  %v3231_v8 = vpack.c.bf16 %v3222_v37, %v3222_v37 }
0x16ed   : > { %4132 = vst [vmem:[%s4788_s1 + $0xb8] sm:$0x1] %v3225_v19 }
0x16f6   : > { %4134 = vmatmul.msk.bf16.gmra.mxu1 %vm1021_vm15, %v3231_v8  ;;  %v4329_v8 = vld [vmem:[%s5567_s15 + $0x1] ss:$0 sm:$0xff] }
0x1763   : > { %v3252_v17 = vpop.f32.mrf.mxu1 }
0x176b   : > { %v3254_v39 = vpop.f32.mrf.mxu1 }
0x176c   : > { %v3261_v46 = vpack.c.bf16 %v3254_v39, %v3252_v17 }
0x176e   : > { %4136 = vmatmul.msk.bf16.vlgmr.msra.gmra.mxu2 %vm987_vm14, %v3261_v46 }
0x1773   : > { %v3257_v35 = vpop.f32.mrf.mxu1 }
0x1774   : > { %v3262_v40 = vpack.c.bf16 %v3257_v35, %v3257_v35 }
0x177b   : > { %v3259_v49 = vpop.f32.mrf.mxu1 }
0x177c   : > { %v4330_v49 = vld [vmem:[%s5568_s16 + $0x1] ss:$0 sm:$0xff] }
0x177e   : > { %4137 = vmatmul.msk.bf16.gmra.mxu2 %vm987_vm14, %v3262_v40 }
0x17f1   : > { %v3283_v51 = vpop.f32.mrf.mxu2 }
0x17f2   : > { %v3292_v52 = vadd.f32 %v3283_v51, %v5432_v53 }
0x17f4   : > { %v3295_v3 = vadd.f32 %v3292_v52, %v5080_v11 }
0x17f6   : > { %v5467_v44 = vadd.f32 %v4328_v21, %v3295_v3 }
0x17f8   : > { %v3310_v13 = vsel %vm774_vm2, %v5467_v44, 0.0 }
0x17f9   : > { %3311 = vadd.xlane.f32.xlu0 %v3310_v13  ;;  %v3285_v15 = vpop.f32.mrf.mxu2 }
0x17fa   : > { %v3293_v0 = vadd.f32 %v3285_v15, %v5436_v54 }
0x17fc   : > { %v3296_v58 = vadd.f32 %v3293_v0, %v5085_v14 }
0x17fe   : > { %v5473_v62 = vadd.f32 %v4328_v21, %v3296_v58 }
0x1800   : > { %v3313_v53 = vsel %vm774_vm2, %v5473_v62, 0.0 }
0x1801   : > { %3314 = vadd.xlane.f32.xlu1 %v3313_v53  ;;  %v3288_v1 = vpop.f32.mrf.mxu2 }
0x1802   : > { %v3294_v11 = vadd.f32 %v3288_v1, %v5440_v61 }
0x1804   : > { %v3297_v38 = vadd.f32 %v3294_v11, %v5090_v59 }
0x1806   : > { %v5479_v47 = vadd.f32 %v4328_v21, %v3297_v38 }
0x1808   : > { %v3316_v20 = vsel %vm781_vm3, %v5479_v47, 0.0 }
0x1809   : > { %3317 = vadd.xlane.f32.xlu2 %v3316_v20  ;;  %v3290_v54 = vpop.f32.mrf.mxu2 }
0x180a   : > { %v4279_v54 = vld [vmem:[%s5571_s19 + $0x78] sm:$0xff] }
0x180b   : > { %3535 = vmatpush.bf16.msrb.mxu0 %v4279_v54 }
0x186c   : > { %v3312_v10 = vpop.xlane.xlu0 %3311 }
0x186d   : > { %v3319_v14 = vmul.f32 %v3312_v10, %v4647_v32  ;;  %v4278_v10 = vld [vmem:[%s5571_s19 + $0x70] sm:$0xff] }
0x186e   : > { %3536 = vmatpush.bf16.msrb.mxu0 %v4278_v10 }
0x186f   : > { %v3322_v45 = vsub.f32 %v5467_v44, %v3319_v14  ;;  %v4277_v14 = vld [vmem:[%s5571_s19 + $0x68] sm:$0xff] }
0x1871   : > { %v3325_v48 = vmul.f32 %v3322_v45, %v3322_v45 }
0x1872   : > { %3537 = vmatpush.bf16.msrb.mxu0 %v4277_v14 }
0x1873   : > { %v3328_v42 = vsel %vm774_vm2, %v3325_v48, 0.0  ;;  %v4275_v48 = vld [vmem:[%s5571_s19 + $0x58] sm:$0xff] }
0x1874   : > { %3329 = vadd.xlane.f32.xlu0 %v3328_v42  ;;  %v3315_v4 = vpop.xlane.xlu1 %3314  ;;  %v4274_v42 = vld [vmem:[%s5571_s19 + $0x50] sm:$0xff] }
0x1875   : > { %v3320_v61 = vmul.f32 %v3315_v4, %v4647_v32  ;;  %v4273_v4 = vld [vmem:[%s5571_s19 + $0x48] sm:$0xff] }
0x1877   : > { %v3323_v59 = vsub.f32 %v5473_v62, %v3320_v61  ;;  %v4331_v61 = vld [vmem:[%s5570_s18 + $0x1] ss:$0 sm:$0xff] }
0x1879   : > { %v3326_v50 = vmul.f32 %v3323_v59, %v3323_v59 }
0x187b   : > { %v3331_v43 = vsel %vm774_vm2, %v3326_v50, 0.0  ;;  %v4272_v50 = vld [vmem:[%s5571_s19 + $0x40] sm:$0xff] }
0x187c   : > { %3332 = vadd.xlane.f32.xlu1 %v3331_v43  ;;  %v3318_v9 = vpop.xlane.xlu2 %3317 }
0x187d   : > { %v3321_v12 = vmul.f32 %v3318_v9, %v4647_v32 }
0x187f   : > { %v3324_v5 = vsub.f32 %v5479_v47, %v3321_v12 }
0x1881   : > { %v3327_v16 = vmul.f32 %v3324_v5, %v3324_v5 }
0x1883   : > { %v3334_v60 = vsel %vm781_vm3, %v3327_v16, 0.0 }
0x1884   : > { %3335 = vadd.xlane.f32.xlu2 %v3334_v60 }
0x18e7   : > { %v3330_v7 = vpop.xlane.xlu0 %3329 }
0x18e8   : > { %v3337_v55 = vmul.f32 %v3330_v7, %v4647_v32 }
0x18ea   : > { %v3340_v18 = vadd.f32 1e-05, %v3337_v55 }
0x18ec   : > { %4455 = vrsqrt.f32 %v3340_v18  ;;  %vm3349_vm15 = vweird.f32 %v3340_v18 }
0x18ef   : > { %v3333_v57 = vpop.xlane.xlu1 %3332 }
0x18f0   : > { %v3338_v63 = vmul.f32 %v3333_v57, %v4647_v32 }
0x18f2   : > { %v4456_v6 = vpop.eup %4455  ;;  %v3341_v22 = vadd.f32 1e-05, %v3338_v63 }
0x18f3   : > { %v3344_v2 = vmul.f32 %v4456_v6, %v3340_v18  ;;  %vm3350_vm14 = vweird.f32 %v4456_v6 }
0x18f4   : > { %4457 = vrsqrt.f32 %v3341_v22  ;;  %vm3351_vm0 = vmor %vm3349_vm15, %vm3350_vm14  ;;  %vm3359_vm12 = vweird.f32 %v3341_v22 }
0x18f5   : > { %v3345_v24 = vmul.f32 %v4456_v6, %v3344_v2 }
0x18f7   : > { %v3346_v41 = vmul.f32 0.5, %v3345_v24  ;;  %v3336_v25 = vpop.xlane.xlu2 %3335 }
0x18f8   : > { %v3339_v26 = vmul.f32 %v3336_v25, %v4647_v32 }
0x18f9   : > { %v3347_v27 = vsub.f32 1.5, %v3346_v41 }
0x18fa   : > { %v4458_v28 = vpop.eup %4457  ;;  %v3342_v29 = vadd.f32 1e-05, %v3339_v26 }
0x18fb   : > { %v3348_v30 = vmul.f32 %v4456_v6, %v3347_v27  ;;  %v3354_v31 = vmul.f32 %v4458_v28, %v3341_v22  ;;  %vm3360_vm1 = vweird.f32 %v4458_v28 }
0x18fc   : > { %4459 = vrsqrt.f32 %v3342_v29  ;;  %vm3361_vm13 = vmor %vm3359_vm12, %vm3360_vm1  ;;  %vm3369_vm5 = vweird.f32 %v3342_v29 }
0x18fd   : > { %v3355_v33 = vmul.f32 %v4458_v28, %v3354_v31  ;;  %v3352_v34 = vsel %vm3351_vm0, %v4456_v6, %v3348_v30 }
0x18fe   : > { %v3373_v32 = vmul.f32 %v3352_v34, %v3322_v45  ;;  %v4276_v45 = vld [vmem:[%s5571_s19 + $0x60] sm:$0xff] }
0x18ff   : > { %v3356_v36 = vmul.f32 0.5, %v3355_v33  ;;  %3538 = vmatpush.bf16.msrb.mxu0 %v4276_v45 }
0x1900   : > { %v3379_v40 = vmul.f32 %v4329_v8, %v3373_v32 }
0x1901   : > { %v3357_v37 = vsub.f32 1.5, %v3356_v36 }
0x1902   : > { %v4460_v19 = vpop.eup %4459  ;;  %v3385_v13 = vadd.f32 %v4330_v49, %v3379_v40 }
0x1903   : > { %v3358_v17 = vmul.f32 %v4458_v28, %v3357_v37  ;;  %v3364_v39 = vmul.f32 %v4460_v19, %v3342_v29  ;;  %vm3370_vm4 = vweird.f32 %v4460_v19  ;;  %3539 = vmatpush.bf16.msrb.mxu0 %v4275_v48 }
0x1904   : > { %vm3371_vm6 = vmor %vm3369_vm5, %vm3370_vm4 }
0x1905   : > { %v3362_v46 = vsel %vm3361_vm13, %v4458_v28, %v3358_v17  ;;  %v3365_v35 = vmul.f32 %v4460_v19, %v3364_v39 }
0x1906   : > { %v3374_v51 = vmul.f32 %v3362_v46, %v3323_v59 }
0x1907   : > { %v3366_v52 = vmul.f32 0.5, %v3365_v35  ;;  %3540 = vmatpush.bf16.msrb.mxu0 %v4274_v42  ;;  %v4332_v35 = vld [vmem:[%s5572_s20 + $0x1] ss:$0 sm:$0xff] }
0x1908   : > { %v3380_v21 = vmul.f32 %v4329_v8, %v3374_v51 }
0x1909   : > { %v3367_v3 = vsub.f32 1.5, %v3366_v52 }
0x190a   : > { %v3386_v15 = vadd.f32 %v4330_v49, %v3380_v21 }
0x190b   : > { %v3368_v0 = vmul.f32 %v4460_v19, %v3367_v3  ;;  %3541 = vmatpush.bf16.msrb.mxu0 %v4273_v4 }
0x190c   : > { %v3388_v58 = vpack.c.bf16 %v3386_v15, %v3385_v13 }
0x190d   : > { %v3372_v53 = vsel %vm3371_vm6, %v4460_v19, %v3368_v0 }
0x190e   : > { %4154 = vmatmul.msk.bf16.vlgmr.msra.gmra.mxu3 %vm774_vm2, %v3388_v58  ;;  %v3375_v1 = vmul.f32 %v3372_v53, %v3324_v5 }
0x190f   : > { %3542 = vmatpush.bf16.msrb.mxu0 %v4272_v50 }
0x1910   : > { %v3381_v11 = vmul.f32 %v4329_v8, %v3375_v1 }
0x1912   : > { %v3387_v38 = vadd.f32 %v4330_v49, %v3381_v11 }
0x1914   : > { %v3389_v20 = vpack.c.bf16 %v3387_v38, %v3387_v38 }
0x191e   : > { %4155 = vmatmul.msk.bf16.gmra.mxu3 %vm774_vm2, %v3389_v20 }
0x1991   : > { %v3427_v59 = vpop.f32.mrf.mxu3 }
0x1992   : > { %v3428_v43 = vadd.f32 %v4331_v61, %v3427_v59 }
0x1994   : > { %v3436_v9 = vmul.f32 %v3428_v43, %v3428_v43 }
0x1996   : > { %v3439_v12 = vmul.f32 %v3436_v9, %v3428_v43 }
0x1998   : > { %v3442_v5 = vmul.f32 0.044715, %v3439_v12 }
0x1999   : > { %v3429_v16 = vpop.f32.mrf.mxu3 }
0x199a   : > { %v3445_v60 = vadd.f32 %v3442_v5, %v3428_v43  ;;  %v3430_v56 = vadd.f32 %v4331_v61, %v3429_v16 }
0x199c   : > { %v3448_v7 = vmul.f32 0.7978846, %v3445_v60  ;;  %v3437_v55 = vmul.f32 %v3430_v56, %v3430_v56 }
0x199e   : > { %v3440_v18 = vmul.f32 %v3437_v55, %v3430_v56  ;;  %4461 = vtanh.f32 %v3448_v7 }
0x19a0   : > { %v3443_v23 = vmul.f32 0.044715, %v3440_v18 }
0x19a1   : > { %v3432_v57 = vpop.f32.mrf.mxu3 }
0x19a2   : > { %v3446_v63 = vadd.f32 %v3443_v23, %v3430_v56  ;;  %v3433_v6 = vadd.f32 %v4331_v61, %v3432_v57 }
0x19a4   : > { %v3449_v22 = vmul.f32 0.7978846, %v3446_v63  ;;  %v3438_v2 = vmul.f32 %v3433_v6, %v3433_v6  ;;  %v4462_v24 = vpop.eup %4461 }
0x19a5   : > { %v3454_v26 = vadd.f32 1.0, %v4462_v24 }
0x19a6   : > { %4463 = vtanh.f32 %v3449_v22  ;;  %v3441_v41 = vmul.f32 %v3438_v2, %v3433_v6 }
0x19a7   : > { %v3457_v31 = vmul.f32 0.5, %v3454_v26 }
0x19a8   : > { %v3444_v25 = vmul.f32 0.044715, %v3441_v41 }
0x19a9   : > { %v3434_v27 = vpop.f32.mrf.mxu3  ;;  %v3460_v36 = vmul.f32 %v3457_v31, %v3428_v43 }
0x19aa   : > { %v3447_v28 = vadd.f32 %v3444_v25, %v3433_v6 }
0x19ac   : > { %v4464_v29 = vpop.eup %4463  ;;  %v3450_v30 = vmul.f32 0.7978846, %v3447_v28 }
0x19ad   : > { %v3455_v33 = vadd.f32 1.0, %v4464_v29 }
0x19ae   : > { %4465 = vtanh.f32 %v3450_v30 }
0x19af   : > { %v3458_v34 = vmul.f32 0.5, %v3455_v33 }
0x19b1   : > { %v3461_v37 = vmul.f32 %v3458_v34, %v3430_v56 }
0x19b3   : > { %v3463_v19 = vpack.c.bf16 %v3461_v37, %v3460_v36 }
0x19b4   : > { %v4466_v8 = vpop.eup %4465 }
0x19b5   : > { %3543 = vmatmul.bf16.vlgmr.msrb.gmra.mxu0 %v3463_v19  ;;  %v3456_v32 = vadd.f32 1.0, %v4466_v8 }
0x19b7   : > { %v3459_v17 = vmul.f32 0.5, %v3456_v32 }
0x19b9   : > { %v3462_v39 = vmul.f32 %v3459_v17, %v3433_v6 }
0x19bb   : > { %v3464_v46 = vpack.c.bf16 %v3462_v39, %v3462_v39 }
0x19c5   : > { %3548 = vmatmul.bf16.gmra.mxu0 %v3464_v46 }
0x1a32   : > { %v3544_v49 = vpop.f32.mrf.mxu0 }
0x1a33   : > { %v3545_v40 = vadd.f32 %v4332_v35, %v3544_v49 }
0x1a35   : > { %v3553_v51 = vadd.f32 %v3545_v40, %v5467_v44 }
0x1a37   : > { %3556 = vst.msk [vmem:[%s691_s27] sm:$0xff] %vm774_vm2, %v3553_v51 }
0x1a3a   : > { %v3546_v52 = vpop.f32.mrf.mxu0 }
0x1a3b   : > { %v3547_v21 = vadd.f32 %v4332_v35, %v3546_v52 }
0x1a3d   : > { %v3554_v3 = vadd.f32 %v3547_v21, %v5473_v62 }
0x1a3f   : > { %3557 = vst.msk [vmem:[%s691_s27 + $0x8] sm:$0xff] %vm774_vm2, %v3554_v3 }
0x1a42   : > { %v3549_v13 = vpop.f32.mrf.mxu0 }
0x1a43   : > { %v3550_v15 = vadd.f32 %v4332_v35, %v3549_v13 }
0x1a45   : > { %v3555_v0 = vadd.f32 %v3550_v15, %v5479_v47 }
0x1a47   : > { %3558 = vst.msk [vmem:[%s691_s27 + $0x10] sm:$0x1] %vm781_vm3, %v3555_v0 }
0x1a4a   : > { %v3551_v58 = vpop.f32.mrf.mxu0 }
0x1a4b PF: > { %s33_s3 = sadd.s32 1, %s4473_s3  }
0x1a4c   : > { %p30_p4 = scmp.ge.s32.totalorder %s33_s3, 4  }
0x1a4e   :  { %32 = sbr.rel (!%p30_p4) target bundleno = 8 (0x8), region = 211 }

</bundles_post_ra>
